<compile_context>
chip_gen: v6e
topology: v6e:2x2x1
jax: 0.10.0
libtpu: 0.0.40
codegen_flags: <defaults>
</compile_context>

<pallas_src>
import functools

import numpy as np

import jax
import jax.numpy as jnp
from jax.experimental import pallas as pl
from jax.experimental.pallas import tpu as pltpu


# ----------------------------- hyperparameters ------------------------------------
N_BATCH = 2
H_IN = W_IN = 16
C1_IN, C1_OUT, K1, S1, P1, D1 = 8, 12, 4, 3, 3, 1            # conv1
C2_IN, C2_OUT, K2, S2, P2, D2, G2 = 12, 8, 3, 2, 2, 2, 4     # conv2 (grouped, dilated)

assert D1 == 1                       # conv1 patch-row layout assumes contiguous rows
assert C1_OUT == C2_IN

HP1 = H_IN + 2 * P1                                  # 22 (padded conv1 input height)
WP1 = W_IN + 2 * P1                                  # 22
OH1 = (HP1 - (D1 * (K1 - 1) + 1)) // S1 + 1          # 7
OW1 = (WP1 - (D1 * (K1 - 1) + 1)) // S1 + 1          # 7
HP2 = OH1 + 2 * P2                                   # 11 (padded conv2 input height)
WP2 = OW1 + 2 * P2                                   # 11
OH2 = (HP2 - (D2 * (K2 - 1) + 1)) // S2 + 1          # 4
OW2 = (WP2 - (D2 * (K2 - 1) + 1)) // S2 + 1          # 4

# conv2 patch-row scratch layout: rows = h2*(K2*CPAD) + j2*CPAD + c, lanes = (img, ow2)
CPAD = 16                                            # C2_IN padded to a sublane multiple
assert C2_IN <= CPAD
SPAN_H = (K2 - 1) * D2 + 1                           # 5 (H-extent incl. dilation gaps)
SPAN = SPAN_H * K2 * CPAD                            # 240 rows per conv2 output row

# conv1 output rows that conv2 actually reads (here: the even rows 0,2,4,6).
NEEDED_OH1 = tuple(sorted({oh2 * S2 + i2 * D2 - P2
                           for oh2 in range(OH2) for i2 in range(K2)
                           if 0 <= oh2 * S2 + i2 * D2 - P2 < OH1}))


# ----------------------------- fused kernel ---------------------------------------
def _fused_kernel(xg_ref, w1_ref, b1_ref, selg_ref, w2_ref, b2_ref,
                  out_ref, v1g_ref, *, img, precision):
    f32 = jnp.float32

    # Hoist small operands (JAX does not CSE broadcasts / reloads).
    w1 = w1_ref[...]            # (C1_OUT, K1*K1*C1_IN)
    b1 = b1_ref[...]            # (C1_OUT, 1)
    selg = selg_ref[...]        # (img*OW1, K2*img*OW2)
    w2 = w2_ref[...]            # (C2_OUT, SPAN)
    b2 = b2_ref[...]            # (C2_OUT, 1)

    # conv2 patch-row scratch: halo rows, dilation-gap rows and channel-pad rows
    # stay zero (they are also multiplied by statically-zero weight columns).
    v1g_ref[...] = jnp.zeros(v1g_ref.shape, v1g_ref.dtype)

    # -------- conv1: one 128-deep full-contraction dot per needed output row ------
    for oh1 in NEEDED_OH1:
        rhs = xg_ref[0, oh1 * S1 * K1 * C1_IN:(oh1 * S1 + K1) * K1 * C1_IN, :]
        r = jnp.dot(w1, rhs, preferred_element_type=f32,
                    precision=precision) + b1                     # (C1_OUT, img*OW1)
        # Hoisted W-axis gather for conv2 (zero columns fold in the W halo).
        g = jnp.dot(r, selg, preferred_element_type=f32,
                    precision=precision)                          # (C1_OUT, K2*img*OW2)
        base = (oh1 + P2) * K2 * CPAD
        for j2 in range(K2):
            v1g_ref[base + j2 * CPAD: base + j2 * CPAD + C2_IN, :] = \
                g[:, j2 * img * OW2:(j2 + 1) * img * OW2]

    # -------- conv2: one full-contraction dot per output row ----------------------
    blocks = []
    for oh2 in range(OH2):
        rhs2 = v1g_ref[oh2 * S2 * K2 * CPAD: oh2 * S2 * K2 * CPAD + SPAN, :]
        blocks.append(jnp.dot(w2, rhs2, preferred_element_type=f32,
                              precision=precision))               # (C2_OUT, img*OW2)
    v2 = jnp.concatenate(blocks, axis=-1) + b2                    # (C2_OUT, OH2*img*OW2)

    # -------- exact tanh-GELU chain, single lane-dense store ----------------------
    v3 = v2 * 0.5
    v4 = v2 * v2
    v5 = v4 * v2
    v6 = v5 * 0.044715
    v7 = v2 + v6
    v8 = v7 * 0.7978845608028654
    v9 = jnp.tanh(v8)
    v10 = v9 + 1.0
    out_ref[0] = v3 * v10


# ----------------------------- host-side packing ----------------------------------
def _tensorcores_per_chip():
    """v7x-class chips expose 2 TensorCores per chip; v5e/v6e have 1."""
    try:
        d = jax.devices()[0]
        if d.platform != "tpu":
            return 1
        kind = getattr(d, "device_kind", "").lower()
        if "v7" in kind or "7x" in kind:
            return 2
    except Exception:
        pass
    return 1


def _make_selg(img):
    """(img*OW1, K2*img*OW2) 0/1 matrix: lanes (img, w1) -> (j2, img, ow2).

    Zero columns implement the conv2 W halo, so no padded-width scratch is needed.
    """
    sel = np.zeros((img * OW1, K2 * img * OW2), np.float32)
    for j2 in range(K2):
        for im in range(img):
            for ow2 in range(OW2):
                w1 = ow2 * S2 + j2 * D2 - P2
                if 0 <= w1 < OW1:
                    sel[im * OW1 + w1, (j2 * img + im) * OW2 + ow2] = 1.0
    return jnp.asarray(sel)


def _pack_conv2_weights(w2):
    """grouped (C2_OUT, C2_IN//G2, K2, K2) -> one (C2_OUT, SPAN) block-diag slab.

    Columns are ordered (dh, j2, c) with zeros at dilation gaps (dh % D2 != 0) and
    at the channel pad (c >= C2_IN), matching the v1g scratch row layout.
    """
    coutg, cing = C2_OUT // G2, C2_IN // G2
    w2 = np.asarray(w2)
    dense = np.zeros((C2_OUT, C2_IN, K2, K2), np.float32)
    for g in range(G2):
        dense[g * coutg:(g + 1) * coutg, g * cing:(g + 1) * cing] = \
            w2[g * coutg:(g + 1) * coutg]
    big = np.zeros((C2_OUT, SPAN), np.float32)
    for i2 in range(K2):
        dh = i2 * D2
        for j2 in range(K2):
            col = (dh * K2 + j2) * CPAD
            big[:, col:col + C2_IN] = dense[:, :, i2, j2]
    return jnp.asarray(big)


def _prep_conv1_rows(x, img):
    """NCHW -> (nsteps, HP1*K1*C1_IN, img*OW1); rows (h, j, c), lanes (img, ow).

    Only the input's W-axis taps are pre-gathered (O(K1/S1 * input) bytes) -- no
    full im2col ever hits HBM.
    """
    n = x.shape[0]
    xp = jnp.pad(x, ((0, 0), (0, 0), (P1, P1), (P1, P1)))             # (N, C, HP1, WP1)
    idx = np.reshape(np.arange(OW1)[:, None] * S1 + np.arange(K1)[None, :] * D1, -1)
    xw = jnp.take(xp, jnp.asarray(idx), axis=3)
    xw = xw.reshape(n, C1_IN, HP1, OW1, K1)                           # (N, C, HP1, OW, J)
    xg = jnp.transpose(xw, (0, 2, 4, 1, 3))                           # (N, HP1, J, C, OW)
    xg = xg.reshape(n, HP1 * K1 * C1_IN, OW1)
    nsteps = n // img
    xg = xg.reshape(nsteps, img, HP1 * K1 * C1_IN, OW1)
    return jnp.transpose(xg, (0, 2, 1, 3)).reshape(
        nsteps, HP1 * K1 * C1_IN, img * OW1)


def _fused_forward(xg, w1slab, b1col, selg, w2big, b2col, img, precision):
    nsteps = xg.shape[0]
    kernel = functools.partial(_fused_kernel, img=img, precision=precision)
    grid_spec = pltpu.PrefetchScalarGridSpec(
        num_scalar_prefetch=0,
        grid=(nsteps,),
        in_specs=[
            pl.BlockSpec((1, HP1 * K1 * C1_IN, img * OW1), lambda s: (s, 0, 0)),
            pl.BlockSpec((C1_OUT, K1 * K1 * C1_IN), lambda s: (0, 0)),
            pl.BlockSpec((C1_OUT, 1), lambda s: (0, 0)),
            pl.BlockSpec((img * OW1, K2 * img * OW2), lambda s: (0, 0)),
            pl.BlockSpec((C2_OUT, SPAN), lambda s: (0, 0)),
            pl.BlockSpec((C2_OUT, 1), lambda s: (0, 0)),
        ],
        out_specs=pl.BlockSpec((1, C2_OUT, OH2 * img * OW2), lambda s: (s, 0, 0)),
        scratch_shapes=[pltpu.VMEM((HP2 * K2 * CPAD, img * OW2), jnp.float32)],
    )
    return pl.pallas_call(
        kernel,
        out_shape=jax.ShapeDtypeStruct((nsteps, C2_OUT, OH2 * img * OW2), jnp.float32),
        grid_spec=grid_spec,
        compiler_params=pltpu.CompilerParams(
            dimension_semantics=("parallel",),
            vmem_limit_bytes=32 * 1024 * 1024,
        ),
    )(xg, w1slab, b1col, selg, w2big, b2col)


class PallasModel:
    """conv1 -> grouped/dilated conv2 -> tanh-GELU, fused into one Pallas kernel."""

    def __init__(self, key):
        def init_conv(kw, kb, cout, cin_g, kk):
            fan_in = cin_g * kk * kk
            bound = 1.0 / (fan_in ** 0.5)
            w = jax.random.uniform(kw, (cout, cin_g, kk, kk), jnp.float32,
                                   -bound, bound)
            b = jax.random.uniform(kb, (cout,), jnp.float32, -bound, bound)
            return w, b

        ks = jax.random.split(key, 4)
        self.w1, self.b1 = init_conv(ks[0], ks[1], C1_OUT, C1_IN, K1)
        self.w2, self.b2 = init_conv(ks[2], ks[3], C2_OUT, C2_IN // G2, K2)

        # Static, kernel-friendly parameter packing (host side, done once).
        # conv1 weight (O, C, KH, KW) -> (O, KH*KW*C) matching xg's (i, j, c) rows.
        self.w1slab = jnp.transpose(self.w1, (0, 2, 3, 1)).reshape(
            C1_OUT, K1 * K1 * C1_IN)
        self.w2big = _pack_conv2_weights(self.w2)
        self.b1col = self.b1.reshape(C1_OUT, 1)
        self.b2col = self.b2.reshape(C2_OUT, 1)

        self._tc = _tensorcores_per_chip()
        self._fwd = None

    # --------------------------------------------------------------------------
    def _forward(self, x, precision):
        assert x.shape[1:] == (C1_IN, H_IN, W_IN), x.shape
        n = x.shape[0]
        # 2-TC chips: one image per grid step ("parallel" across TensorCores);
        # 1-TC chips: lane-stack the whole batch into a single grid step.
        nsteps = self._tc if (self._tc > 1 and n % self._tc == 0) else 1
        img = n // nsteps
        xg = _prep_conv1_rows(x, img)
        selg = _make_selg(img)
        out = _fused_forward(xg, self.w1slab, self.b1col, selg,
                             self.w2big, self.b2col, img, precision)
        # kernel output lanes are ordered (oh2, img, ow2) -> unpack to NCHW.
        out = out.reshape(nsteps, C2_OUT, OH2, img, OW2)
        out = jnp.transpose(out, (0, 3, 1, 2, 4)).reshape(n, C2_OUT, OH2, OW2)
        return out

    def _build_fwd(self, precision):
        return jax.jit(lambda x: self._forward(x, precision))

    def __call__(self, x):
        if self._fwd is None:
            # Feature-detect the cheapest supported MXU precision (review item 1):
            # HIGH (bf16x3) if the Mosaic lowering supports it AND it meets the
            # f32 tolerance, otherwise fall back to HIGHEST.
            last_err = None
            ref = None
            for prec in (jax.lax.Precision.HIGH, jax.lax.Precision.HIGHEST):
                try:
                    fwd = self._build_fwd(prec)
                    out = fwd(x)
                    jax.block_until_ready(out)
                    if ref is None:
                        ref = self.reference(x)
                    if bool(jnp.allclose(out, ref, rtol=2e-4, atol=2e-4)):
                        self._fwd = fwd
                        return out
                except Exception as e:   # lowering may not support this precision
                    last_err = e
            if last_err is not None:
                raise last_err
            raise RuntimeError("no matmul precision met the required tolerance")
        return self._fwd(x)

    # Pure-JAX reference (lax convs at HIGHEST precision) for correctness checking.
    def reference(self, x):
        hi = jax.lax.Precision.HIGHEST
        v1 = jax.lax.conv_general_dilated(
            x, self.w1, window_strides=(S1, S1),
            padding=[(P1, P1), (P1, P1)], rhs_dilation=(D1, D1),
            dimension_numbers=("NCHW", "OIHW", "NCHW"),
            feature_group_count=1, precision=hi)
        v1 = v1 + self.b1.reshape(1, -1, 1, 1)
        v2 = jax.lax.conv_general_dilated(
            v1, self.w2, window_strides=(S2, S2),
            padding=[(P2, P2), (P2, P2)], rhs_dilation=(D2, D2),
            dimension_numbers=("NCHW", "OIHW", "NCHW"),
            feature_group_count=G2, precision=hi)
        v2 = v2 + self.b2.reshape(1, -1, 1, 1)
        v3 = v2 * 0.5
        v4 = v2 * v2
        v5 = v4 * v2
        v6 = v5 * 0.044715
        v7 = v2 + v6
        v8 = v7 * 0.7978845608028654
        v9 = jnp.tanh(v8)
        v10 = v9 + 1.0
        return v3 * v10


if __name__ == "__main__":
    key = jax.random.PRNGKey(0)
    kx, kp = jax.random.split(key)
    x = jax.random.normal(kx, (N_BATCH, C1_IN, H_IN, W_IN), dtype=jnp.float32)

    model = PallasModel(kp)
    out = model(x)
    jax.block_until_ready(out)

    ref = model.reference(x)
    assert out.shape == ref.shape, (out.shape, ref.shape)
    max_err = float(jnp.max(jnp.abs(out - ref)))
    assert jnp.allclose(out, ref, rtol=2e-4, atol=2e-4), max_err
    print("KERNEL_OK")
</pallas_src>

<mosaic_0001>
module attributes {stable_mosaic.version = 11 : i64} {
  func.func @_fused_kernel(%arg0: i32, %arg1: memref<1x704x14xf32, #tpu.memory_space<vmem>>, %arg2: memref<12x128xf32, #tpu.memory_space<vmem>>, %arg3: memref<12x1xf32, #tpu.memory_space<vmem>>, %arg4: memref<14x24xf32, #tpu.memory_space<vmem>>, %arg5: memref<8x240xf32, #tpu.memory_space<vmem>>, %arg6: memref<8x1xf32, #tpu.memory_space<vmem>>, %arg7: memref<1x8x32xf32, #tpu.memory_space<vmem>>, %arg8: memref<528x8xf32, #tpu.memory_space<vmem>>) attributes {dimension_semantics = [#tpu.dimension_semantics<parallel>], iteration_bounds = array<i64: 1>, scalar_prefetch = 0 : i64, scratch_operands = 1 : i64, tpu.core_type = #tpu.core_type<tc>, window_params = [{transform_indices = @transform_0, window_bounds = array<i64: 1, 704, 14>}, {pipeline_mode = #tpu.pipeline_mode<synchronous>, transform_indices = @transform_1, window_bounds = array<i64: 12, 128>}, {pipeline_mode = #tpu.pipeline_mode<synchronous>, transform_indices = @transform_2, window_bounds = array<i64: 12, 1>}, {pipeline_mode = #tpu.pipeline_mode<synchronous>, transform_indices = @transform_3, window_bounds = array<i64: 14, 24>}, {pipeline_mode = #tpu.pipeline_mode<synchronous>, transform_indices = @transform_4, window_bounds = array<i64: 8, 240>}, {pipeline_mode = #tpu.pipeline_mode<synchronous>, transform_indices = @transform_5, window_bounds = array<i64: 8, 1>}, {transform_indices = @transform_6, window_bounds = array<i64: 1, 8, 32>}]} {
    %c0 = arith.constant 0 : index
    %c0_0 = arith.constant 0 : index
    %0 = vector.load %arg2[%c0, %c0_0] : memref<12x128xf32, #tpu.memory_space<vmem>>, vector<12x128xf32>
    %c0_1 = arith.constant 0 : index
    %c0_2 = arith.constant 0 : index
    %1 = vector.load %arg3[%c0_1, %c0_2] : memref<12x1xf32, #tpu.memory_space<vmem>>, vector<12x1xf32>
    %c0_3 = arith.constant 0 : index
    %c0_4 = arith.constant 0 : index
    %2 = vector.load %arg4[%c0_3, %c0_4] : memref<14x24xf32, #tpu.memory_space<vmem>>, vector<14x24xf32>
    %c0_5 = arith.constant 0 : index
    %c0_6 = arith.constant 0 : index
    %3 = vector.load %arg5[%c0_5, %c0_6] : memref<8x240xf32, #tpu.memory_space<vmem>>, vector<8x240xf32>
    %c0_7 = arith.constant 0 : index
    %c0_8 = arith.constant 0 : index
    %4 = vector.load %arg6[%c0_7, %c0_8] : memref<8x1xf32, #tpu.memory_space<vmem>>, vector<8x1xf32>
    %cst = arith.constant 0.000000e+00 : f32
    %5 = vector.broadcast %cst : f32 to vector<528x8xf32>
    %c0_9 = arith.constant 0 : index
    %c0_10 = arith.constant 0 : index
    %6 = vector.load %arg8[%c0_9, %c0_10] : memref<528x8xf32, #tpu.memory_space<vmem>>, vector<528x8xf32>
    tpu.vector_store %arg8[%c0_9, %c0_10], %5 {strides = array<i32>} : memref<528x8xf32, #tpu.memory_space<vmem>>, vector<528x8xf32>,
    %c0_11 = arith.constant 0 : index
    %c0_12 = arith.constant 0 : index
    %c0_13 = arith.constant 0 : index
    %7 = vector.load %arg1[%c0_11, %c0_12, %c0_13] : memref<1x704x14xf32, #tpu.memory_space<vmem>>, vector<1x128x14xf32>
    %8 = vector.shape_cast %7 : vector<1x128x14xf32> to vector<128x14xf32>
    %cst_14 = arith.constant dense<0.000000e+00> : vector<12x14xf32>
    %9 = tpu.matmul %0, %8, %cst_14 {dimension_numbers = #tpu.dot_dimension_numbers<[1], [0], [0], [1], [0, 0, 1, 1], [], []>, precision = #tpu.contract_precision<fp32>} : vector<12x128xf32>, vector<128x14xf32>, vector<12x14xf32> -> vector<12x14xf32>
    %10 = vector.broadcast %1 : vector<12x1xf32> to vector<12x14xf32>
    %11 = arith.addf %9, %10 : vector<12x14xf32>
    %cst_15 = arith.constant dense<0.000000e+00> : vector<12x24xf32>
    %12 = tpu.matmul %11, %2, %cst_15 {dimension_numbers = #tpu.dot_dimension_numbers<[1], [0], [0], [1], [0, 0, 1, 1], [], []>, precision = #tpu.contract_precision<fp32>} : vector<12x14xf32>, vector<14x24xf32>, vector<12x24xf32> -> vector<12x24xf32>
    %13 = vector.extract_strided_slice %12 {offsets = [0, 0], sizes = [12, 8], strides = [1, 1]} : vector<12x24xf32> to vector<12x8xf32>
    %c96 = arith.constant 96 : index
    %c0_16 = arith.constant 0 : index
    %14 = vector.load %arg8[%c96, %c0_16] : memref<528x8xf32, #tpu.memory_space<vmem>>, vector<12x8xf32>
    tpu.vector_store %arg8[%c96, %c0_16], %13 {strides = array<i32>} : memref<528x8xf32, #tpu.memory_space<vmem>>, vector<12x8xf32>,
    %15 = vector.extract_strided_slice %12 {offsets = [0, 8], sizes = [12, 8], strides = [1, 1]} : vector<12x24xf32> to vector<12x8xf32>
    %c112 = arith.constant 112 : index
    %c0_17 = arith.constant 0 : index
    %16 = vector.load %arg8[%c112, %c0_17] : memref<528x8xf32, #tpu.memory_space<vmem>>, vector<12x8xf32>
    tpu.vector_store %arg8[%c112, %c0_17], %15 {strides = array<i32>} : memref<528x8xf32, #tpu.memory_space<vmem>>, vector<12x8xf32>,
    %17 = vector.extract_strided_slice %12 {offsets = [0, 16], sizes = [12, 8], strides = [1, 1]} : vector<12x24xf32> to vector<12x8xf32>
    %c128 = arith.constant 128 : index
    %c0_18 = arith.constant 0 : index
    %18 = vector.load %arg8[%c128, %c0_18] : memref<528x8xf32, #tpu.memory_space<vmem>>, vector<12x8xf32>
    tpu.vector_store %arg8[%c128, %c0_18], %17 {strides = array<i32>} : memref<528x8xf32, #tpu.memory_space<vmem>>, vector<12x8xf32>,
    %c0_19 = arith.constant 0 : index
    %c192 = arith.constant 192 : index
    %c0_20 = arith.constant 0 : index
    %19 = vector.load %arg1[%c0_19, %c192, %c0_20] : memref<1x704x14xf32, #tpu.memory_space<vmem>>, vector<1x128x14xf32>
    %20 = vector.shape_cast %19 : vector<1x128x14xf32> to vector<128x14xf32>
    %cst_21 = arith.constant dense<0.000000e+00> : vector<12x14xf32>
    %21 = tpu.matmul %0, %20, %cst_21 {dimension_numbers = #tpu.dot_dimension_numbers<[1], [0], [0], [1], [0, 0, 1, 1], [], []>, precision = #tpu.contract_precision<fp32>} : vector<12x128xf32>, vector<128x14xf32>, vector<12x14xf32> -> vector<12x14xf32>
    %22 = vector.broadcast %1 : vector<12x1xf32> to vector<12x14xf32>
    %23 = arith.addf %21, %22 : vector<12x14xf32>
    %cst_22 = arith.constant dense<0.000000e+00> : vector<12x24xf32>
    %24 = tpu.matmul %23, %2, %cst_22 {dimension_numbers = #tpu.dot_dimension_numbers<[1], [0], [0], [1], [0, 0, 1, 1], [], []>, precision = #tpu.contract_precision<fp32>} : vector<12x14xf32>, vector<14x24xf32>, vector<12x24xf32> -> vector<12x24xf32>
    %25 = vector.extract_strided_slice %24 {offsets = [0, 0], sizes = [12, 8], strides = [1, 1]} : vector<12x24xf32> to vector<12x8xf32>
    %c192_23 = arith.constant 192 : index
    %c0_24 = arith.constant 0 : index
    %26 = vector.load %arg8[%c192_23, %c0_24] : memref<528x8xf32, #tpu.memory_space<vmem>>, vector<12x8xf32>
    tpu.vector_store %arg8[%c192_23, %c0_24], %25 {strides = array<i32>} : memref<528x8xf32, #tpu.memory_space<vmem>>, vector<12x8xf32>,
    %27 = vector.extract_strided_slice %24 {offsets = [0, 8], sizes = [12, 8], strides = [1, 1]} : vector<12x24xf32> to vector<12x8xf32>
    %c208 = arith.constant 208 : index
    %c0_25 = arith.constant 0 : index
    %28 = vector.load %arg8[%c208, %c0_25] : memref<528x8xf32, #tpu.memory_space<vmem>>, vector<12x8xf32>
    tpu.vector_store %arg8[%c208, %c0_25], %27 {strides = array<i32>} : memref<528x8xf32, #tpu.memory_space<vmem>>, vector<12x8xf32>,
    %29 = vector.extract_strided_slice %24 {offsets = [0, 16], sizes = [12, 8], strides = [1, 1]} : vector<12x24xf32> to vector<12x8xf32>
    %c224 = arith.constant 224 : index
    %c0_26 = arith.constant 0 : index
    %30 = vector.load %arg8[%c224, %c0_26] : memref<528x8xf32, #tpu.memory_space<vmem>>, vector<12x8xf32>
    tpu.vector_store %arg8[%c224, %c0_26], %29 {strides = array<i32>} : memref<528x8xf32, #tpu.memory_space<vmem>>, vector<12x8xf32>,
    %c0_27 = arith.constant 0 : index
    %c384 = arith.constant 384 : index
    %c0_28 = arith.constant 0 : index
    %31 = vector.load %arg1[%c0_27, %c384, %c0_28] : memref<1x704x14xf32, #tpu.memory_space<vmem>>, vector<1x128x14xf32>
    %32 = vector.shape_cast %31 : vector<1x128x14xf32> to vector<128x14xf32>
    %cst_29 = arith.constant dense<0.000000e+00> : vector<12x14xf32>
    %33 = tpu.matmul %0, %32, %cst_29 {dimension_numbers = #tpu.dot_dimension_numbers<[1], [0], [0], [1], [0, 0, 1, 1], [], []>, precision = #tpu.contract_precision<fp32>} : vector<12x128xf32>, vector<128x14xf32>, vector<12x14xf32> -> vector<12x14xf32>
    %34 = vector.broadcast %1 : vector<12x1xf32> to vector<12x14xf32>
    %35 = arith.addf %33, %34 : vector<12x14xf32>
    %cst_30 = arith.constant dense<0.000000e+00> : vector<12x24xf32>
    %36 = tpu.matmul %35, %2, %cst_30 {dimension_numbers = #tpu.dot_dimension_numbers<[1], [0], [0], [1], [0, 0, 1, 1], [], []>, precision = #tpu.contract_precision<fp32>} : vector<12x14xf32>, vector<14x24xf32>, vector<12x24xf32> -> vector<12x24xf32>
    %37 = vector.extract_strided_slice %36 {offsets = [0, 0], sizes = [12, 8], strides = [1, 1]} : vector<12x24xf32> to vector<12x8xf32>
    %c288 = arith.constant 288 : index
    %c0_31 = arith.constant 0 : index
    %38 = vector.load %arg8[%c288, %c0_31] : memref<528x8xf32, #tpu.memory_space<vmem>>, vector<12x8xf32>
    tpu.vector_store %arg8[%c288, %c0_31], %37 {strides = array<i32>} : memref<528x8xf32, #tpu.memory_space<vmem>>, vector<12x8xf32>,
    %39 = vector.extract_strided_slice %36 {offsets = [0, 8], sizes = [12, 8], strides = [1, 1]} : vector<12x24xf32> to vector<12x8xf32>
    %c304 = arith.constant 304 : index
    %c0_32 = arith.constant 0 : index
    %40 = vector.load %arg8[%c304, %c0_32] : memref<528x8xf32, #tpu.memory_space<vmem>>, vector<12x8xf32>
    tpu.vector_store %arg8[%c304, %c0_32], %39 {strides = array<i32>} : memref<528x8xf32, #tpu.memory_space<vmem>>, vector<12x8xf32>,
    %41 = vector.extract_strided_slice %36 {offsets = [0, 16], sizes = [12, 8], strides = [1, 1]} : vector<12x24xf32> to vector<12x8xf32>
    %c320 = arith.constant 320 : index
    %c0_33 = arith.constant 0 : index
    %42 = vector.load %arg8[%c320, %c0_33] : memref<528x8xf32, #tpu.memory_space<vmem>>, vector<12x8xf32>
    tpu.vector_store %arg8[%c320, %c0_33], %41 {strides = array<i32>} : memref<528x8xf32, #tpu.memory_space<vmem>>, vector<12x8xf32>,
    %c0_34 = arith.constant 0 : index
    %c576 = arith.constant 576 : index
    %c0_35 = arith.constant 0 : index
    %43 = vector.load %arg1[%c0_34, %c576, %c0_35] : memref<1x704x14xf32, #tpu.memory_space<vmem>>, vector<1x128x14xf32>
    %44 = vector.shape_cast %43 : vector<1x128x14xf32> to vector<128x14xf32>
    %cst_36 = arith.constant dense<0.000000e+00> : vector<12x14xf32>
    %45 = tpu.matmul %0, %44, %cst_36 {dimension_numbers = #tpu.dot_dimension_numbers<[1], [0], [0], [1], [0, 0, 1, 1], [], []>, precision = #tpu.contract_precision<fp32>} : vector<12x128xf32>, vector<128x14xf32>, vector<12x14xf32> -> vector<12x14xf32>
    %46 = vector.broadcast %1 : vector<12x1xf32> to vector<12x14xf32>
    %47 = arith.addf %45, %46 : vector<12x14xf32>
    %cst_37 = arith.constant dense<0.000000e+00> : vector<12x24xf32>
    %48 = tpu.matmul %47, %2, %cst_37 {dimension_numbers = #tpu.dot_dimension_numbers<[1], [0], [0], [1], [0, 0, 1, 1], [], []>, precision = #tpu.contract_precision<fp32>} : vector<12x14xf32>, vector<14x24xf32>, vector<12x24xf32> -> vector<12x24xf32>
    %49 = vector.extract_strided_slice %48 {offsets = [0, 0], sizes = [12, 8], strides = [1, 1]} : vector<12x24xf32> to vector<12x8xf32>
    %c384_38 = arith.constant 384 : index
    %c0_39 = arith.constant 0 : index
    %50 = vector.load %arg8[%c384_38, %c0_39] : memref<528x8xf32, #tpu.memory_space<vmem>>, vector<12x8xf32>
    tpu.vector_store %arg8[%c384_38, %c0_39], %49 {strides = array<i32>} : memref<528x8xf32, #tpu.memory_space<vmem>>, vector<12x8xf32>,
    %51 = vector.extract_strided_slice %48 {offsets = [0, 8], sizes = [12, 8], strides = [1, 1]} : vector<12x24xf32> to vector<12x8xf32>
    %c400 = arith.constant 400 : index
    %c0_40 = arith.constant 0 : index
    %52 = vector.load %arg8[%c400, %c0_40] : memref<528x8xf32, #tpu.memory_space<vmem>>, vector<12x8xf32>
    tpu.vector_store %arg8[%c400, %c0_40], %51 {strides = array<i32>} : memref<528x8xf32, #tpu.memory_space<vmem>>, vector<12x8xf32>,
    %53 = vector.extract_strided_slice %48 {offsets = [0, 16], sizes = [12, 8], strides = [1, 1]} : vector<12x24xf32> to vector<12x8xf32>
    %c416 = arith.constant 416 : index
    %c0_41 = arith.constant 0 : index
    %54 = vector.load %arg8[%c416, %c0_41] : memref<528x8xf32, #tpu.memory_space<vmem>>, vector<12x8xf32>
    tpu.vector_store %arg8[%c416, %c0_41], %53 {strides = array<i32>} : memref<528x8xf32, #tpu.memory_space<vmem>>, vector<12x8xf32>,
    %c0_42 = arith.constant 0 : index
    %c0_43 = arith.constant 0 : index
    %55 = vector.load %arg8[%c0_42, %c0_43] : memref<528x8xf32, #tpu.memory_space<vmem>>, vector<240x8xf32>
    %cst_44 = arith.constant dense<0.000000e+00> : vector<8x8xf32>
    %56 = tpu.matmul %3, %55, %cst_44 {dimension_numbers = #tpu.dot_dimension_numbers<[1], [0], [0], [1], [0, 0, 1, 1], [], []>, precision = #tpu.contract_precision<fp32>} : vector<8x240xf32>, vector<240x8xf32>, vector<8x8xf32> -> vector<8x8xf32>
    %c96_45 = arith.constant 96 : index
    %c0_46 = arith.constant 0 : index
    %57 = vector.load %arg8[%c96_45, %c0_46] : memref<528x8xf32, #tpu.memory_space<vmem>>, vector<240x8xf32>
    %cst_47 = arith.constant dense<0.000000e+00> : vector<8x8xf32>
    %58 = tpu.matmul %3, %57, %cst_47 {dimension_numbers = #tpu.dot_dimension_numbers<[1], [0], [0], [1], [0, 0, 1, 1], [], []>, precision = #tpu.contract_precision<fp32>} : vector<8x240xf32>, vector<240x8xf32>, vector<8x8xf32> -> vector<8x8xf32>
    %c192_48 = arith.constant 192 : index
    %c0_49 = arith.constant 0 : index
    %59 = vector.load %arg8[%c192_48, %c0_49] : memref<528x8xf32, #tpu.memory_space<vmem>>, vector<240x8xf32>
    %cst_50 = arith.constant dense<0.000000e+00> : vector<8x8xf32>
    %60 = tpu.matmul %3, %59, %cst_50 {dimension_numbers = #tpu.dot_dimension_numbers<[1], [0], [0], [1], [0, 0, 1, 1], [], []>, precision = #tpu.contract_precision<fp32>} : vector<8x240xf32>, vector<240x8xf32>, vector<8x8xf32> -> vector<8x8xf32>
    %c288_51 = arith.constant 288 : index
    %c0_52 = arith.constant 0 : index
    %61 = vector.load %arg8[%c288_51, %c0_52] : memref<528x8xf32, #tpu.memory_space<vmem>>, vector<240x8xf32>
    %cst_53 = arith.constant dense<0.000000e+00> : vector<8x8xf32>
    %62 = tpu.matmul %3, %61, %cst_53 {dimension_numbers = #tpu.dot_dimension_numbers<[1], [0], [0], [1], [0, 0, 1, 1], [], []>, precision = #tpu.contract_precision<fp32>} : vector<8x240xf32>, vector<240x8xf32>, vector<8x8xf32> -> vector<8x8xf32>
    %63 = tpu.concatenate %56, %58, %60, %62 in 1 : vector<8x8xf32>, vector<8x8xf32>, vector<8x8xf32>, vector<8x8xf32> -> vector<8x32xf32>
    %64 = vector.broadcast %4 : vector<8x1xf32> to vector<8x32xf32>
    %65 = arith.addf %63, %64 : vector<8x32xf32>
    %cst_54 = arith.constant 5.000000e-01 : f32
    %66 = vector.broadcast %cst_54 : f32 to vector<8x32xf32>
    %67 = arith.mulf %65, %66 : vector<8x32xf32>
    %68 = arith.mulf %65, %65 : vector<8x32xf32>
    %69 = arith.mulf %68, %65 : vector<8x32xf32>
    %cst_55 = arith.constant 4.471500e-02 : f32
    %70 = vector.broadcast %cst_55 : f32 to vector<8x32xf32>
    %71 = arith.mulf %69, %70 : vector<8x32xf32>
    %72 = arith.addf %65, %71 : vector<8x32xf32>
    %cst_56 = arith.constant 0.797884583 : f32
    %73 = vector.broadcast %cst_56 : f32 to vector<8x32xf32>
    %74 = arith.mulf %72, %73 : vector<8x32xf32>
    %75 = math.tanh %74 : vector<8x32xf32>
    %cst_57 = arith.constant 1.000000e+00 : f32
    %76 = vector.broadcast %cst_57 : f32 to vector<8x32xf32>
    %77 = arith.addf %75, %76 : vector<8x32xf32>
    %78 = arith.mulf %67, %77 : vector<8x32xf32>
    %c0_58 = arith.constant 0 : index
    %c0_59 = arith.constant 0 : index
    %c0_60 = arith.constant 0 : index
    %79 = vector.load %arg7[%c0_58, %c0_59, %c0_60] : memref<1x8x32xf32, #tpu.memory_space<vmem>>, vector<1x8x32xf32>
    %80 = vector.shape_cast %79 : vector<1x8x32xf32> to vector<8x32xf32>
    %81 = vector.shape_cast %78 : vector<8x32xf32> to vector<1x8x32xf32>
    tpu.vector_store %arg7[%c0_58, %c0_59, %c0_60], %81 {strides = array<i32>} : memref<1x8x32xf32, #tpu.memory_space<vmem>>, vector<1x8x32xf32>,
    return
  }
  func.func @transform_0(%arg0: i32) -> (i32, i32, i32) {
    %c0_i32 = arith.constant 0 : i32
    %c0_i32_0 = arith.constant 0 : i32
    %c0_i32_1 = arith.constant 0 : i32
    return %arg0, %c0_i32, %c0_i32_0 : i32, i32, i32
  }
  func.func @transform_1(%arg0: i32) -> (i32, i32) {
    %c0_i32 = arith.constant 0 : i32
    %c0_i32_0 = arith.constant 0 : i32
    %c0_i32_1 = arith.constant 0 : i32
    return %c0_i32, %c0_i32_0 : i32, i32
  }
  func.func @transform_2(%arg0: i32) -> (i32, i32) {
    %c0_i32 = arith.constant 0 : i32
    %c0_i32_0 = arith.constant 0 : i32
    %c0_i32_1 = arith.constant 0 : i32
    return %c0_i32, %c0_i32_0 : i32, i32
  }
  func.func @transform_3(%arg0: i32) -> (i32, i32) {
    %c0_i32 = arith.constant 0 : i32
    %c0_i32_0 = arith.constant 0 : i32
    %c0_i32_1 = arith.constant 0 : i32
    return %c0_i32, %c0_i32_0 : i32, i32
  }
  func.func @transform_4(%arg0: i32) -> (i32, i32) {
    %c0_i32 = arith.constant 0 : i32
    %c0_i32_0 = arith.constant 0 : i32
    %c0_i32_1 = arith.constant 0 : i32
    return %c0_i32, %c0_i32_0 : i32, i32
  }
  func.func @transform_5(%arg0: i32) -> (i32, i32) {
    %c0_i32 = arith.constant 0 : i32
    %c0_i32_0 = arith.constant 0 : i32
    %c0_i32_1 = arith.constant 0 : i32
    return %c0_i32, %c0_i32_0 : i32, i32
  }
  func.func @transform_6(%arg0: i32) -> (i32, i32, i32) {
    %c0_i32 = arith.constant 0 : i32
    %c0_i32_0 = arith.constant 0 : i32
    %c0_i32_1 = arith.constant 0 : i32
    return %arg0, %c0_i32, %c0_i32_0 : i32, i32, i32
  }
}

</mosaic_0001>

<bundles_post_ra>
// kernel: _lambda_.1
= control target key start
LH: loop header
LB: loop body
LE: loop exit
PB: predicated region body
PF: predicated region fallthrough
CT: control target
= control target key end

     0   :  { %v10079_v3 = vmov 0   ;;  %vm816_vm0 = vcmask 1045504   ;;  %vm809_vm1 = vcmask 113664   ;;  %vm32_vm2 = vcmask 64512   ;;  %s10081_s19 = smov 120   ;;  %s10082_s26 = smov 112   ;;  %s14496_s0 = inlined_call_operand.vmem [shape: f32[1,704,14], index: 0, kind: input, shape index: {}]   ;;  %s14497_s2 = inlined_call_operand.vmem [shape: f32[12,1], index: 2, kind: input, shape index: {}]   ;;  %s14498_s1 = inlined_call_operand.vmem [shape: f32[12,128], index: 1, kind: input, shape index: {}]   ;;  %s14499_s3 = inlined_call_operand.vmem [shape: f32[14,24], index: 3, kind: input, shape index: {}]   ;;  %s14500_s4 = inlined_call_operand.vmem [shape: f32[8,240], index: 4, kind: input, shape index: {}]   ;;  %s14501_s5 = inlined_call_operand.vmem [shape: f32[8,1], index: 5, kind: input, shape index: {}]   ;;  %s14502_s6 = inlined_call_operand.vmem [shape: f32[1,8,32], index: 6, kind: output, shape index: {}]  }
   0x1   :  { %v114_v0 = vld [vmem:[%s14496_s0 + $0x78] sm:$0xff]  ;;  %v113_v1 = vld [vmem:[%s14496_s0 + $0x70] sm:$0xff]  ;;  %v112_v2 = vld [vmem:[%s14496_s0 + $0x68] sm:$0xff]  ;;  %10076 = vset.pattern.permute.xlu0 %v10079_v3  ;;  %vm1323_vm3 = vcmask 60416   ;;  %vm5057_vm4 = vcmask 916480   ;;  %vm8508_vm5 = vcmask 130048  }
   0x2   :  { %v10130_v4 = vand.u32 4294901760, %v114_v0  ;;  %v10132_v5 = vand.u32 4294901760, %v113_v1  ;;  %v10134_v6 = vand.u32 4294901760, %v112_v2  ;;  %v111_v7 = vld [vmem:[%s14496_s0 + $0x60] sm:$0xff]  ;;  %v110_v8 = vld [vmem:[%s14496_s0 + $0x58] sm:$0xff]  ;;  %v109_v9 = vld [vmem:[%s14496_s0 + $0x50] sm:$0xff] }
   0x3   :  { %v10145_v10 = vand.u32 4294901760, %v111_v7  ;;  %v10147_v11 = vand.u32 4294901760, %v110_v8  ;;  %v10149_v12 = vand.u32 4294901760, %v109_v9  ;;  %v108_v13 = vld [vmem:[%s14496_s0 + $0x48] sm:$0xff]  ;;  %v107_v14 = vld [vmem:[%s14496_s0 + $0x40] sm:$0xff]  ;;  %v106_v19 = vld [vmem:[%s14496_s0 + $0x38] sm:$0xff] }
   0x4   :  { %9061 = vmatprep.subr.mxu0 %v10130_v4  ;;  %v10159_v15 = vsub.f32 %v114_v0, %v10130_v4  ;;  %v10162_v16 = vsub.f32 %v113_v1, %v10132_v5  ;;  %v10164_v17 = vand.u32 4294901760, %v108_v13  ;;  %v10167_v18 = vsub.f32 %v112_v2, %v10134_v6  ;;  %v105_v26 = vld [vmem:[%s14496_s0 + $0x30] sm:$0xff]  ;;  %v25_v31 = vld [vmem:[%s14497_s2] sm:$0xff]  ;;  %v104_v37 = vld [vmem:[%s14496_s0 + $0x28] sm:$0xff] }
   0x5   :  { %9062 = vmatpush3.msra.mxu0 %v10130_v4  ;;  %v10174_v20 = vsub.f32 %v111_v7, %v10145_v10  ;;  %v10177_v21 = vsub.f32 %v110_v8, %v10147_v11  ;;  %v10189_v25 = vand.u32 4294901760, %v107_v14  ;;  %v10198_v28 = vand.u32 4294901760, %v106_v19  ;;  %117 = vperm.xlu0 %10076, %v25_v31   ;;  %v103_v42 = vld [vmem:[%s14496_s0 + $0x20] sm:$0xff]  ;;  %v102_v50 = vld [vmem:[%s14496_s0 + $0x18] sm:$0xff]  ;;  %v24_v56 = vld [vmem:[%s14498_s1 + $0x8] sm:$0xf] }
   0x6   :  { %9063 = vmatprep.subr.mxu0 %v10132_v5  ;;  %v10181_v22 = vand.u32 4294901760, %v10159_v15  ;;  %v10184_v23 = vand.u32 4294901760, %v10162_v16  ;;  %v10187_v24 = vand.u32 4294901760, %v10167_v18  ;;  %v10204_v30 = vsub.f32 %v109_v9, %v10149_v12  ;;  %v23_v51 = vld [vmem:[%s14498_s1] sm:$0xff]  ;;  %v101_v61 = vld [vmem:[%s14496_s0 + $0x10] sm:$0xff]  ;;  %v100_v7 = vld [vmem:[%s14496_s0 + $0x8] sm:$0xff] }
   0x7   :  { %9064 = vmatpush3.msra.mxu0 %v10132_v5  ;;  %v10196_v27 = vand.u32 4294901760, %v10174_v20  ;;  %v10201_v29 = vand.u32 4294901760, %v10177_v21  ;;  %v10217_v35 = vsub.f32 %v108_v13, %v10164_v17  ;;  %v10220_v36 = vand.u32 4294901760, %v105_v26 }
   0x8   :  { %9065 = vmatprep.subr.mxu0 %v10134_v6  ;;  %v230_v32 = vsub.f32 %v10159_v15, %v10181_v22  ;;  %v237_v33 = vsub.f32 %v10162_v16, %v10184_v23  ;;  %v244_v34 = vsub.f32 %v10167_v18, %v10187_v24  ;;  %v10229_v41 = vand.u32 4294901760, %v10204_v30 }
   0x9   :  { %9066 = vmatpush3.msra.mxu0 %v10134_v6  ;;  %v251_v40 = vsub.f32 %v10174_v20, %v10196_v27  ;;  %v258_v43 = vsub.f32 %v10177_v21, %v10201_v29  ;;  %v10238_v44 = vand.u32 4294901760, %v10217_v35  ;;  %v10241_v45 = vsub.f32 %v107_v14, %v10189_v25 }
   0xa   :  { %9067 = vmatprep.subr.mxu0 %v10145_v10  ;;  %v231_v38 = vand.u32 4294901760, %v230_v32  ;;  %v238_v39 = vand.u32 4294901760, %v237_v33  ;;  %v245_v46 = vand.u32 4294901760, %v244_v34  ;;  %v10244_v47 = vand.u32 4294901760, %v104_v37 }
   0xb   :  { %9068 = vmatpush3.msra.mxu0 %v10145_v10  ;;  %v10247_v48 = vsub.f32 %v106_v19, %v10198_v28  ;;  %v10250_v49 = vand.u32 4294901760, %v103_v42  ;;  %v252_v52 = vand.u32 4294901760, %v251_v40  ;;  %v265_v53 = vsub.f32 %v10204_v30, %v10229_v41 }
   0xc   :  { %9069 = vmatprep.subr.mxu0 %v10147_v11  ;;  %9096 = vmatprep.subr.mxu1 %v231_v38  ;;  %v10262_v54 = vand.u32 4294901760, %v10241_v45  ;;  %v10265_v55 = vsub.f32 %v105_v26, %v10220_v36  ;;  %v259_v57 = vand.u32 4294901760, %v258_v43  ;;  %v272_v58 = vsub.f32 %v10217_v35, %v10238_v44  ;;  %v99_v26 = vld [vmem:[%s14496_s0] sm:$0xff] }
   0xd   :  { %9070 = vmatpush3.msra.mxu0 %v10147_v11  ;;  %9097 = vmatpush3.msra.mxu1 %v231_v38  ;;  %v10274_v59 = vand.u32 4294901760, %v102_v50  ;;  %v10277_v60 = vand.u32 4294901760, %v10247_v48  ;;  %v10283_v62 = vsub.f32 %v104_v37, %v10244_v47  ;;  %v10285_v63 = vand.u32 4294901760, %v23_v51 }
   0xe   :  { %9071 = vmatprep.subr.mxu0 %v10149_v12  ;;  %9098 = vmatprep.subr.mxu1 %v238_v39  ;;  %v10288_v0 = vand.u32 4294901760, %v24_v56  ;;  %v266_v1 = vand.u32 4294901760, %v265_v53  ;;  %v279_v2 = vsub.f32 %v10241_v45, %v10262_v54  ;;  %v10294_v3 = vand.u32 4294901760, %v10265_v55 }
   0xf   :  { %9072 = vmatpush3.msra.mxu0 %v10149_v12  ;;  %9099 = vmatpush3.msra.mxu1 %v238_v39  ;;  %v10300_v8 = vsub.f32 %v103_v42, %v10250_v49  ;;  %v273_v9 = vand.u32 4294901760, %v272_v58  ;;  %v10303_v13 = vand.u32 4294901760, %v101_v61  ;;  %v286_v14 = vsub.f32 %v10247_v48, %v10277_v60 }
  0x10   :  { %9073 = vmatprep.subr.mxu0 %v10164_v17  ;;  %9100 = vmatprep.subr.mxu1 %v245_v46  ;;  %v10309_v19 = vand.u32 4294901760, %v10283_v62  ;;  %v10315_v31 = vsub.f32 %v23_v51, %v10285_v63  ;;  %v10318_v32 = vsub.f32 %v102_v50, %v10274_v59  ;;  %v10321_v33 = vand.u32 4294901760, %v100_v7 }
  0x11   :  { %9074 = vmatpush3.msra.mxu0 %v10164_v17  ;;  %9101 = vmatpush3.msra.mxu1 %v245_v46  ;;  %v10324_v34 = vsub.f32 %v24_v56, %v10288_v0  ;;  %v280_v37 = vand.u32 4294901760, %v279_v2  ;;  %v293_v38 = vsub.f32 %v10265_v55, %v10294_v3  ;;  %v10330_v39 = vand.u32 4294901760, %v10300_v8 }
  0x12   :  { %9075 = vmatprep.subr.mxu0 %v10189_v25  ;;  %9102 = vmatprep.subr.mxu1 %v252_v52  ;;  %v10333_v40 = vand.u32 4294901760, %v99_v26  ;;  %v10336_v42 = vsub.f32 %v101_v61, %v10303_v13  ;;  %v287_v43 = vand.u32 4294901760, %v286_v14  ;;  %v300_v46 = vsub.f32 %v10283_v62, %v10309_v19 }
  0x13   :  { %9076 = vmatpush3.msra.mxu0 %v10189_v25  ;;  %9103 = vmatpush3.msra.mxu1 %v252_v52  ;;  %v10342_v50 = vand.u32 4294901760, %v10315_v31  ;;  %v10345_v51 = vand.u32 4294901760, %v10318_v32  ;;  %v10349_v52 = vand.u32 4294901760, %v10324_v34  ;;  %v10352_v53 = vsub.f32 %v100_v7, %v10321_v33 }
  0x14   :  { %9077 = vmatprep.subr.mxu0 %v10198_v28  ;;  %9104 = vmatprep.subr.mxu1 %v259_v57  ;;  %v294_v56 = vand.u32 4294901760, %v293_v38  ;;  %v10359_v58 = vand.u32 4294901760, %v10336_v42  ;;  %v10362_v61 = vsub.f32 %v99_v26, %v10333_v40  ;;  %vm8510_vm6 = vcmask 195584  }
  0x15   :  { %9078 = vmatpush3.msra.mxu0 %v10198_v28  ;;  %9105 = vmatpush3.msra.mxu1 %v259_v57  ;;  %14753 = vst [vmem:[#allocation3_spill] sm:$0xff] %v10345_v51  ;;  %v307_v57 = vsub.f32 %v10300_v8, %v10330_v39  ;;  %v209_v2 = vsub.f32 %v10315_v31, %v10342_v50  ;;  %v10373_v14 = vand.u32 4294901760, %v10352_v53  ;;  %vm8527_vm7 = vcmask 261120  }
  0x16   :  { %9079 = vmatprep.subr.mxu0 %v10220_v36  ;;  %9106 = vmatprep.subr.mxu1 %v266_v1  ;;  %v314_v7 = vsub.f32 %v10318_v32, %v10345_v51  ;;  %v10380_v38 = vand.u32 4294901760, %v10362_v61 }
  0x17   :  { %9080 = vmatpush3.msra.mxu0 %v10220_v36  ;;  %9107 = vmatpush3.msra.mxu1 %v266_v1  ;;  %v301_v1 = vand.u32 4294901760, %v300_v46  ;;  %v308_v26 = vand.u32 4294901760, %v307_v57 }
  0x18   :  { %9081 = vmatprep.subr.mxu0 %v10244_v47  ;;  %9108 = vmatprep.subr.mxu1 %v273_v9  ;;  %v315_v46 = vand.u32 4294901760, %v314_v7 }
  0x19   :  { %9082 = vmatpush3.msra.mxu0 %v10244_v47  ;;  %9109 = vmatpush3.msra.mxu1 %v273_v9  ;;  %v219_v9 = vsub.f32 %v10324_v34, %v10349_v52 }
  0x1a   :  { %9083 = vmatprep.subr.mxu0 %v10250_v49  ;;  %9110 = vmatprep.subr.mxu1 %v280_v37 }
  0x1b   :  { %9084 = vmatpush3.msra.mxu0 %v10250_v49  ;;  %9111 = vmatpush3.msra.mxu1 %v280_v37  ;;  %v321_v37 = vsub.f32 %v10336_v42, %v10359_v58  ;;  %v10386_v51 = vand.u32 4294901760, %v219_v9 }
  0x1c   :  { %9085 = vmatprep.subr.mxu0 %v10274_v59  ;;  %9112 = vmatprep.subr.mxu1 %v287_v43 }
  0x1d   :  { %9086 = vmatpush3.msra.mxu0 %v10274_v59  ;;  %9113 = vmatpush3.msra.mxu1 %v287_v43  ;;  %v10383_v43 = vand.u32 4294901760, %v209_v2  ;;  %v322_v57 = vand.u32 4294901760, %v321_v37  ;;  %v335_v2 = vsub.f32 %v10362_v61, %v10380_v38 }
  0x1e   :  { %9087 = vmatprep.subr.mxu0 %v10303_v13  ;;  %9114 = vmatprep.subr.mxu1 %v294_v56 }
  0x1f   :  { %9088 = vmatpush3.msra.mxu0 %v10303_v13  ;;  %9115 = vmatpush3.msra.mxu1 %v294_v56  ;;  %v328_v56 = vsub.f32 %v10352_v53, %v10373_v14  ;;  %v336_v7 = vand.u32 4294901760, %v335_v2 }
  0x20   :  { %9089 = vmatprep.subr.mxu0 %v10321_v33  ;;  %9116 = vmatprep.subr.mxu1 %v301_v1 }
  0x21   :  { %9090 = vmatpush3.msra.mxu0 %v10321_v33  ;;  %9117 = vmatpush3.msra.mxu1 %v301_v1  ;;  %v329_v1 = vand.u32 4294901760, %v328_v56 }
  0x22   :  { %9091 = vmatprep.subr.mxu0 %v10333_v40  ;;  %9118 = vmatprep.subr.mxu1 %v308_v26 }
  0x23   :  { %9092 = vmatpush3.msra.mxu0 %v10333_v40  ;;  %9119 = vmatpush3.msra.mxu1 %v308_v26  ;;  %v1356_v26 = vld [vmem:[%s14496_s0 + $0x128] sm:$0xff] }
  0x24   :  { %9093 = vmatprep.mubr.f32.mxu0 %v10383_v43  ;;  %9120 = vmatprep.subr.mxu1 %v315_v46  ;;  %v10611_v2 = vand.u32 4294901760, %v1356_v26 }
  0x25   :  { %9131 = vmatprep.subr.mxu0 %v10159_v15  ;;  %9094 = vmatmul.mubr.f32.vlgmr.msra.gmra.mxu0 %v10386_v51 }
  0x26   :  { %9121 = vmatpush3.msra.mxu1 %v315_v46  ;;  %9132 = vmatpush3.msra.mxu0 %v10159_v15  ;;  %v1355_v46 = vld [vmem:[%s14496_s0 + $0x120] sm:$0xff] }
  0x27   :  { %9122 = vmatprep.subr.mxu1 %v322_v57  ;;  %9133 = vmatprep.subr.mxu0 %v10162_v16 }
  0x28   :  { %9123 = vmatpush3.msra.mxu1 %v322_v57  ;;  %9134 = vmatpush3.msra.mxu0 %v10162_v16 }
  0x29   :  { %9124 = vmatprep.subr.mxu1 %v329_v1  ;;  %9135 = vmatprep.subr.mxu0 %v10167_v18 }
  0x2a   :  { %9125 = vmatpush3.msra.mxu1 %v329_v1  ;;  %9136 = vmatpush3.msra.mxu0 %v10167_v18 }
  0x2b   :  { %9126 = vmatprep.subr.mxu1 %v336_v7  ;;  %9137 = vmatprep.subr.mxu0 %v10174_v20 }
  0x2c   :  { %9127 = vmatpush3.msra.mxu1 %v336_v7  ;;  %9128 = vmatprep.mubr.f32.mxu1 %v10285_v63 }
  0x2d   :  { %9138 = vmatpush3.msra.mxu0 %v10174_v20  ;;  %9129 = vmatmul.mubr.f32.vlgmr.msra.gmra.mxu1 %v10288_v0 }
  0x2e   :  { %9139 = vmatprep.subr.mxu0 %v10177_v21  ;;  %9166 = vmatprep.subr.mxu1 %v10130_v4 }
  0x2f   :  { %9140 = vmatpush3.msra.mxu0 %v10177_v21  ;;  %9167 = vmatpush3.msra.mxu1 %v10130_v4 }
  0x30   :  { %9141 = vmatprep.subr.mxu0 %v10204_v30  ;;  %9168 = vmatprep.subr.mxu1 %v10132_v5 }
  0x31   :  { %9142 = vmatpush3.msra.mxu0 %v10204_v30  ;;  %9169 = vmatpush3.msra.mxu1 %v10132_v5 }
  0x32   :  { %9143 = vmatprep.subr.mxu0 %v10217_v35  ;;  %9170 = vmatprep.subr.mxu1 %v10134_v6 }
  0x33   :  { %9144 = vmatpush3.msra.mxu0 %v10217_v35  ;;  %9171 = vmatpush3.msra.mxu1 %v10134_v6 }
  0x34   :  { %9145 = vmatprep.subr.mxu0 %v10241_v45  ;;  %9172 = vmatprep.subr.mxu1 %v10145_v10 }
  0x35   :  { %9146 = vmatpush3.msra.mxu0 %v10241_v45  ;;  %9173 = vmatpush3.msra.mxu1 %v10145_v10 }
  0x36   :  { %9147 = vmatprep.subr.mxu0 %v10247_v48  ;;  %9174 = vmatprep.subr.mxu1 %v10147_v11 }
  0x37   :  { %9148 = vmatpush3.msra.mxu0 %v10247_v48  ;;  %9175 = vmatpush3.msra.mxu1 %v10147_v11 }
  0x38   :  { %9149 = vmatprep.subr.mxu0 %v10265_v55  ;;  %9176 = vmatprep.subr.mxu1 %v10149_v12 }
  0x39   :  { %9150 = vmatpush3.msra.mxu0 %v10265_v55  ;;  %9177 = vmatpush3.msra.mxu1 %v10149_v12 }
  0x3a   :  { %9151 = vmatprep.subr.mxu0 %v10283_v62  ;;  %9178 = vmatprep.subr.mxu1 %v10164_v17 }
  0x3b   :  { %9152 = vmatpush3.msra.mxu0 %v10283_v62  ;;  %9179 = vmatpush3.msra.mxu1 %v10164_v17 }
  0x3c   :  { %9153 = vmatprep.subr.mxu0 %v10300_v8  ;;  %9180 = vmatprep.subr.mxu1 %v10189_v25 }
  0x3d   :  { %9154 = vmatpush3.msra.mxu0 %v10300_v8  ;;  %9181 = vmatpush3.msra.mxu1 %v10189_v25 }
  0x3e   :  { %9155 = vmatprep.subr.mxu0 %v10318_v32  ;;  %9182 = vmatprep.subr.mxu1 %v10198_v28 }
  0x3f   :  { %9156 = vmatpush3.msra.mxu0 %v10318_v32  ;;  %9183 = vmatpush3.msra.mxu1 %v10198_v28 }
  0x40   :  { %9157 = vmatprep.subr.mxu0 %v10336_v42  ;;  %9184 = vmatprep.subr.mxu1 %v10220_v36 }
  0x41   :  { %9158 = vmatpush3.msra.mxu0 %v10336_v42  ;;  %9185 = vmatpush3.msra.mxu1 %v10220_v36 }
  0x42   :  { %9159 = vmatprep.subr.mxu0 %v10352_v53  ;;  %9186 = vmatprep.subr.mxu1 %v10244_v47 }
  0x43   :  { %9160 = vmatpush3.msra.mxu0 %v10352_v53  ;;  %9187 = vmatpush3.msra.mxu1 %v10244_v47 }
  0x44   :  { %9161 = vmatprep.subr.mxu0 %v10362_v61  ;;  %9188 = vmatprep.subr.mxu1 %v10250_v49 }
  0x45   :  { %9162 = vmatpush3.msra.mxu0 %v10362_v61  ;;  %9163 = vmatprep.mubr.f32.mxu0 %v10315_v31 }
  0x46   :  { %9189 = vmatpush3.msra.mxu1 %v10250_v49  ;;  %9164 = vmatmul.mubr.f32.vlgmr.msra.gmra.mxu0 %v10324_v34 }
  0x47   :  { %9190 = vmatprep.subr.mxu1 %v10274_v59  ;;  %9201 = vmatprep.subr.mxu0 %v10181_v22 }
  0x48   :  { %9191 = vmatpush3.msra.mxu1 %v10274_v59  ;;  %9202 = vmatpush3.msra.mxu0 %v10181_v22 }
  0x49   :  { %9192 = vmatprep.subr.mxu1 %v10303_v13  ;;  %9203 = vmatprep.subr.mxu0 %v10184_v23 }
  0x4a   :  { %9193 = vmatpush3.msra.mxu1 %v10303_v13  ;;  %9204 = vmatpush3.msra.mxu0 %v10184_v23 }
  0x4b   :  { %9194 = vmatprep.subr.mxu1 %v10321_v33  ;;  %9205 = vmatprep.subr.mxu0 %v10187_v24 }
  0x4c   :  { %9195 = vmatpush3.msra.mxu1 %v10321_v33  ;;  %9206 = vmatpush3.msra.mxu0 %v10187_v24 }
  0x4d   :  { %9196 = vmatprep.subr.mxu1 %v10333_v40  ;;  %9207 = vmatprep.subr.mxu0 %v10196_v27 }
  0x4e   :  { %9197 = vmatpush3.msra.mxu1 %v10333_v40  ;;  %9198 = vmatprep.mubr.f32.mxu1 %v10342_v50 }
  0x4f   :  { %9208 = vmatpush3.msra.mxu0 %v10196_v27  ;;  %9199 = vmatmul.mubr.f32.vlgmr.msra.gmra.mxu1 %v10349_v52 }
  0x50   :  { %9209 = vmatprep.subr.mxu0 %v10201_v29  ;;  %9236 = vmatprep.subr.mxu1 %v10130_v4 }
  0x51   :  { %9210 = vmatpush3.msra.mxu0 %v10201_v29  ;;  %9237 = vmatpush3.msra.mxu1 %v10130_v4  ;;  %v14754_v4 = vld [vmem:[#allocation3_spill] sm:$0xff] }
  0x52   :  { %9211 = vmatprep.subr.mxu0 %v10229_v41  ;;  %9238 = vmatprep.subr.mxu1 %v10132_v5 }
  0x53   :  { %9212 = vmatpush3.msra.mxu0 %v10229_v41  ;;  %9239 = vmatpush3.msra.mxu1 %v10132_v5  ;;  %v26_v5 = vld [vmem:[%s14497_s2 + $0x8] sm:$0xf]  ;;  %s10085_s2 = smov 24  }
  0x54   :  { %9213 = vmatprep.subr.mxu0 %v10238_v44  ;;  %9240 = vmatprep.subr.mxu1 %v10134_v6 }
  0x55   :  { %9214 = vmatpush3.msra.mxu0 %v10238_v44  ;;  %9241 = vmatpush3.msra.mxu1 %v10134_v6  ;;  %v28_v6 = vld [vmem:[%s14499_s3 + $0x8] sm:$0x3f] }
  0x56   :  { %9215 = vmatprep.subr.mxu0 %v10262_v54  ;;  %9242 = vmatprep.subr.mxu1 %v10145_v10 }
  0x57   :  { %9216 = vmatpush3.msra.mxu0 %v10262_v54  ;;  %9243 = vmatpush3.msra.mxu1 %v10145_v10  ;;  %v818_v10 = vsel %vm816_vm0, %v28_v6, 0 }
  0x58   :  { %9217 = vmatprep.subr.mxu0 %v10277_v60  ;;  %9244 = vmatprep.subr.mxu1 %v10147_v11 }
  0x59   :  { %9218 = vmatpush3.msra.mxu0 %v10277_v60  ;;  %9245 = vmatpush3.msra.mxu1 %v10147_v11  ;;  %v10540_v11 = vand.u32 4294901760, %v818_v10  ;;  %v1358_v60 = vld [vmem:[%s14496_s0 + $0x138] sm:$0xff] }
  0x5a   :  { %9219 = vmatprep.subr.mxu0 %v10294_v3  ;;  %9246 = vmatprep.subr.mxu1 %v10149_v12  ;;  %v10586_v32 = vand.u32 4294901760, %v1358_v60 }
  0x5b   :  { %9220 = vmatpush3.msra.mxu0 %v10294_v3  ;;  %9247 = vmatpush3.msra.mxu1 %v10149_v12  ;;  %14755 = vst [vmem:[#allocation3_spill] sm:$0xff] %v10540_v11  ;;  %v27_v12 = vld [vmem:[%s14499_s3] sm:$0xff]  ;;  %v10546_v15 = vsub.f32 %v818_v10, %v10540_v11  ;;  %v10625_v10 = vand.u32 4294901760, %v1355_v46 }
  0x5c   :  { %9221 = vmatprep.subr.mxu0 %v10309_v19  ;;  %9248 = vmatprep.subr.mxu1 %v10164_v17  ;;  %v10548_v16 = vand.u32 4294901760, %v27_v12  ;;  %v10593_v9 = vsub.f32 %v1358_v60, %v10586_v32 }
  0x5d   :  { %9222 = vmatpush3.msra.mxu0 %v10309_v19  ;;  %9249 = vmatpush3.msra.mxu1 %v10164_v17  ;;  %14756 = vst [vmem:[#allocation4_spill] sm:$0xff] %v10546_v15  ;;  %v10553_v17 = vand.u32 4294901760, %v10546_v15 }
  0x5e   :  { %9223 = vmatprep.subr.mxu0 %v10330_v39  ;;  %9250 = vmatprep.subr.mxu1 %v10189_v25  ;;  %14757 = vst [vmem:[#allocation5_spill] sm:$0xff] %v10548_v16  ;;  %v10556_v18 = vsub.f32 %v27_v12, %v10548_v16  ;;  %v10614_v1 = vand.u32 4294901760, %v10593_v9  ;;  %v1353_v12 = vld [vmem:[%s14496_s0 + $0x110] sm:$0xff] }
  0x5f   :  { %9224 = vmatpush3.msra.mxu0 %v10330_v39  ;;  %9251 = vmatpush3.msra.mxu1 %v10189_v25  ;;  %14758 = vst [vmem:[#allocation6_spill] sm:$0xff] %v10553_v17  ;;  %v939_v20 = vsub.f32 %v10546_v15, %v10553_v17  ;;  %v1357_v39 = vld [vmem:[%s14496_s0 + $0x130] sm:$0xff] }
  0x60   :  { %9225 = vmatprep.subr.mxu0 %v14754_v4  ;;  %9252 = vmatprep.subr.mxu1 %v10198_v28  ;;  %14759 = vst [vmem:[#allocation7_spill] sm:$0xff] %v10556_v18  ;;  %v10563_v21 = vand.u32 4294901760, %v10556_v18 }
  0x61   :  { %9226 = vmatpush3.msra.mxu0 %v14754_v4  ;;  %9253 = vmatpush3.msra.mxu1 %v10198_v28  ;;  %v10566_v22 = vand.u32 4294901760, %v939_v20  ;;  %v1354_v4 = vld [vmem:[%s14496_s0 + $0x118] sm:$0xff] }
  0x62   :  { %9227 = vmatprep.subr.mxu0 %v10359_v58  ;;  %9254 = vmatprep.subr.mxu1 %v10220_v36  ;;  %14760 = vst [vmem:[#allocation8_spill] sm:$0xff] %v10563_v21  ;;  %v946_v23 = vsub.f32 %v10556_v18, %v10563_v21 }
  0x63   :  { %9228 = vmatpush3.msra.mxu0 %v10359_v58  ;;  %9255 = vmatpush3.msra.mxu1 %v10220_v36  ;;  %14761 = vst [vmem:[#allocation9_spill] sm:$0xff] %v10566_v22 }
  0x64   :  { %9229 = vmatprep.subr.mxu0 %v10373_v14  ;;  %9256 = vmatprep.subr.mxu1 %v10244_v47  ;;  %v10571_v24 = vand.u32 4294901760, %v946_v23  ;;  %v10633_v23 = vsub.f32 %v1356_v26, %v10611_v2  ;;  %v1348_v26 = vld [vmem:[%s14496_s0 + $0xe8] sm:$0xff] }
  0x65   :  { %9230 = vmatpush3.msra.mxu0 %v10373_v14  ;;  %9257 = vmatpush3.msra.mxu1 %v10244_v47  ;;  %v10595_v14 = vand.u32 4294901760, %v1357_v39 }
  0x66   :  { %9231 = vmatprep.subr.mxu0 %v10380_v38  ;;  %9258 = vmatprep.subr.mxu1 %v10250_v49  ;;  %14762 = vst [vmem:[#allocation10_spill] sm:$0xff] %v10571_v24 }
  0x67   :  { %9232 = vmatpush3.msra.mxu0 %v10380_v38  ;;  %9233 = vmatprep.mubr.f32.mxu0 %v10285_v63  ;;  %v10617_v7 = vsub.f32 %v1357_v39, %v10595_v14  ;;  %v1349_v39 = vld [vmem:[%s14496_s0 + $0xf0] sm:$0xff] }
  0x68   :  { %9259 = vmatpush3.msra.mxu1 %v10250_v49  ;;  %9234 = vmatmul.mubr.f32.vlgmr.msra.gmra.mxu0 %v10288_v0 }
  0x69   :  { %9260 = vmatprep.subr.mxu1 %v10274_v59  ;;  %9268 = vmatprep.mubr.f32.mxu1 %v10285_v63 }
  0x6a   :  { %9261 = vmatpush3.msra.mxu1 %v10274_v59  ;;  %122 = vperm.xlu0 %10076, %v26_v5  }
  0x6b   :  { %9262 = vmatprep.subr.mxu1 %v10303_v13  ;;  %9271 = vmatprep.subr.mxu0 %v10540_v11 }
  0x6c   :  { %9263 = vmatpush3.msra.mxu1 %v10303_v13  ;;  %9272 = vmatpush3.msra.mxu0 %v10540_v11 }
  0x6d   :  { %9264 = vmatprep.subr.mxu1 %v10321_v33  ;;  %9273 = vmatprep.subr.mxu0 %v10548_v16 }
  0x6e   :  { %9265 = vmatpush3.msra.mxu1 %v10321_v33  ;;  %9274 = vmatpush3.msra.mxu0 %v10548_v16 }
  0x6f   :  { %9266 = vmatprep.subr.mxu1 %v10333_v40  ;;  %9285 = vmatprep.subr.mxu0 %v10546_v15 }
  0x70   :  { %9267 = vmatpush3.msra.mxu1 %v10333_v40 }
  0x71   :  { %9269 = vmatmul.mubr.f32.vlgmr.msra.gmra.mxu1 %v10288_v0  ;;  %9278 = vmatprep.subr.mxu1 %v10566_v22 }
  0x72   :  { %9279 = vmatpush3.msra.mxu1 %v10566_v22 }
  0x73   :  { %9280 = vmatprep.subr.mxu1 %v10571_v24 }
  0x74   :  { %9281 = vmatpush3.msra.mxu1 %v10571_v24 }
  0x75   :  { %9292 = vmatprep.subr.mxu1 %v10540_v11 }
  0x80   :  { %v10577_v25 = vpop.permute.xlu0 %117 }
  0x81   :  { %14763 = vst [vmem:[#allocation11_spill] sm:$0xff] %v10577_v25 }
  0xe5   :  { %v9095_v27 = vpop.f32.mrf.mxu0  ;;  %v10579_v28 = vpop.permute.xlu0 %122 }
  0xe6   :  { %14764 = vst [vmem:[#allocation12_spill] sm:$0xff] %v10579_v28  ;;  %v223_v36 = vadd.f32 %v9095_v27, %v10579_v28  ;;  %v10635_v27 = vand.u32 4294901760, %v1354_v4 }
  0xe7   :  { %v212_v29 = vpop.f32.mrf.mxu0 }
  0xe8   :  { %v213_v44 = vadd.f32 %v212_v29, %v10577_v25  ;;  %v1352_v29 = vld [vmem:[%s14496_s0 + $0x108] sm:$0xff] }
  0xed   :  { %v9130_v30 = vpop.f32.mrf.mxu1 }
  0xee   :  { %v380_v48 = vadd.f32 %v9130_v30, %v223_v36  ;;  %v10645_v36 = vand.u32 4294901760, %v10617_v7 }
  0xef   :  { %v373_v41 = vpop.f32.mrf.mxu1 }
  0xf0   :  { %v374_v54 = vadd.f32 %v373_v41, %v213_v44  ;;  %v10649_v44 = vsub.f32 %v1355_v46, %v10625_v10 }
 0x106   :  { %v9165_v35 = vpop.f32.mrf.mxu0 }
 0x107   :  { %v491_v55 = vadd.f32 %v9165_v35, %v380_v48  ;;  %v1464_v35 = vsub.f32 %v10593_v9, %v10614_v1  ;;  %v10657_v48 = vand.u32 4294901760, %v1352_v29 }
 0x108   :  { %v483_v45 = vpop.f32.mrf.mxu0 }
 0x109   :  { %v484_v62 = vadd.f32 %v483_v45, %v374_v54  ;;  %v10651_v45 = vand.u32 4294901760, %v1353_v12  ;;  %v10662_v54 = vand.u32 4294901760, %v10633_v23  ;;  %v1465_v60 = vand.u32 4294901760, %v1464_v35  ;;  %v1346_v35 = vld [vmem:[%s14496_s0 + $0xd8] sm:$0xff] }
 0x10f   :  { %v9200_v47 = vpop.f32.mrf.mxu1 }
 0x110   :  { %v588_v3 = vadd.f32 %v9200_v47, %v491_v55  ;;  %v1351_v47 = vld [vmem:[%s14496_s0 + $0x100] sm:$0xff]  ;;  %v10665_v55 = vsub.f32 %v1354_v4, %v10635_v27  ;;  %v10710_v4 = vand.u32 4294901760, %v1349_v39 }
 0x111   :  { %v579_v59 = vpop.f32.mrf.mxu1 }
 0x112   :  { %v580_v13 = vadd.f32 %v579_v59, %v484_v62  ;;  %v1471_v62 = vsub.f32 %v10617_v7, %v10645_v36 }
 0x128   :  { %v9235_v49 = vpop.f32.mrf.mxu0 }
 0x129   :  { %v713_v19 = vadd.f32 %v9235_v49, %v588_v3  ;;  %v10670_v3 = vand.u32 4294901760, %v1351_v47 }
 0x12a   :  { %v706_v8 = vpop.f32.mrf.mxu0 }
 0x12b   :  { %v707_v40 = vadd.f32 %v706_v8, %v580_v13  ;;  %v1350_v8 = vld [vmem:[%s14496_s0 + $0xf8] sm:$0xff]  ;;  %v10677_v13 = vand.u32 4294901760, %v10649_v44 }
 0x131   :  { %v9270_v33 = vpop.f32.mrf.mxu1 }
 0x132   :  { %v806_v42 = vadd.f32 %v9270_v33, %v713_v19  ;;  %v10680_v19 = vsub.f32 %v1353_v12, %v10651_v45  ;;  %v10684_v33 = vsub.f32 %v1352_v29, %v10657_v48 }
 0x133   :  { %v799_v53 = vpop.f32.mrf.mxu1 }
 0x134   :  { %v814_v58 = vsel %vm809_vm1, %v806_v42, 0  ;;  %v800_v61 = vadd.f32 %v799_v53, %v707_v40  ;;  %v1478_v40 = vsub.f32 %v10633_v23, %v10662_v54  ;;  %v10693_v42 = vand.u32 4294901760, %v10665_v55 }
 0x135   :  { %v10600_v37 = vand.u32 4294901760, %v814_v58  ;;  %v10695_v53 = vand.u32 4294901760, %v1350_v8  ;;  %v10708_v46 = vand.u32 4294901760, %v10680_v19 }
 0x136   :  { %v811_v38 = vsel %vm809_vm1, %v800_v61, 0  ;;  %v10699_v61 = vsub.f32 %v1351_v47, %v10670_v3  ;;  %v1479_v12 = vand.u32 4294901760, %v1478_v40  ;;  %v10740_v47 = vsub.f32 %v1349_v39, %v10710_v4 }
 0x137   :  { %v10607_v56 = vsub.f32 %v814_v58, %v10600_v37  ;;  %v10609_v57 = vand.u32 4294901760, %v811_v38  ;;  %v1472_v58 = vand.u32 4294901760, %v1471_v62  ;;  %v10725_v29 = vsub.f32 %v1350_v8, %v10695_v53 }
 0x138   :  { %v10758_v40 = vand.u32 4294901760, %v1346_v35 }
 0x139   :  { %v888_v5 = vsub.f32 %v811_v38, %v10609_v57  ;;  %9282 = vmatprep.mubr.f32.mxu1 %v10609_v57  ;;  %v899_v6 = vand.u32 4294901760, %v10607_v56  ;;  %v1485_v38 = vsub.f32 %v10649_v44, %v10677_v13  ;;  %v10753_v8 = vand.u32 4294901760, %v10725_v29 }
 0x13a   :  { %9283 = vmatmul.mubr.f32.vlgmr.msra.gmra.mxu1 %v10600_v37 }
 0x13b   :  { %9293 = vmatpush3.msra.mxu1 %v10540_v11  ;;  %v889_v20 = vand.u32 4294901760, %v888_v5  ;;  %v900_v30 = vsub.f32 %v10607_v56, %v899_v6 }
 0x13c   :  { %9294 = vmatprep.subr.mxu1 %v10548_v16 }
 0x13d   :  { %9295 = vmatpush3.msra.mxu1 %v10548_v16  ;;  %9296 = vmatprep.mubr.f32.mxu1 %v889_v20  ;;  %v890_v41 = vsub.f32 %v888_v5, %v889_v20  ;;  %v901_v59 = vand.u32 4294901760, %v900_v30  ;;  %v1492_v20 = vsub.f32 %v10665_v55, %v10693_v42  ;;  %v10727_v30 = vand.u32 4294901760, %v1348_v26 }
 0x13e   :  { %9297 = vmatmul.mubr.f32.vlgmr.msra.gmra.mxu1 %v899_v6  ;;  %9306 = vmatprep.subr.mxu1 %v10540_v11  ;;  %v1347_v6 = vld [vmem:[%s14496_s0 + $0xe0] sm:$0xff] }
 0x13f   :  { %9307 = vmatpush3.msra.mxu1 %v10540_v11  ;;  %9310 = vmatprep.mubr.f32.mxu1 %v10609_v57  ;;  %v891_v49 = vand.u32 4294901760, %v890_v41  ;;  %v1499_v41 = vsub.f32 %v10680_v19, %v10708_v46  ;;  %v1493_v62 = vand.u32 4294901760, %v1492_v20  ;;  %v10756_v39 = vsub.f32 %v1348_v26, %v10727_v30 }
 0x140   :  { %9308 = vmatprep.subr.mxu1 %v10548_v16  ;;  %v10768_v20 = vand.u32 4294901760, %v10740_v47 }
 0x141   :  { %9275 = vmatprep.mubr.f32.mxu0 %v891_v49  ;;  %9309 = vmatpush3.msra.mxu1 %v10548_v16  ;;  %v10742_v49 = vand.u32 4294901760, %v1347_v6 }
 0x142   :  { %9276 = vmatmul.mubr.f32.vlgmr.msra.gmra.mxu0 %v901_v59  ;;  %9311 = vmatmul.mubr.f32.vlgmr.msra.gmra.mxu1 %v10600_v37 }
 0x143   :  { %9286 = vmatpush3.msra.mxu0 %v10546_v15  ;;  %9289 = vmatprep.mubr.f32.mxu0 %v888_v5  ;;  %v10715_v5 = vand.u32 4294901760, %v10684_v33  ;;  %v10771_v26 = vsub.f32 %v1347_v6, %v10742_v49  ;;  %v10786_v6 = vsub.f32 %v1346_v35, %v10758_v40 }
 0x144   :  { %9287 = vmatprep.subr.mxu0 %v10556_v18  ;;  %9348 = vmatprep.subr.mxu1 %v1465_v60 }
 0x145   :  { %9288 = vmatpush3.msra.mxu0 %v10556_v18  ;;  %9349 = vmatpush3.msra.mxu1 %v1465_v60  ;;  %v1506_v59 = vsub.f32 %v10684_v33, %v10715_v5  ;;  %v1345_v60 = vld [vmem:[%s14496_s0 + $0xd0] sm:$0xff]  ;;  %v10783_v18 = vand.u32 4294901760, %v10756_v39  ;;  %v10795_v28 = vand.u32 4294901760, %v10771_v26  ;;  %v10807_v16 = vand.u32 4294901760, %v10786_v6 }
 0x146   :  { %9299 = vmatprep.subr.mxu0 %v10553_v17  ;;  %9290 = vmatmul.mubr.f32.vlgmr.msra.gmra.mxu0 %v10607_v56  ;;  %v10731_v56 = vand.u32 4294901760, %v10699_v61 }
 0x147   :  { %9300 = vmatpush3.msra.mxu0 %v10553_v17  ;;  %9303 = vmatprep.mubr.f32.mxu0 %v10609_v57  ;;  %v1486_v57 = vand.u32 4294901760, %v1485_v38  ;;  %v1500_v38 = vand.u32 4294901760, %v1499_v41  ;;  %v1343_v17 = vld [vmem:[%s14496_s0 + $0xc0] sm:$0xff]  ;;  %v1520_v41 = vsub.f32 %v10725_v29, %v10753_v8 }
 0x148   :  { %9301 = vmatprep.subr.mxu0 %v10563_v21  ;;  %9350 = vmatprep.subr.mxu1 %v1472_v58  ;;  %v10800_v35 = vand.u32 4294901760, %v1343_v17 }
 0x149   :  { %9302 = vmatpush3.msra.mxu0 %v10563_v21  ;;  %9351 = vmatpush3.msra.mxu1 %v1472_v58  ;;  %v1344_v58 = vld [vmem:[%s14496_s0 + $0xc8] sm:$0xff]  ;;  %v10773_v21 = vand.u32 4294901760, %v1345_v60 }
 0x14a   :  { %9313 = vmatprep.subr.mxu0 %v10586_v32  ;;  %9304 = vmatmul.mubr.f32.vlgmr.msra.gmra.mxu0 %v10600_v37  ;;  %v1513_v37 = vsub.f32 %v10699_v61, %v10731_v56  ;;  %v10788_v25 = vand.u32 4294901760, %v1344_v58  ;;  %v10820_v11 = vsub.f32 %v1343_v17, %v10800_v35 }
 0x14b   :  { %9314 = vmatpush3.msra.mxu0 %v10586_v32  ;;  %9352 = vmatprep.subr.mxu1 %v1479_v12  ;;  %v10798_v15 = vsub.f32 %v1345_v60, %v10773_v21 }
 0x14c   :  { %9315 = vmatprep.subr.mxu0 %v10595_v14  ;;  %9353 = vmatpush3.msra.mxu1 %v1479_v12  ;;  %v1507_v12 = vand.u32 4294901760, %v1506_v59  ;;  %v1527_v59 = vsub.f32 %v10740_v47, %v10768_v20  ;;  %v10810_v24 = vsub.f32 %v1344_v58, %v10788_v25  ;;  %v10834_v22 = vand.u32 4294901760, %v10820_v11 }
 0x14d   :  { %9316 = vmatpush3.msra.mxu0 %v10595_v14  ;;  %9354 = vmatprep.subr.mxu1 %v1486_v57 }
 0x14e   :  { %9317 = vmatprep.subr.mxu0 %v10611_v2  ;;  %9355 = vmatpush3.msra.mxu1 %v1486_v57  ;;  %v1514_v57 = vand.u32 4294901760, %v1513_v37  ;;  %v1534_v37 = vsub.f32 %v10756_v39, %v10783_v18  ;;  %v1528_v60 = vand.u32 4294901760, %v1527_v59  ;;  %v10827_v59 = vand.u32 4294901760, %v10810_v24 }
 0x14f   :  { %9318 = vmatpush3.msra.mxu0 %v10611_v2  ;;  %9356 = vmatprep.subr.mxu1 %v1493_v62 }
 0x150   :  { %9319 = vmatprep.subr.mxu0 %v10625_v10  ;;  %9357 = vmatpush3.msra.mxu1 %v1493_v62  ;;  %v1521_v62 = vand.u32 4294901760, %v1520_v41  ;;  %v10817_v41 = vand.u32 4294901760, %v10798_v15  ;;  %v1535_v58 = vand.u32 4294901760, %v1534_v37 }
 0x151   :  { %9320 = vmatpush3.msra.mxu0 %v10625_v10  ;;  %9358 = vmatprep.subr.mxu1 %v1500_v38 }
 0x152   :  { %9321 = vmatprep.subr.mxu0 %v10635_v27  ;;  %9359 = vmatpush3.msra.mxu1 %v1500_v38  ;;  %v1541_v38 = vsub.f32 %v10771_v26, %v10795_v28  ;;  %14765 = vst [vmem:[#allocation13_spill] sm:$0xff] %v10817_v41 }
 0x153   :  { %9322 = vmatpush3.msra.mxu0 %v10635_v27  ;;  %9360 = vmatprep.subr.mxu1 %v1507_v12 }
 0x154   :  { %9323 = vmatprep.subr.mxu0 %v10651_v45  ;;  %9361 = vmatpush3.msra.mxu1 %v1507_v12  ;;  %v1548_v12 = vsub.f32 %v10786_v6, %v10807_v16  ;;  %v1542_v17 = vand.u32 4294901760, %v1541_v38 }
 0x155   :  { %9324 = vmatpush3.msra.mxu0 %v10651_v45  ;;  %9362 = vmatprep.subr.mxu1 %v1514_v57 }
 0x156   :  { %9325 = vmatprep.subr.mxu0 %v10657_v48  ;;  %9363 = vmatpush3.msra.mxu1 %v1514_v57  ;;  %v1555_v57 = vsub.f32 %v10798_v15, %v10817_v41  ;;  %v1549_v37 = vand.u32 4294901760, %v1548_v12  ;;  %v1569_v41 = vsub.f32 %v10820_v11, %v10834_v22 }
 0x157   :  { %9326 = vmatpush3.msra.mxu0 %v10657_v48  ;;  %9364 = vmatprep.subr.mxu1 %v1521_v62 }
 0x158   :  { %9327 = vmatprep.subr.mxu0 %v10670_v3  ;;  %9365 = vmatpush3.msra.mxu1 %v1521_v62  ;;  %v1562_v62 = vsub.f32 %v10810_v24, %v10827_v59  ;;  %v1556_v38 = vand.u32 4294901760, %v1555_v57 }
 0x159   :  { %9328 = vmatpush3.msra.mxu0 %v10670_v3  ;;  %9366 = vmatprep.subr.mxu1 %v1528_v60 }
 0x15a   :  { %9329 = vmatprep.subr.mxu0 %v10695_v53  ;;  %9367 = vmatpush3.msra.mxu1 %v1528_v60  ;;  %v1563_v60 = vand.u32 4294901760, %v1562_v62 }
 0x15b   :  { %9330 = vmatpush3.msra.mxu0 %v10695_v53  ;;  %9368 = vmatprep.subr.mxu1 %v1535_v58 }
 0x15c   :  { %9331 = vmatprep.subr.mxu0 %v10710_v4  ;;  %9369 = vmatpush3.msra.mxu1 %v1535_v58  ;;  %v1570_v58 = vand.u32 4294901760, %v1569_v41 }
 0x15d   :  { %9332 = vmatpush3.msra.mxu0 %v10710_v4  ;;  %9370 = vmatprep.subr.mxu1 %v1542_v17 }
 0x15e   :  { %9333 = vmatprep.subr.mxu0 %v10727_v30  ;;  %9371 = vmatpush3.msra.mxu1 %v1542_v17 }
 0x15f   :  { %9334 = vmatpush3.msra.mxu0 %v10727_v30  ;;  %9372 = vmatprep.subr.mxu1 %v1549_v37 }
 0x160   :  { %9335 = vmatprep.subr.mxu0 %v10742_v49  ;;  %9373 = vmatpush3.msra.mxu1 %v1549_v37 }
 0x161   :  { %9336 = vmatpush3.msra.mxu0 %v10742_v49  ;;  %9374 = vmatprep.subr.mxu1 %v1556_v38 }
 0x162   :  { %9337 = vmatprep.subr.mxu0 %v10758_v40  ;;  %9375 = vmatpush3.msra.mxu1 %v1556_v38  ;;  %v2585_v38 = vld [vmem:[%s14496_s0 + $0x1f0] sm:$0xff] }
 0x163   :  { %9338 = vmatpush3.msra.mxu0 %v10758_v40  ;;  %9376 = vmatprep.subr.mxu1 %v1563_v60 }
 0x164   :  { %9339 = vmatprep.subr.mxu0 %v10773_v21  ;;  %9377 = vmatpush3.msra.mxu1 %v1563_v60 }
 0x165   :  { %9340 = vmatpush3.msra.mxu0 %v10773_v21  ;;  %9378 = vmatprep.subr.mxu1 %v1570_v58 }
 0x166   :  { %9341 = vmatprep.subr.mxu0 %v10788_v25  ;;  %9345 = vmatprep.mubr.f32.mxu0 %v10383_v43 }
 0x167   :  { %9342 = vmatpush3.msra.mxu0 %v10788_v25  ;;  %9379 = vmatpush3.msra.mxu1 %v1570_v58 }
 0x168   :  { %9343 = vmatprep.subr.mxu0 %v10800_v35  ;;  %9380 = vmatprep.mubr.f32.mxu1 %v10285_v63 }
 0x169   :  { %9344 = vmatpush3.msra.mxu0 %v10800_v35  ;;  %9418 = vmatprep.subr.mxu1 %v10586_v32 }
 0x16a   :  { %9346 = vmatmul.mubr.f32.vlgmr.msra.gmra.mxu0 %v10386_v51  ;;  %9383 = vmatprep.subr.mxu0 %v10593_v9 }
 0x16b   :  { %9381 = vmatmul.mubr.f32.vlgmr.msra.gmra.mxu1 %v10288_v0  ;;  %9384 = vmatpush3.msra.mxu0 %v10593_v9 }
 0x16c   :  { %9419 = vmatpush3.msra.mxu1 %v10586_v32  ;;  %9385 = vmatprep.subr.mxu0 %v10617_v7 }
 0x16d   :  { %9420 = vmatprep.subr.mxu1 %v10595_v14  ;;  %9386 = vmatpush3.msra.mxu0 %v10617_v7 }
 0x16e   :  { %9421 = vmatpush3.msra.mxu1 %v10595_v14  ;;  %9387 = vmatprep.subr.mxu0 %v10633_v23 }
 0x16f   :  { %9422 = vmatprep.subr.mxu1 %v10611_v2  ;;  %9388 = vmatpush3.msra.mxu0 %v10633_v23 }
 0x170   :  { %9423 = vmatpush3.msra.mxu1 %v10611_v2  ;;  %9389 = vmatprep.subr.mxu0 %v10649_v44 }
 0x171   :  { %9424 = vmatprep.subr.mxu1 %v10625_v10  ;;  %9390 = vmatpush3.msra.mxu0 %v10649_v44 }
 0x172   :  { %9425 = vmatpush3.msra.mxu1 %v10625_v10  ;;  %9391 = vmatprep.subr.mxu0 %v10665_v55 }
 0x173   :  { %9426 = vmatprep.subr.mxu1 %v10635_v27  ;;  %9392 = vmatpush3.msra.mxu0 %v10665_v55 }
 0x174   :  { %9427 = vmatpush3.msra.mxu1 %v10635_v27  ;;  %9393 = vmatprep.subr.mxu0 %v10680_v19 }
 0x175   :  { %9428 = vmatprep.subr.mxu1 %v10651_v45  ;;  %9394 = vmatpush3.msra.mxu0 %v10680_v19 }
 0x176   :  { %9429 = vmatpush3.msra.mxu1 %v10651_v45  ;;  %9395 = vmatprep.subr.mxu0 %v10684_v33 }
 0x177   :  { %9430 = vmatprep.subr.mxu1 %v10657_v48  ;;  %9396 = vmatpush3.msra.mxu0 %v10684_v33 }
 0x178   :  { %9431 = vmatpush3.msra.mxu1 %v10657_v48  ;;  %9397 = vmatprep.subr.mxu0 %v10699_v61 }
 0x179   :  { %9432 = vmatprep.subr.mxu1 %v10670_v3  ;;  %9398 = vmatpush3.msra.mxu0 %v10699_v61 }
 0x17a   :  { %9433 = vmatpush3.msra.mxu1 %v10670_v3  ;;  %9399 = vmatprep.subr.mxu0 %v10725_v29 }
 0x17b   :  { %9434 = vmatprep.subr.mxu1 %v10695_v53  ;;  %9400 = vmatpush3.msra.mxu0 %v10725_v29 }
 0x17c   :  { %9435 = vmatpush3.msra.mxu1 %v10695_v53  ;;  %9401 = vmatprep.subr.mxu0 %v10740_v47 }
 0x17d   :  { %9436 = vmatprep.subr.mxu1 %v10710_v4  ;;  %9402 = vmatpush3.msra.mxu0 %v10740_v47 }
 0x17e   :  { %9437 = vmatpush3.msra.mxu1 %v10710_v4  ;;  %9403 = vmatprep.subr.mxu0 %v10756_v39 }
 0x17f   :  { %9438 = vmatprep.subr.mxu1 %v10727_v30  ;;  %9404 = vmatpush3.msra.mxu0 %v10756_v39 }
 0x180   :  { %9439 = vmatpush3.msra.mxu1 %v10727_v30  ;;  %9405 = vmatprep.subr.mxu0 %v10771_v26 }
 0x181   :  { %9440 = vmatprep.subr.mxu1 %v10742_v49  ;;  %9406 = vmatpush3.msra.mxu0 %v10771_v26 }
 0x182   :  { %9441 = vmatpush3.msra.mxu1 %v10742_v49  ;;  %9407 = vmatprep.subr.mxu0 %v10786_v6 }
 0x183   :  { %9442 = vmatprep.subr.mxu1 %v10758_v40  ;;  %9408 = vmatpush3.msra.mxu0 %v10786_v6 }
 0x184   :  { %9443 = vmatpush3.msra.mxu1 %v10758_v40  ;;  %9409 = vmatprep.subr.mxu0 %v10798_v15 }
 0x185   :  { %9444 = vmatprep.subr.mxu1 %v10773_v21  ;;  %9410 = vmatpush3.msra.mxu0 %v10798_v15  ;;  %v14527_v15 = vmov 0.0  }
 0x186   :  { %9445 = vmatpush3.msra.mxu1 %v10773_v21  ;;  %9411 = vmatprep.subr.mxu0 %v10810_v24  ;;  %46 = vst.msk [vmem:[#allocation2 + $0x68] sm:$0xff] %vm32_vm2, %v14527_v15  ;;  %33 = vst.msk [vmem:[#allocation2] sm:$0xff] %vm32_vm2, %v14527_v15 }
 0x187   :  { %9446 = vmatprep.subr.mxu1 %v10788_v25  ;;  %9412 = vmatpush3.msra.mxu0 %v10810_v24  ;;  %34 = vst.msk [vmem:[#allocation2 + $0x8] sm:$0xff] %vm32_vm2, %v14527_v15  ;;  %35 = vst.msk [vmem:[#allocation2 + $0x10] sm:$0xff] %vm32_vm2, %v14527_v15  ;;  %v14771_v24 = vld [vmem:[#allocation4_spill] sm:$0xff] }
 0x188   :  { %9447 = vmatpush3.msra.mxu1 %v10788_v25  ;;  %9413 = vmatprep.subr.mxu0 %v10820_v11  ;;  %36 = vst.msk [vmem:[#allocation2 + $0x18] sm:$0xff] %vm32_vm2, %v14527_v15  ;;  %37 = vst.msk [vmem:[#allocation2 + $0x20] sm:$0xff] %vm32_vm2, %v14527_v15 }
 0x189   :  { %9448 = vmatprep.subr.mxu1 %v10800_v35  ;;  %9414 = vmatpush3.msra.mxu0 %v10820_v11  ;;  %38 = vst.msk [vmem:[#allocation2 + $0x28] sm:$0xff] %vm32_vm2, %v14527_v15  ;;  %39 = vst.msk [vmem:[#allocation2 + $0x30] sm:$0xff] %vm32_vm2, %v14527_v15  ;;  %v14766_v11 = vld [vmem:[#allocation13_spill] sm:$0xff] }
 0x18a   :  { %9415 = vmatprep.mubr.f32.mxu0 %v10315_v31  ;;  %9449 = vmatpush3.msra.mxu1 %v10800_v35  ;;  %40 = vst.msk [vmem:[#allocation2 + $0x38] sm:$0xff] %vm32_vm2, %v14527_v15  ;;  %41 = vst.msk [vmem:[#allocation2 + $0x40] sm:$0xff] %vm32_vm2, %v14527_v15 }
 0x18b   :  { %42 = vst.msk [vmem:[#allocation2 + $0x48] sm:$0xff] %vm32_vm2, %v14527_v15  ;;  %43 = vst.msk [vmem:[#allocation2 + $0x50] sm:$0xff] %vm32_vm2, %v14527_v15  ;;  %9416 = vmatmul.mubr.f32.vlgmr.msra.gmra.mxu0 %v10324_v34  ;;  %9450 = vmatprep.mubr.f32.mxu1 %v10342_v50 }
 0x18c   :  { %44 = vst.msk [vmem:[#allocation2 + $0x58] sm:$0xff] %vm32_vm2, %v14527_v15  ;;  %45 = vst.msk [vmem:[#allocation2 + $0x60] sm:$0xff] %vm32_vm2, %v14527_v15  ;;  %9453 = vmatprep.subr.mxu0 %v10614_v1  ;;  %9488 = vmatprep.subr.mxu1 %v10586_v32 }
 0x18d   :  { %47 = vst.msk [vmem:[#allocation2 + $0x70] sm:$0xff] %vm32_vm2, %v14527_v15  ;;  %48 = vst.msk [vmem:[#allocation2 + $0x78] sm:$0xff] %vm32_vm2, %v14527_v15  ;;  %9451 = vmatmul.mubr.f32.vlgmr.msra.gmra.mxu1 %v10349_v52  ;;  %9454 = vmatpush3.msra.mxu0 %v10614_v1 }
 0x18e   :  { %49 = vst.msk [vmem:[#allocation2 + $0x80] sm:$0xff] %vm32_vm2, %v14527_v15  ;;  %50 = vst.msk [vmem:[#allocation2 + $0x88] sm:$0xff] %vm32_vm2, %v14527_v15  ;;  %9489 = vmatpush3.msra.mxu1 %v10586_v32  ;;  %9455 = vmatprep.subr.mxu0 %v10645_v36 }
 0x18f   :  { %51 = vst.msk [vmem:[#allocation2 + $0x90] sm:$0xff] %vm32_vm2, %v14527_v15  ;;  %52 = vst.msk [vmem:[#allocation2 + $0x98] sm:$0xff] %vm32_vm2, %v14527_v15  ;;  %9490 = vmatprep.subr.mxu1 %v10595_v14  ;;  %9456 = vmatpush3.msra.mxu0 %v10645_v36 }
 0x190   :  { %53 = vst.msk [vmem:[#allocation2 + $0xa0] sm:$0xff] %vm32_vm2, %v14527_v15  ;;  %54 = vst.msk [vmem:[#allocation2 + $0xa8] sm:$0xff] %vm32_vm2, %v14527_v15  ;;  %9491 = vmatpush3.msra.mxu1 %v10595_v14  ;;  %9457 = vmatprep.subr.mxu0 %v10662_v54 }
 0x191   :  { %55 = vst.msk [vmem:[#allocation2 + $0xb0] sm:$0xff] %vm32_vm2, %v14527_v15  ;;  %56 = vst.msk [vmem:[#allocation2 + $0xb8] sm:$0xff] %vm32_vm2, %v14527_v15  ;;  %9492 = vmatprep.subr.mxu1 %v10611_v2  ;;  %9458 = vmatpush3.msra.mxu0 %v10662_v54 }
 0x192   :  { %57 = vst.msk [vmem:[#allocation2 + $0xc0] sm:$0xff] %vm32_vm2, %v14527_v15  ;;  %58 = vst.msk [vmem:[#allocation2 + $0xc8] sm:$0xff] %vm32_vm2, %v14527_v15  ;;  %9493 = vmatpush3.msra.mxu1 %v10611_v2  ;;  %9459 = vmatprep.subr.mxu0 %v10677_v13 }
 0x193   :  { %59 = vst.msk [vmem:[#allocation2 + $0xd0] sm:$0xff] %vm32_vm2, %v14527_v15  ;;  %60 = vst.msk [vmem:[#allocation2 + $0xd8] sm:$0xff] %vm32_vm2, %v14527_v15  ;;  %9494 = vmatprep.subr.mxu1 %v10625_v10  ;;  %9460 = vmatpush3.msra.mxu0 %v10677_v13 }
 0x194   :  { %61 = vst.msk [vmem:[#allocation2 + $0xe0] sm:$0xff] %vm32_vm2, %v14527_v15  ;;  %62 = vst.msk [vmem:[#allocation2 + $0xe8] sm:$0xff] %vm32_vm2, %v14527_v15  ;;  %9495 = vmatpush3.msra.mxu1 %v10625_v10  ;;  %9461 = vmatprep.subr.mxu0 %v10693_v42 }
 0x195   :  { %63 = vst.msk [vmem:[#allocation2 + $0xf0] sm:$0xff] %vm32_vm2, %v14527_v15  ;;  %64 = vst.msk [vmem:[#allocation2 + $0xf8] sm:$0xff] %vm32_vm2, %v14527_v15  ;;  %9496 = vmatprep.subr.mxu1 %v10635_v27  ;;  %9462 = vmatpush3.msra.mxu0 %v10693_v42 }
 0x196   :  { %65 = vst.msk [vmem:[#allocation2 + $0x100] sm:$0xff] %vm32_vm2, %v14527_v15  ;;  %66 = vst.msk [vmem:[#allocation2 + $0x108] sm:$0xff] %vm32_vm2, %v14527_v15  ;;  %9497 = vmatpush3.msra.mxu1 %v10635_v27  ;;  %9463 = vmatprep.subr.mxu0 %v10708_v46 }
 0x197   :  { %67 = vst.msk [vmem:[#allocation2 + $0x110] sm:$0xff] %vm32_vm2, %v14527_v15  ;;  %68 = vst.msk [vmem:[#allocation2 + $0x118] sm:$0xff] %vm32_vm2, %v14527_v15  ;;  %9498 = vmatprep.subr.mxu1 %v10651_v45  ;;  %9464 = vmatpush3.msra.mxu0 %v10708_v46 }
 0x198   :  { %69 = vst.msk [vmem:[#allocation2 + $0x120] sm:$0xff] %vm32_vm2, %v14527_v15  ;;  %70 = vst.msk [vmem:[#allocation2 + $0x128] sm:$0xff] %vm32_vm2, %v14527_v15  ;;  %9499 = vmatpush3.msra.mxu1 %v10651_v45  ;;  %9465 = vmatprep.subr.mxu0 %v10715_v5 }
 0x199   :  { %71 = vst.msk [vmem:[#allocation2 + $0x130] sm:$0xff] %vm32_vm2, %v14527_v15  ;;  %72 = vst.msk [vmem:[#allocation2 + $0x138] sm:$0xff] %vm32_vm2, %v14527_v15  ;;  %9500 = vmatprep.subr.mxu1 %v10657_v48  ;;  %9466 = vmatpush3.msra.mxu0 %v10715_v5 }
 0x19a   :  { %73 = vst.msk [vmem:[#allocation2 + $0x140] sm:$0xff] %vm32_vm2, %v14527_v15  ;;  %74 = vst.msk [vmem:[#allocation2 + $0x148] sm:$0xff] %vm32_vm2, %v14527_v15  ;;  %9501 = vmatpush3.msra.mxu1 %v10657_v48  ;;  %9467 = vmatprep.subr.mxu0 %v10731_v56 }
 0x19b   :  { %75 = vst.msk [vmem:[#allocation2 + $0x150] sm:$0xff] %vm32_vm2, %v14527_v15  ;;  %76 = vst.msk [vmem:[#allocation2 + $0x158] sm:$0xff] %vm32_vm2, %v14527_v15  ;;  %9502 = vmatprep.subr.mxu1 %v10670_v3  ;;  %9468 = vmatpush3.msra.mxu0 %v10731_v56 }
 0x19c   :  { %77 = vst.msk [vmem:[#allocation2 + $0x160] sm:$0xff] %vm32_vm2, %v14527_v15  ;;  %78 = vst.msk [vmem:[#allocation2 + $0x168] sm:$0xff] %vm32_vm2, %v14527_v15  ;;  %9503 = vmatpush3.msra.mxu1 %v10670_v3  ;;  %9469 = vmatprep.subr.mxu0 %v10753_v8 }
 0x19d   :  { %79 = vst.msk [vmem:[#allocation2 + $0x170] sm:$0xff] %vm32_vm2, %v14527_v15  ;;  %80 = vst.msk [vmem:[#allocation2 + $0x178] sm:$0xff] %vm32_vm2, %v14527_v15  ;;  %9504 = vmatprep.subr.mxu1 %v10695_v53  ;;  %9470 = vmatpush3.msra.mxu0 %v10753_v8 }
 0x19e   :  { %81 = vst.msk [vmem:[#allocation2 + $0x180] sm:$0xff] %vm32_vm2, %v14527_v15  ;;  %82 = vst.msk [vmem:[#allocation2 + $0x188] sm:$0xff] %vm32_vm2, %v14527_v15  ;;  %9505 = vmatpush3.msra.mxu1 %v10695_v53  ;;  %9471 = vmatprep.subr.mxu0 %v10768_v20 }
 0x19f   :  { %83 = vst.msk [vmem:[#allocation2 + $0x190] sm:$0xff] %vm32_vm2, %v14527_v15  ;;  %84 = vst.msk [vmem:[#allocation2 + $0x198] sm:$0xff] %vm32_vm2, %v14527_v15  ;;  %9506 = vmatprep.subr.mxu1 %v10710_v4  ;;  %9472 = vmatpush3.msra.mxu0 %v10768_v20 }
 0x1a0   :  { %85 = vst.msk [vmem:[#allocation2 + $0x1a0] sm:$0xff] %vm32_vm2, %v14527_v15  ;;  %86 = vst.msk [vmem:[#allocation2 + $0x1a8] sm:$0xff] %vm32_vm2, %v14527_v15  ;;  %9507 = vmatpush3.msra.mxu1 %v10710_v4  ;;  %9473 = vmatprep.subr.mxu0 %v10783_v18  ;;  %v14774_v4 = vld [vmem:[#allocation12_spill] sm:$0xff] }
 0x1a1   :  { %87 = vst.msk [vmem:[#allocation2 + $0x1b0] sm:$0xff] %vm32_vm2, %v14527_v15  ;;  %88 = vst.msk [vmem:[#allocation2 + $0x1b8] sm:$0xff] %vm32_vm2, %v14527_v15  ;;  %9508 = vmatprep.subr.mxu1 %v10727_v30  ;;  %9474 = vmatpush3.msra.mxu0 %v10783_v18  ;;  %v14768_v18 = vld [vmem:[#allocation3_spill] sm:$0xff] }
 0x1a2   :  { %89 = vst.msk [vmem:[#allocation2 + $0x1c0] sm:$0xff] %vm32_vm2, %v14527_v15  ;;  %90 = vst.msk [vmem:[#allocation2 + $0x1c8] sm:$0xff] %vm32_vm2, %v14527_v15  ;;  %9509 = vmatpush3.msra.mxu1 %v10727_v30  ;;  %9475 = vmatprep.subr.mxu0 %v10795_v28  ;;  %v14775_v30 = vld [vmem:[#allocation11_spill] sm:$0xff] }
 0x1a3   :  { %91 = vst.msk [vmem:[#allocation2 + $0x1d0] sm:$0xff] %vm32_vm2, %v14527_v15  ;;  %92 = vst.msk [vmem:[#allocation2 + $0x1d8] sm:$0xff] %vm32_vm2, %v14527_v15  ;;  %9510 = vmatprep.subr.mxu1 %v10742_v49  ;;  %9476 = vmatpush3.msra.mxu0 %v10795_v28 }
 0x1a4   :  { %93 = vst.msk [vmem:[#allocation2 + $0x1e0] sm:$0xff] %vm32_vm2, %v14527_v15  ;;  %94 = vst.msk [vmem:[#allocation2 + $0x1e8] sm:$0xff] %vm32_vm2, %v14527_v15  ;;  %9511 = vmatpush3.msra.mxu1 %v10742_v49  ;;  %9477 = vmatprep.subr.mxu0 %v10807_v16 }
 0x1a5   :  { %95 = vst.msk [vmem:[#allocation2 + $0x1f0] sm:$0xff] %vm32_vm2, %v14527_v15  ;;  %96 = vst.msk [vmem:[#allocation2 + $0x1f8] sm:$0xff] %vm32_vm2, %v14527_v15  ;;  %9512 = vmatprep.subr.mxu1 %v10758_v40  ;;  %9478 = vmatpush3.msra.mxu0 %v10807_v16  ;;  %v14767_v16 = vld [vmem:[#allocation9_spill] sm:$0xff] }
 0x1a6   :  { %97 = vst.msk [vmem:[#allocation2 + $0x200] sm:$0xff] %vm32_vm2, %v14527_v15  ;;  %98 = vst.msk [vmem:[#allocation2 + $0x208] sm:$0xff] %vm32_vm2, %v14527_v15  ;;  %9513 = vmatpush3.msra.mxu1 %v10758_v40  ;;  %9479 = vmatprep.subr.mxu0 %v14766_v11 }
 0x1a7   :  { %9514 = vmatprep.subr.mxu1 %v10773_v21  ;;  %9480 = vmatpush3.msra.mxu0 %v14766_v11 }
 0x1a8   :  { %9515 = vmatpush3.msra.mxu1 %v10773_v21  ;;  %9481 = vmatprep.subr.mxu0 %v10827_v59  ;;  %v14769_v21 = vld [vmem:[#allocation10_spill] sm:$0xff] }
 0x1a9   :  { %9516 = vmatprep.subr.mxu1 %v10788_v25  ;;  %9482 = vmatpush3.msra.mxu0 %v10827_v59 }
 0x1aa   :  { %9517 = vmatpush3.msra.mxu1 %v10788_v25  ;;  %9483 = vmatprep.subr.mxu0 %v10834_v22 }
 0x1ab   :  { %9518 = vmatprep.subr.mxu1 %v10800_v35  ;;  %9484 = vmatpush3.msra.mxu0 %v10834_v22  ;;  %v14770_v22 = vld [vmem:[#allocation5_spill] sm:$0xff] }
 0x1ac   :  { %9485 = vmatprep.mubr.f32.mxu0 %v10285_v63  ;;  %9519 = vmatpush3.msra.mxu1 %v10800_v35  ;;  %v2586_v35 = vld [vmem:[%s14496_s0 + $0x1f8] sm:$0xff] }
 0x1ad   :  { %9520 = vmatprep.mubr.f32.mxu1 %v10285_v63  ;;  %9486 = vmatmul.mubr.f32.vlgmr.msra.gmra.mxu0 %v10288_v0  ;;  %v11155_v37 = vand.u32 4294901760, %v2586_v35 }
 0x1ae   :  { %9521 = vmatmul.mubr.f32.vlgmr.msra.gmra.mxu1 %v10288_v0  ;;  %9530 = vmatprep.subr.mxu1 %v14767_v16 }
 0x1af   :  { %9531 = vmatpush3.msra.mxu1 %v14767_v16  ;;  %9523 = vmatprep.subr.mxu0 %v14768_v18 }
 0x1b0   :  { %9532 = vmatprep.subr.mxu1 %v14769_v21  ;;  %9524 = vmatpush3.msra.mxu0 %v14768_v18 }
 0x1b1   :  { %9533 = vmatpush3.msra.mxu1 %v14769_v21  ;;  %9525 = vmatprep.subr.mxu0 %v14770_v22 }
 0x1b2   :  { %9544 = vmatprep.subr.mxu1 %v14768_v18  ;;  %9526 = vmatpush3.msra.mxu0 %v14770_v22 }
 0x1b3   :  { %9537 = vmatprep.subr.mxu0 %v14771_v24 }
 0x1fa   :  { %v9284_v25 = vpop.f32.mrf.mxu1 }
 0x1fc   :  { %v984_v28 = vpop.f32.mrf.mxu1 }
 0x1fe   :  { %v9298_v32 = vpop.f32.mrf.mxu1 }
 0x200   :  { %v1148_v1 = vpop.f32.mrf.mxu1 }
 0x202   :  { %v9277_v9 = vpop.f32.mrf.mxu0  ;;  %v9312_v45 = vpop.f32.mrf.mxu1 }
 0x203   :  { %v991_v2 = vadd.f32 %v9284_v25, %v9277_v9  ;;  %v11164_v9 = vand.u32 4294901760, %v2585_v38 }
 0x204   :  { %v893_v14 = vpop.f32.mrf.mxu0  ;;  %v1312_v33 = vpop.f32.mrf.mxu1 }
 0x205   :  { %v985_v10 = vadd.f32 %v984_v28, %v893_v14  ;;  %v2584_v14 = vld [vmem:[%s14496_s0 + $0x1e8] sm:$0xff] }
 0x206   :  { %v9291_v7 = vpop.f32.mrf.mxu0 }
 0x207   :  { %v1074_v23 = vadd.f32 %v9291_v7, %v991_v2  ;;  %v2583_v7 = vld [vmem:[%s14496_s0 + $0x1e0] sm:$0xff] }
 0x208   :  { %v1066_v27 = vpop.f32.mrf.mxu0 }
 0x209   :  { %v1067_v36 = vadd.f32 %v1066_v27, %v985_v10  ;;  %v1157_v44 = vadd.f32 %v9298_v32, %v1074_v23  ;;  %v11162_v32 = vsub.f32 %v2586_v35, %v11155_v37  ;;  %v11180_v27 = vand.u32 4294901760, %v2584_v14 }
 0x20a   :  { %v9305_v48 = vpop.f32.mrf.mxu0 }
 0x20b   :  { %v1240_v54 = vadd.f32 %v9305_v48, %v1157_v44  ;;  %v1149_v55 = vadd.f32 %v1148_v1, %v1067_v36  ;;  %v11183_v36 = vand.u32 4294901760, %v11162_v32  ;;  %v11186_v44 = vsub.f32 %v2585_v38, %v11164_v9  ;;  %v2577_v38 = vld [vmem:[%s14496_s0 + $0x1b0] sm:$0xff] }
 0x20c   :  { %v1233_v3 = vpop.f32.mrf.mxu0 }
 0x20d   :  { %v11138_v13 = vadd.f32 %v9312_v45, %v1240_v54  ;;  %v1234_v19 = vadd.f32 %v1233_v3, %v1149_v55  ;;  %v2582_v45 = vld [vmem:[%s14496_s0 + $0x1d8] sm:$0xff]  ;;  %v11194_v55 = vand.u32 4294901760, %v2583_v7  ;;  %v2581_v3 = vld [vmem:[%s14496_s0 + $0x1d0] sm:$0xff] }
 0x20f   :  { %14772 = vst [vmem:[#allocation13_spill] sm:$0xff] %v11138_v13  ;;  %1324 = vst.msk [vmem:[#allocation2 + $0x68] sm:$0xf] %vm1323_vm3, %v11138_v13  ;;  %v11142_v42 = vadd.f32 %v1312_v33, %v1234_v19  ;;  %1329 = vrot.lane.b32.xlu1 %v11138_v13, %s10081_s19  ;;  %v11202_v33 = vsub.f32 %v2584_v14, %v11180_v27 }
 0x211   :  { %14773 = vst [vmem:[#allocation14_spill] sm:$0xff] %v11142_v42  ;;  %1322 = vst.msk [vmem:[#allocation2 + $0x60] sm:$0xff] %vm32_vm2, %v11142_v42 }
 0x213   :  { %1327 = vrot.lane.b32.xlu1 %v11142_v42, %s10081_s19 }
 0x22a   :  { %v9347_v53 = vpop.f32.mrf.mxu0 }
 0x22b   :  { %v9382_v61 = vpop.f32.mrf.mxu1  ;;  %v1457_v5 = vadd.f32 %v9347_v53, %v14774_v4  ;;  %v11204_v53 = vand.u32 4294901760, %v2582_v45 }
 0x22c   :  { %v1446_v46 = vpop.f32.mrf.mxu0 }
 0x22d   :  { %v1447_v56 = vadd.f32 %v1446_v46, %v14775_v30  ;;  %v1607_v47 = vpop.f32.mrf.mxu1  ;;  %v1614_v49 = vadd.f32 %v9382_v61, %v1457_v5  ;;  %v2580_v61 = vld [vmem:[%s14496_s0 + $0x1c8] sm:$0xff]  ;;  %v2692_v5 = vsub.f32 %v11162_v32, %v11183_v36  ;;  %v2571_v30 = vld [vmem:[%s14496_s0 + $0x180] sm:$0xff] }
 0x22f   :  { %v1608_v40 = vadd.f32 %v1607_v47, %v1447_v56  ;;  %v11218_v47 = vsub.f32 %v2583_v7, %v11194_v55  ;;  %v2693_v35 = vand.u32 4294901760, %v2692_v5  ;;  %v2576_v7 = vld [vmem:[%s14496_s0 + $0x1a8] sm:$0xff] }
 0x24b   :  { %v9417_v29 = vpop.f32.mrf.mxu0 }
 0x24c   :  { %v1725_v20 = vadd.f32 %v9417_v29, %v1614_v49  ;;  %v11214_v29 = vand.u32 4294901760, %v11186_v44  ;;  %v11220_v49 = vand.u32 4294901760, %v2581_v3 }
 0x24d   :  { %v9452_v8 = vpop.f32.mrf.mxu1  ;;  %v1717_v39 = vpop.f32.mrf.mxu0 }
 0x24e   :  { %v1718_v26 = vadd.f32 %v1717_v39, %v1608_v40  ;;  %v1822_v41 = vadd.f32 %v9452_v8, %v1725_v20  ;;  %v2579_v8 = vld [vmem:[%s14496_s0 + $0x1c0] sm:$0xff]  ;;  %v11226_v39 = vand.u32 4294901760, %v2580_v61  ;;  %v11231_v20 = vand.u32 4294901760, %v11202_v33 }
 0x24f   :  { %v1813_v6 = vpop.f32.mrf.mxu1 }
 0x250   :  { %v1814_v59 = vadd.f32 %v1813_v6, %v1718_v26  ;;  %v11234_v26 = vsub.f32 %v2582_v45, %v11204_v53 }
 0x26d   :  { %v9487_v12 = vpop.f32.mrf.mxu0 }
 0x26e   :  { %v1947_v17 = vadd.f32 %v9487_v12, %v1822_v41  ;;  %v9522_v57 = vpop.f32.mrf.mxu1  ;;  %v2699_v41 = vsub.f32 %v11186_v44, %v11214_v29  ;;  %v11239_v12 = vand.u32 4294901760, %v2579_v8 }
 0x26f   :  { %v1940_v62 = vpop.f32.mrf.mxu0 }
 0x270   :  { %v2040_v60 = vadd.f32 %v9522_v57, %v1947_v17  ;;  %v1941_v58 = vadd.f32 %v1940_v62, %v1814_v59  ;;  %v2033_v11 = vpop.f32.mrf.mxu1  ;;  %v2578_v59 = vld [vmem:[%s14496_s0 + $0x1b8] sm:$0xff]  ;;  %v11246_v17 = vand.u32 4294901760, %v11218_v47  ;;  %v11249_v57 = vsub.f32 %v2581_v3, %v11220_v49  ;;  %v14777_v3 = vld [vmem:[#allocation6_spill] sm:$0xff] }
 0x271   :  { %v11253_v62 = vsub.f32 %v2580_v61, %v11226_v39  ;;  %v2700_v14 = vand.u32 4294901760, %v2699_v41  ;;  %v2575_v61 = vld [vmem:[%s14496_s0 + $0x1a0] sm:$0xff] }
 0x272   :  { %v2047_v25 = vsel %vm809_vm1, %v2040_v60, 0  ;;  %v2034_v28 = vadd.f32 %v2033_v11, %v1941_v58  ;;  %v2706_v58 = vsub.f32 %v11202_v33, %v11231_v20  ;;  %v11262_v11 = vand.u32 4294901760, %v11234_v26 }
 0x273   :  { %v11169_v2 = vand.u32 4294901760, %v2047_v25  ;;  %v2713_v45 = vsub.f32 %v11218_v47, %v11246_v17 }
 0x274   :  { %v2044_v1 = vsel %vm809_vm1, %v2034_v28, 0  ;;  %v14776_v28 = vld [vmem:[#allocation7_spill] sm:$0xff]  ;;  %v2707_v5 = vand.u32 4294901760, %v2706_v58 }
 0x275   :  { %v11176_v10 = vsub.f32 %v2047_v25, %v11169_v2  ;;  %v11178_v23 = vand.u32 4294901760, %v2044_v1  ;;  %v11264_v25 = vand.u32 4294901760, %v2578_v59 }
 0x277   :  { %v2117_v48 = vsub.f32 %v2044_v1, %v11178_v23  ;;  %9534 = vmatprep.mubr.f32.mxu1 %v11178_v23  ;;  %v2128_v54 = vand.u32 4294901760, %v11176_v10  ;;  %v11269_v1 = vsub.f32 %v2579_v8, %v11239_v12  ;;  %v11295_v8 = vsub.f32 %v2578_v59, %v11264_v25 }
 0x278   :  { %9535 = vmatmul.mubr.f32.vlgmr.msra.gmra.mxu1 %v11169_v2 }
 0x279   :  { %9545 = vmatpush3.msra.mxu1 %v14768_v18  ;;  %v2118_v19 = vand.u32 4294901760, %v2117_v48  ;;  %v2129_v46 = vsub.f32 %v11176_v10, %v2128_v54 }
 0x27a   :  { %9546 = vmatprep.subr.mxu1 %v14770_v22 }
 0x27b   :  { %9547 = vmatpush3.msra.mxu1 %v14770_v22  ;;  %9548 = vmatprep.mubr.f32.mxu1 %v2118_v19  ;;  %v2119_v56 = vsub.f32 %v2117_v48, %v2118_v19  ;;  %v2130_v6 = vand.u32 4294901760, %v2129_v46  ;;  %v11285_v19 = vand.u32 4294901760, %v11253_v62 }
 0x27c   :  { %9549 = vmatmul.mubr.f32.vlgmr.msra.gmra.mxu1 %v2128_v54  ;;  %9558 = vmatprep.subr.mxu1 %v14768_v18  ;;  %v11280_v54 = vand.u32 4294901760, %v2577_v38 }
 0x27d   :  { %9559 = vmatpush3.msra.mxu1 %v14768_v18  ;;  %9562 = vmatprep.mubr.f32.mxu1 %v11178_v23  ;;  %v2120_v40 = vand.u32 4294901760, %v2119_v56  ;;  %v2720_v56 = vsub.f32 %v11234_v26, %v11262_v11  ;;  %v2734_v58 = vsub.f32 %v11253_v62, %v11285_v19 }
 0x27e   :  { %9560 = vmatprep.subr.mxu1 %v14770_v22  ;;  %v11311_v59 = vsub.f32 %v2577_v38, %v11280_v54  ;;  %v11324_v38 = vand.u32 4294901760, %v11295_v8 }
 0x27f   :  { %9527 = vmatprep.mubr.f32.mxu0 %v2120_v40  ;;  %9561 = vmatpush3.msra.mxu1 %v14770_v22  ;;  %v14778_v40 = vld [vmem:[#allocation8_spill] sm:$0xff] }
 0x280   :  { %9528 = vmatmul.mubr.f32.vlgmr.msra.gmra.mxu0 %v2130_v6  ;;  %9563 = vmatmul.mubr.f32.vlgmr.msra.gmra.mxu1 %v11169_v2  ;;  %v11302_v6 = vand.u32 4294901760, %v11269_v1 }
 0x281   :  { %9538 = vmatpush3.msra.mxu0 %v14771_v24  ;;  %9541 = vmatprep.mubr.f32.mxu0 %v2117_v48  ;;  %v1330_v60 = vpop.permute.xlu1 %1329  ;;  %v11278_v48 = vand.u32 4294901760, %v11249_v57 }
 0x282   :  { %9539 = vmatprep.subr.mxu0 %v14776_v28  ;;  %1334 = vst.msk [vmem:[#allocation2 + $0x78] sm:$0xf] %vm1323_vm3, %v1330_v60  ;;  %9600 = vmatprep.subr.mxu1 %v2693_v35  ;;  %v11313_v60 = vand.u32 4294901760, %v2575_v61 }
 0x283   :  { %9540 = vmatpush3.msra.mxu0 %v14776_v28  ;;  %9601 = vmatpush3.msra.mxu1 %v2693_v35  ;;  %v2714_v35 = vand.u32 4294901760, %v2713_v45  ;;  %v2727_v41 = vsub.f32 %v11249_v57, %v11278_v48  ;;  %v2721_v45 = vand.u32 4294901760, %v2720_v56 }
 0x284   :  { %9551 = vmatprep.subr.mxu0 %v14777_v3  ;;  %9542 = vmatmul.mubr.f32.vlgmr.msra.gmra.mxu0 %v11176_v10  ;;  %v11297_v10 = vand.u32 4294901760, %v2576_v7 }
 0x285   :  { %9552 = vmatpush3.msra.mxu0 %v14777_v3  ;;  %9555 = vmatprep.mubr.f32.mxu0 %v11178_v23  ;;  %v1328_v46 = vpop.permute.xlu1 %1327  ;;  %v2574_v23 = vld [vmem:[%s14496_s0 + $0x198] sm:$0xff]  ;;  %v2728_v56 = vand.u32 4294901760, %v2727_v41  ;;  %v11339_v3 = vand.u32 4294901760, %v11311_v59  ;;  %v2748_v41 = vsub.f32 %v11295_v8, %v11324_v38 }
 0x286   :  { %9553 = vmatprep.subr.mxu0 %v14778_v40  ;;  %9602 = vmatprep.subr.mxu1 %v2700_v14  ;;  %1333 = vst.msk [vmem:[#allocation2 + $0x70] sm:$0xff] %vm32_vm2, %v1328_v46  ;;  %v11327_v46 = vsub.f32 %v2576_v7, %v11297_v10  ;;  %v11329_v15 = vand.u32 4294901760, %v2574_v23  ;;  %v11342_v7 = vsub.f32 %v2575_v61, %v11313_v60 }
 0x287   :  { %9554 = vmatpush3.msra.mxu0 %v14778_v40  ;;  %9603 = vmatpush3.msra.mxu1 %v2700_v14  ;;  %v2573_v14 = vld [vmem:[%s14496_s0 + $0x190] sm:$0xff]  ;;  %v2572_v40 = vld [vmem:[%s14496_s0 + $0x188] sm:$0xff] }
 0x288   :  { %9565 = vmatprep.subr.mxu0 %v11155_v37  ;;  %9556 = vmatmul.mubr.f32.vlgmr.msra.gmra.mxu0 %v11169_v2  ;;  %v2741_v2 = vsub.f32 %v11269_v1, %v11302_v6  ;;  %v11344_v28 = vand.u32 4294901760, %v2573_v14  ;;  %v11354_v4 = vand.u32 4294901760, %v11327_v46  ;;  %v11357_v61 = vsub.f32 %v2574_v23, %v11329_v15 }
 0x289   :  { %9566 = vmatpush3.msra.mxu0 %v11155_v37  ;;  %9604 = vmatprep.subr.mxu1 %v2707_v5  ;;  %v11359_v42 = vand.u32 4294901760, %v2572_v40  ;;  %v11366_v13 = vand.u32 4294901760, %v11342_v7  ;;  %v11371_v23 = vand.u32 4294901760, %v2571_v30 }
 0x28a   :  { %9567 = vmatprep.subr.mxu0 %v11164_v9  ;;  %9605 = vmatpush3.msra.mxu1 %v2707_v5  ;;  %v2735_v5 = vand.u32 4294901760, %v2734_v58  ;;  %v2755_v58 = vsub.f32 %v11311_v59, %v11339_v3  ;;  %v11369_v24 = vsub.f32 %v2573_v14, %v11344_v28  ;;  %v11378_v22 = vand.u32 4294901760, %v11357_v61 }
 0x28b   :  { %9568 = vmatpush3.msra.mxu0 %v11164_v9  ;;  %9606 = vmatprep.subr.mxu1 %v2714_v35  ;;  %v11381_v21 = vsub.f32 %v2572_v40, %v11359_v42  ;;  %v11391_v18 = vsub.f32 %v2571_v30, %v11371_v23 }
 0x28c   :  { %9569 = vmatprep.subr.mxu0 %v11180_v27  ;;  %9607 = vmatpush3.msra.mxu1 %v2714_v35  ;;  %v2742_v35 = vand.u32 4294901760, %v2741_v2  ;;  %v2762_v2 = vsub.f32 %v11327_v46, %v11354_v4  ;;  %v2756_v14 = vand.u32 4294901760, %v2755_v58 }
 0x28d   :  { %9570 = vmatpush3.msra.mxu0 %v11180_v27  ;;  %9608 = vmatprep.subr.mxu1 %v2721_v45  ;;  %v11398_v58 = vand.u32 4294901760, %v11381_v21  ;;  %v11405_v16 = vand.u32 4294901760, %v11391_v18 }
 0x28e   :  { %9571 = vmatprep.subr.mxu0 %v11194_v55  ;;  %9609 = vmatpush3.msra.mxu1 %v2721_v45  ;;  %v2749_v45 = vand.u32 4294901760, %v2748_v41  ;;  %v11388_v41 = vand.u32 4294901760, %v11369_v24  ;;  %v2763_v40 = vand.u32 4294901760, %v2762_v2 }
 0x28f   :  { %9572 = vmatpush3.msra.mxu0 %v11194_v55  ;;  %9610 = vmatprep.subr.mxu1 %v2728_v56 }
 0x290   :  { %9573 = vmatprep.subr.mxu0 %v11204_v53  ;;  %9611 = vmatpush3.msra.mxu1 %v2728_v56  ;;  %v2769_v56 = vsub.f32 %v11342_v7, %v11366_v13  ;;  %14779 = vst [vmem:[#allocation15_spill] sm:$0xff] %v11388_v41 }
 0x291   :  { %9574 = vmatpush3.msra.mxu0 %v11204_v53  ;;  %9612 = vmatprep.subr.mxu1 %v2735_v5 }
 0x292   :  { %9575 = vmatprep.subr.mxu0 %v11220_v49  ;;  %9613 = vmatpush3.msra.mxu1 %v2735_v5  ;;  %v2776_v5 = vsub.f32 %v11357_v61, %v11378_v22  ;;  %v2770_v30 = vand.u32 4294901760, %v2769_v56 }
 0x293   :  { %9576 = vmatpush3.msra.mxu0 %v11220_v49  ;;  %9614 = vmatprep.subr.mxu1 %v2742_v35 }
 0x294   :  { %9577 = vmatprep.subr.mxu0 %v11226_v39  ;;  %9615 = vmatpush3.msra.mxu1 %v2742_v35  ;;  %v2783_v35 = vsub.f32 %v11369_v24, %v11388_v41  ;;  %v2777_v2 = vand.u32 4294901760, %v2776_v5  ;;  %v2797_v41 = vsub.f32 %v11391_v18, %v11405_v16 }
 0x295   :  { %9578 = vmatpush3.msra.mxu0 %v11226_v39  ;;  %9616 = vmatprep.subr.mxu1 %v2749_v45 }
 0x296   :  { %9579 = vmatprep.subr.mxu0 %v11239_v12  ;;  %9617 = vmatpush3.msra.mxu1 %v2749_v45  ;;  %v2790_v45 = vsub.f32 %v11381_v21, %v11398_v58  ;;  %v2784_v56 = vand.u32 4294901760, %v2783_v35 }
 0x297   :  { %9580 = vmatpush3.msra.mxu0 %v11239_v12  ;;  %9618 = vmatprep.subr.mxu1 %v2756_v14 }
 0x298   :  { %9581 = vmatprep.subr.mxu0 %v11264_v25  ;;  %9619 = vmatpush3.msra.mxu1 %v2756_v14  ;;  %v2791_v14 = vand.u32 4294901760, %v2790_v45 }
 0x299   :  { %9582 = vmatpush3.msra.mxu0 %v11264_v25  ;;  %9620 = vmatprep.subr.mxu1 %v2763_v40 }
 0x29a   :  { %9583 = vmatprep.subr.mxu0 %v11280_v54  ;;  %9621 = vmatpush3.msra.mxu1 %v2763_v40  ;;  %v2798_v40 = vand.u32 4294901760, %v2797_v41  ;;  %v3814_v41 = vld [vmem:[%s14496_s0 + $0x2b8] sm:$0xff] }
 0x29b   :  { %9584 = vmatpush3.msra.mxu0 %v11280_v54  ;;  %9622 = vmatprep.subr.mxu1 %v2770_v30  ;;  %v11592_v45 = vand.u32 4294901760, %v3814_v41 }
 0x29c   :  { %9585 = vmatprep.subr.mxu0 %v11297_v10  ;;  %9623 = vmatpush3.msra.mxu1 %v2770_v30 }
 0x29d   :  { %9586 = vmatpush3.msra.mxu0 %v11297_v10  ;;  %9624 = vmatprep.subr.mxu1 %v2777_v2 }
 0x29e   :  { %9587 = vmatprep.subr.mxu0 %v11313_v60  ;;  %9625 = vmatpush3.msra.mxu1 %v2777_v2 }
 0x29f   :  { %9588 = vmatpush3.msra.mxu0 %v11313_v60  ;;  %9626 = vmatprep.subr.mxu1 %v2784_v56 }
 0x2a0   :  { %9589 = vmatprep.subr.mxu0 %v11329_v15  ;;  %9627 = vmatpush3.msra.mxu1 %v2784_v56 }
 0x2a1   :  { %9590 = vmatpush3.msra.mxu0 %v11329_v15  ;;  %9628 = vmatprep.subr.mxu1 %v2791_v14 }
 0x2a2   :  { %9591 = vmatprep.subr.mxu0 %v11344_v28  ;;  %9629 = vmatpush3.msra.mxu1 %v2791_v14  ;;  %v3813_v14 = vld [vmem:[%s14496_s0 + $0x2b0] sm:$0xff] }
 0x2a3   :  { %9592 = vmatpush3.msra.mxu0 %v11344_v28  ;;  %9630 = vmatprep.subr.mxu1 %v2798_v40 }
 0x2a4   :  { %9593 = vmatprep.subr.mxu0 %v11359_v42  ;;  %9597 = vmatprep.mubr.f32.mxu0 %v10383_v43 }
 0x2a5   :  { %9594 = vmatpush3.msra.mxu0 %v11359_v42  ;;  %9631 = vmatpush3.msra.mxu1 %v2798_v40 }
 0x2a6   :  { %9595 = vmatprep.subr.mxu0 %v11371_v23  ;;  %9632 = vmatprep.mubr.f32.mxu1 %v10285_v63 }
 0x2a7   :  { %9596 = vmatpush3.msra.mxu0 %v11371_v23  ;;  %9670 = vmatprep.subr.mxu1 %v11155_v37 }
 0x2a8   :  { %9598 = vmatmul.mubr.f32.vlgmr.msra.gmra.mxu0 %v10386_v51  ;;  %9635 = vmatprep.subr.mxu0 %v11162_v32 }
 0x2a9   :  { %9633 = vmatmul.mubr.f32.vlgmr.msra.gmra.mxu1 %v10288_v0  ;;  %9636 = vmatpush3.msra.mxu0 %v11162_v32 }
 0x2aa   :  { %9671 = vmatpush3.msra.mxu1 %v11155_v37  ;;  %9637 = vmatprep.subr.mxu0 %v11186_v44 }
 0x2ab   :  { %9672 = vmatprep.subr.mxu1 %v11164_v9  ;;  %9638 = vmatpush3.msra.mxu0 %v11186_v44 }
 0x2ac   :  { %9673 = vmatpush3.msra.mxu1 %v11164_v9  ;;  %9639 = vmatprep.subr.mxu0 %v11202_v33 }
 0x2ad   :  { %9674 = vmatprep.subr.mxu1 %v11180_v27  ;;  %9640 = vmatpush3.msra.mxu0 %v11202_v33 }
 0x2ae   :  { %9675 = vmatpush3.msra.mxu1 %v11180_v27  ;;  %9641 = vmatprep.subr.mxu0 %v11218_v47 }
 0x2af   :  { %9676 = vmatprep.subr.mxu1 %v11194_v55  ;;  %9642 = vmatpush3.msra.mxu0 %v11218_v47 }
 0x2b0   :  { %9677 = vmatpush3.msra.mxu1 %v11194_v55  ;;  %9643 = vmatprep.subr.mxu0 %v11234_v26 }
 0x2b1   :  { %9678 = vmatprep.subr.mxu1 %v11204_v53  ;;  %9644 = vmatpush3.msra.mxu0 %v11234_v26 }
 0x2b2   :  { %9679 = vmatpush3.msra.mxu1 %v11204_v53  ;;  %9645 = vmatprep.subr.mxu0 %v11249_v57 }
 0x2b3   :  { %9680 = vmatprep.subr.mxu1 %v11220_v49  ;;  %9646 = vmatpush3.msra.mxu0 %v11249_v57 }
 0x2b4   :  { %9681 = vmatpush3.msra.mxu1 %v11220_v49  ;;  %9647 = vmatprep.subr.mxu0 %v11253_v62 }
 0x2b5   :  { %9682 = vmatprep.subr.mxu1 %v11226_v39  ;;  %9648 = vmatpush3.msra.mxu0 %v11253_v62 }
 0x2b6   :  { %9683 = vmatpush3.msra.mxu1 %v11226_v39  ;;  %9649 = vmatprep.subr.mxu0 %v11269_v1 }
 0x2b7   :  { %9684 = vmatprep.subr.mxu1 %v11239_v12  ;;  %9650 = vmatpush3.msra.mxu0 %v11269_v1 }
 0x2b8   :  { %9685 = vmatpush3.msra.mxu1 %v11239_v12  ;;  %9651 = vmatprep.subr.mxu0 %v11295_v8 }
 0x2b9   :  { %9686 = vmatprep.subr.mxu1 %v11264_v25  ;;  %9652 = vmatpush3.msra.mxu0 %v11295_v8  ;;  %v14789_v8 = vld [vmem:[#allocation11_spill] sm:$0xff] }
 0x2ba   :  { %9687 = vmatpush3.msra.mxu1 %v11264_v25  ;;  %9653 = vmatprep.subr.mxu0 %v11311_v59 }
 0x2bb   :  { %9688 = vmatprep.subr.mxu1 %v11280_v54  ;;  %9654 = vmatpush3.msra.mxu0 %v11311_v59 }
 0x2bc   :  { %9689 = vmatpush3.msra.mxu1 %v11280_v54  ;;  %9655 = vmatprep.subr.mxu0 %v11327_v46 }
 0x2bd   :  { %9690 = vmatprep.subr.mxu1 %v11297_v10  ;;  %9656 = vmatpush3.msra.mxu0 %v11327_v46 }
 0x2be   :  { %9691 = vmatpush3.msra.mxu1 %v11297_v10  ;;  %9657 = vmatprep.subr.mxu0 %v11342_v7 }
 0x2bf   :  { %9692 = vmatprep.subr.mxu1 %v11313_v60  ;;  %9658 = vmatpush3.msra.mxu0 %v11342_v7 }
 0x2c0   :  { %9693 = vmatpush3.msra.mxu1 %v11313_v60  ;;  %9659 = vmatprep.subr.mxu0 %v11357_v61 }
 0x2c1   :  { %9694 = vmatprep.subr.mxu1 %v11329_v15  ;;  %9660 = vmatpush3.msra.mxu0 %v11357_v61 }
 0x2c2   :  { %9695 = vmatpush3.msra.mxu1 %v11329_v15  ;;  %9661 = vmatprep.subr.mxu0 %v11369_v24 }
 0x2c3   :  { %9696 = vmatprep.subr.mxu1 %v11344_v28  ;;  %9662 = vmatpush3.msra.mxu0 %v11369_v24  ;;  %v14785_v24 = vld [vmem:[#allocation4_spill] sm:$0xff] }
 0x2c4   :  { %9697 = vmatpush3.msra.mxu1 %v11344_v28  ;;  %9663 = vmatprep.subr.mxu0 %v11381_v21 }
 0x2c5   :  { %9698 = vmatprep.subr.mxu1 %v11359_v42  ;;  %9664 = vmatpush3.msra.mxu0 %v11381_v21  ;;  %v14782_v21 = vld [vmem:[#allocation3_spill] sm:$0xff] }
 0x2c6   :  { %9699 = vmatpush3.msra.mxu1 %v11359_v42  ;;  %9665 = vmatprep.subr.mxu0 %v11391_v18 }
 0x2c7   :  { %9700 = vmatprep.subr.mxu1 %v11371_v23  ;;  %9666 = vmatpush3.msra.mxu0 %v11391_v18  ;;  %v14780_v18 = vld [vmem:[#allocation15_spill] sm:$0xff] }
 0x2c8   :  { %9667 = vmatprep.mubr.f32.mxu0 %v10315_v31  ;;  %9701 = vmatpush3.msra.mxu1 %v11371_v23 }
 0x2c9   :  { %9668 = vmatmul.mubr.f32.vlgmr.msra.gmra.mxu0 %v10324_v34  ;;  %9702 = vmatprep.mubr.f32.mxu1 %v10342_v50 }
 0x2ca   :  { %9705 = vmatprep.subr.mxu0 %v11183_v36  ;;  %9740 = vmatprep.subr.mxu1 %v11155_v37 }
 0x2cb   :  { %9703 = vmatmul.mubr.f32.vlgmr.msra.gmra.mxu1 %v10349_v52  ;;  %9706 = vmatpush3.msra.mxu0 %v11183_v36 }
 0x2cc   :  { %9741 = vmatpush3.msra.mxu1 %v11155_v37  ;;  %9707 = vmatprep.subr.mxu0 %v11214_v29 }
 0x2cd   :  { %9742 = vmatprep.subr.mxu1 %v11164_v9  ;;  %9708 = vmatpush3.msra.mxu0 %v11214_v29 }
 0x2ce   :  { %9743 = vmatpush3.msra.mxu1 %v11164_v9  ;;  %9709 = vmatprep.subr.mxu0 %v11231_v20 }
 0x2cf   :  { %9744 = vmatprep.subr.mxu1 %v11180_v27  ;;  %9710 = vmatpush3.msra.mxu0 %v11231_v20 }
 0x2d0   :  { %9745 = vmatpush3.msra.mxu1 %v11180_v27  ;;  %9711 = vmatprep.subr.mxu0 %v11246_v17 }
 0x2d1   :  { %9746 = vmatprep.subr.mxu1 %v11194_v55  ;;  %9712 = vmatpush3.msra.mxu0 %v11246_v17 }
 0x2d2   :  { %9747 = vmatpush3.msra.mxu1 %v11194_v55  ;;  %9713 = vmatprep.subr.mxu0 %v11262_v11 }
 0x2d3   :  { %9748 = vmatprep.subr.mxu1 %v11204_v53  ;;  %9714 = vmatpush3.msra.mxu0 %v11262_v11  ;;  %v14786_v11 = vld [vmem:[#allocation13_spill] sm:$0xff] }
 0x2d4   :  { %9749 = vmatpush3.msra.mxu1 %v11204_v53  ;;  %9715 = vmatprep.subr.mxu0 %v11278_v48 }
 0x2d5   :  { %9750 = vmatprep.subr.mxu1 %v11220_v49  ;;  %9716 = vmatpush3.msra.mxu0 %v11278_v48 }
 0x2d6   :  { %9751 = vmatpush3.msra.mxu1 %v11220_v49  ;;  %9717 = vmatprep.subr.mxu0 %v11285_v19 }
 0x2d7   :  { %9752 = vmatprep.subr.mxu1 %v11226_v39  ;;  %9718 = vmatpush3.msra.mxu0 %v11285_v19 }
 0x2d8   :  { %9753 = vmatpush3.msra.mxu1 %v11226_v39  ;;  %9719 = vmatprep.subr.mxu0 %v11302_v6 }
 0x2d9   :  { %9754 = vmatprep.subr.mxu1 %v11239_v12  ;;  %9720 = vmatpush3.msra.mxu0 %v11302_v6 }
 0x2da   :  { %9755 = vmatpush3.msra.mxu1 %v11239_v12  ;;  %9721 = vmatprep.subr.mxu0 %v11324_v38 }
 0x2db   :  { %9756 = vmatprep.subr.mxu1 %v11264_v25  ;;  %9722 = vmatpush3.msra.mxu0 %v11324_v38 }
 0x2dc   :  { %9757 = vmatpush3.msra.mxu1 %v11264_v25  ;;  %9723 = vmatprep.subr.mxu0 %v11339_v3  ;;  %v14787_v25 = vld [vmem:[#allocation14_spill] sm:$0xff] }
 0x2dd   :  { %9758 = vmatprep.subr.mxu1 %v11280_v54  ;;  %9724 = vmatpush3.msra.mxu0 %v11339_v3 }
 0x2de   :  { %9759 = vmatpush3.msra.mxu1 %v11280_v54  ;;  %9725 = vmatprep.subr.mxu0 %v11354_v4  ;;  %v14788_v54 = vld [vmem:[#allocation12_spill] sm:$0xff] }
 0x2df   :  { %9760 = vmatprep.subr.mxu1 %v11297_v10  ;;  %9726 = vmatpush3.msra.mxu0 %v11354_v4 }
 0x2e0   :  { %9761 = vmatpush3.msra.mxu1 %v11297_v10  ;;  %9727 = vmatprep.subr.mxu0 %v11366_v13 }
 0x2e1   :  { %9762 = vmatprep.subr.mxu1 %v11313_v60  ;;  %9728 = vmatpush3.msra.mxu0 %v11366_v13 }
 0x2e2   :  { %9763 = vmatpush3.msra.mxu1 %v11313_v60  ;;  %9729 = vmatprep.subr.mxu0 %v11378_v22 }
 0x2e3   :  { %9764 = vmatprep.subr.mxu1 %v11329_v15  ;;  %9730 = vmatpush3.msra.mxu0 %v11378_v22  ;;  %v14783_v22 = vld [vmem:[#allocation10_spill] sm:$0xff] }
 0x2e4   :  { %9765 = vmatpush3.msra.mxu1 %v11329_v15  ;;  %9731 = vmatprep.subr.mxu0 %v14780_v18  ;;  %v14781_v15 = vld [vmem:[#allocation9_spill] sm:$0xff] }
 0x2e5   :  { %9766 = vmatprep.subr.mxu1 %v11344_v28  ;;  %9732 = vmatpush3.msra.mxu0 %v14780_v18 }
 0x2e6   :  { %9767 = vmatpush3.msra.mxu1 %v11344_v28  ;;  %9733 = vmatprep.subr.mxu0 %v11398_v58 }
 0x2e7   :  { %9768 = vmatprep.subr.mxu1 %v11359_v42  ;;  %9734 = vmatpush3.msra.mxu0 %v11398_v58 }
 0x2e8   :  { %9769 = vmatpush3.msra.mxu1 %v11359_v42  ;;  %9735 = vmatprep.subr.mxu0 %v11405_v16 }
 0x2e9   :  { %9770 = vmatprep.subr.mxu1 %v11371_v23  ;;  %9736 = vmatpush3.msra.mxu0 %v11405_v16  ;;  %v14784_v16 = vld [vmem:[#allocation5_spill] sm:$0xff] }
 0x2ea   :  { %9737 = vmatprep.mubr.f32.mxu0 %v10285_v63  ;;  %9771 = vmatpush3.msra.mxu1 %v11371_v23 }
 0x2eb   :  { %9772 = vmatprep.mubr.f32.mxu1 %v10285_v63  ;;  %9738 = vmatmul.mubr.f32.vlgmr.msra.gmra.mxu0 %v10288_v0 }
 0x2ec   :  { %9773 = vmatmul.mubr.f32.vlgmr.msra.gmra.mxu1 %v10288_v0  ;;  %9782 = vmatprep.subr.mxu1 %v14781_v15 }
 0x2ed   :  { %9783 = vmatpush3.msra.mxu1 %v14781_v15  ;;  %9775 = vmatprep.subr.mxu0 %v14782_v21 }
 0x2ee   :  { %9784 = vmatprep.subr.mxu1 %v14783_v22  ;;  %9776 = vmatpush3.msra.mxu0 %v14782_v21 }
 0x2ef   :  { %9785 = vmatpush3.msra.mxu1 %v14783_v22  ;;  %9777 = vmatprep.subr.mxu0 %v14784_v16 }
 0x2f0   :  { %9796 = vmatprep.subr.mxu1 %v14782_v21  ;;  %9778 = vmatpush3.msra.mxu0 %v14784_v16 }
 0x2f1   :  { %9789 = vmatprep.subr.mxu0 %v14785_v24 }
 0x338   :  { %v9536_v13 = vpop.f32.mrf.mxu1 }
 0x33a   :  { %v2213_v42 = vpop.f32.mrf.mxu1 }
 0x33c   :  { %v9550_v4 = vpop.f32.mrf.mxu1 }
 0x33e   :  { %v2377_v27 = vpop.f32.mrf.mxu1 }
 0x340   :  { %v9529_v37 = vpop.f32.mrf.mxu0  ;;  %v9564_v47 = vpop.f32.mrf.mxu1 }
 0x341   :  { %v2220_v9 = vadd.f32 %v9536_v13, %v9529_v37  ;;  %v11599_v37 = vsub.f32 %v3814_v41, %v11592_v45  ;;  %v3806_v41 = vld [vmem:[%s14496_s0 + $0x278] sm:$0xff] }
 0x342   :  { %v2122_v32 = vpop.f32.mrf.mxu0  ;;  %v2541_v57 = vpop.f32.mrf.mxu1 }
 0x343   :  { %v2214_v44 = vadd.f32 %v2213_v42, %v2122_v32  ;;  %v11601_v32 = vand.u32 4294901760, %v3813_v14 }
 0x344   :  { %v9543_v36 = vpop.f32.mrf.mxu0 }
 0x345   :  { %v2303_v55 = vadd.f32 %v9543_v36, %v2220_v9  ;;  %v3812_v9 = vld [vmem:[%s14496_s0 + $0x2a8] sm:$0xff] }
 0x346   :  { %v2295_v33 = vpop.f32.mrf.mxu0 }
 0x347   :  { %v2296_v53 = vadd.f32 %v2295_v33, %v2214_v44  ;;  %v2386_v29 = vadd.f32 %v9550_v4, %v2303_v55  ;;  %v3811_v44 = vld [vmem:[%s14496_s0 + $0x2a0] sm:$0xff] }
 0x348   :  { %v9557_v49 = vpop.f32.mrf.mxu0 }
 0x349   :  { %v2469_v39 = vadd.f32 %v9557_v49, %v2386_v29  ;;  %v2378_v20 = vadd.f32 %v2377_v27, %v2296_v53  ;;  %v11617_v53 = vand.u32 4294901760, %v3812_v9  ;;  %v11620_v29 = vand.u32 4294901760, %v11599_v37  ;;  %v3810_v49 = vld [vmem:[%s14496_s0 + $0x298] sm:$0xff] }
 0x34a   :  { %v2462_v26 = vpop.f32.mrf.mxu0 }
 0x34b   :  { %v2548_v12 = vadd.f32 %v9564_v47, %v2469_v39  ;;  %v2463_v17 = vadd.f32 %v2462_v26, %v2378_v20  ;;  %v11623_v47 = vsub.f32 %v3813_v14, %v11601_v32  ;;  %v11631_v26 = vand.u32 4294901760, %v3811_v44 }
 0x34d   :  { %2552 = vst.msk [vmem:[#allocation2 + $0xc8] sm:$0xf] %vm1323_vm3, %v2548_v12  ;;  %v2542_v62 = vadd.f32 %v2541_v57, %v2463_v17  ;;  %2565 = vrot.lane.b32.xlu0 %v2548_v12, %s10082_s26  ;;  %v11639_v57 = vsub.f32 %v3812_v9, %v11617_v53 }
 0x34f   :  { %2551 = vst.msk [vmem:[#allocation2 + $0xc0] sm:$0xff] %vm32_vm2, %v2542_v62  ;;  %2563 = vrot.lane.b32.xlu1 %v2542_v62, %s10082_s26 }
 0x351   :  { %2557 = vrot.lane.b32.xlu0 %v2548_v12, %s10081_s19  ;;  %v3809_v12 = vld [vmem:[%s14496_s0 + $0x290] sm:$0xff] }
 0x353   :  { %2555 = vrot.lane.b32.xlu1 %v2542_v62, %s10081_s19  ;;  %v11641_v62 = vand.u32 4294901760, %v3810_v49 }
 0x355   :  { %1337 = vrot.lane.b32.xlu0 %v14786_v11, %s10082_s26  ;;  %v3808_v11 = vld [vmem:[%s14496_s0 + $0x288] sm:$0xff] }
 0x357   :  { %1335 = vrot.lane.b32.xlu1 %v14787_v25, %s10082_s26 }
 0x368   :  { %v9599_v28 = vpop.f32.mrf.mxu0 }
 0x369   :  { %v9634_v1 = vpop.f32.mrf.mxu1  ;;  %v2685_v3 = vadd.f32 %v9599_v28, %v14788_v54  ;;  %v3920_v28 = vsub.f32 %v11599_v37, %v11620_v29 }
 0x36a   :  { %v2674_v48 = vpop.f32.mrf.mxu0 }
 0x36b   :  { %v2675_v10 = vadd.f32 %v2674_v48, %v14789_v8  ;;  %v2835_v6 = vpop.f32.mrf.mxu1  ;;  %v2842_v59 = vadd.f32 %v9634_v1, %v2685_v3  ;;  %v11651_v1 = vand.u32 4294901760, %v11623_v47  ;;  %v11655_v3 = vsub.f32 %v3811_v44, %v11631_v26 }
 0x36d   :  { %v2836_v46 = vadd.f32 %v2835_v6, %v2675_v10  ;;  %v3807_v10 = vld [vmem:[%s14496_s0 + $0x280] sm:$0xff]  ;;  %v11663_v6 = vand.u32 4294901760, %v3808_v11 }
 0x389   :  { %v9669_v19 = vpop.f32.mrf.mxu0 }
 0x38a   :  { %v2953_v7 = vadd.f32 %v9669_v19, %v2842_v59  ;;  %v11657_v19 = vand.u32 4294901760, %v3809_v12 }
 0x38b   :  { %v9704_v60 = vpop.f32.mrf.mxu1  ;;  %v2945_v38 = vpop.f32.mrf.mxu0 }
 0x38c   :  { %v2946_v61 = vadd.f32 %v2945_v38, %v2836_v46  ;;  %v3050_v5 = vadd.f32 %v9704_v60, %v2953_v7  ;;  %v11668_v60 = vand.u32 4294901760, %v11639_v57  ;;  %v11671_v38 = vsub.f32 %v3810_v49, %v11641_v62 }
 0x38d   :  { %v3041_v23 = vpop.f32.mrf.mxu1  ;;  %v3921_v7 = vand.u32 4294901760, %v3920_v28 }
 0x38e   :  { %v3042_v30 = vadd.f32 %v3041_v23, %v2946_v61  ;;  %v3927_v61 = vsub.f32 %v11623_v47, %v11651_v1  ;;  %v11676_v23 = vand.u32 4294901760, %v3807_v10  ;;  %v11699_v14 = vand.u32 4294901760, %v11671_v38 }
 0x3ab   :  { %v9739_v58 = vpop.f32.mrf.mxu0 }
 0x3ac   :  { %v3175_v35 = vadd.f32 %v9739_v58, %v3050_v5  ;;  %v9774_v2 = vpop.f32.mrf.mxu1  ;;  %v11683_v5 = vand.u32 4294901760, %v11655_v3  ;;  %v11686_v58 = vsub.f32 %v3809_v12, %v11657_v19  ;;  %v3803_v12 = vld [vmem:[%s14496_s0 + $0x260] sm:$0xff] }
 0x3ad   :  { %v3168_v56 = vpop.f32.mrf.mxu0 }
 0x3ae   :  { %v3268_v40 = vadd.f32 %v9774_v2, %v3175_v35  ;;  %v3169_v18 = vadd.f32 %v3168_v56, %v3042_v30  ;;  %v3261_v13 = vpop.f32.mrf.mxu1  ;;  %v11690_v30 = vsub.f32 %v3808_v11, %v11663_v6  ;;  %v3805_v35 = vld [vmem:[%s14496_s0 + $0x270] sm:$0xff]  ;;  %v3934_v56 = vsub.f32 %v11639_v57, %v11668_v60 }
 0x3af   :  { %v11715_v44 = vand.u32 4294901760, %v11686_v58  ;;  %v11717_v49 = vand.u32 4294901760, %v3805_v35 }
 0x3b0   :  { %v3275_v42 = vsel %vm809_vm1, %v3268_v40, 0  ;;  %v3262_v4 = vadd.f32 %v3261_v13, %v3169_v18  ;;  %v11701_v40 = vand.u32 4294901760, %v3806_v41  ;;  %v14790_v18 = vld [vmem:[#allocation7_spill] sm:$0xff]  ;;  %v3928_v13 = vand.u32 4294901760, %v3927_v61 }
 0x3b1   :  { %v11606_v27 = vand.u32 4294901760, %v3275_v42  ;;  %v3935_v11 = vand.u32 4294901760, %v3934_v56  ;;  %v11749_v61 = vsub.f32 %v3805_v35, %v11717_v49  ;;  %v3801_v56 = vld [vmem:[%s14496_s0 + $0x250] sm:$0xff] }
 0x3b2   :  { %v3272_v36 = vsel %vm809_vm1, %v3262_v4, 0  ;;  %v3804_v4 = vld [vmem:[%s14496_s0 + $0x268] sm:$0xff] }
 0x3b3   :  { %v11613_v55 = vsub.f32 %v3275_v42, %v11606_v27  ;;  %v11615_v33 = vand.u32 4294901760, %v3272_v36  ;;  %v11706_v42 = vsub.f32 %v3807_v10, %v11676_v23  ;;  %v11735_v28 = vand.u32 4294901760, %v3804_v4 }
 0x3b5   :  { %v3345_v39 = vsub.f32 %v3272_v36, %v11615_v33  ;;  %9786 = vmatprep.mubr.f32.mxu1 %v11615_v33  ;;  %v3356_v20 = vand.u32 4294901760, %v11613_v55  ;;  %v3941_v36 = vsub.f32 %v11655_v3, %v11683_v5  ;;  %v11740_v10 = vand.u32 4294901760, %v11706_v42 }
 0x3b6   :  { %9787 = vmatmul.mubr.f32.vlgmr.msra.gmra.mxu1 %v11606_v27 }
 0x3b7   :  { %9797 = vmatpush3.msra.mxu1 %v14782_v21  ;;  %v3346_v17 = vand.u32 4294901760, %v3345_v39  ;;  %v3357_v25 = vsub.f32 %v11613_v55, %v3356_v20 }
 0x3b8   :  { %9798 = vmatprep.subr.mxu1 %v14784_v16 }
 0x3b9   :  { %9799 = vmatpush3.msra.mxu1 %v14784_v16  ;;  %9800 = vmatprep.mubr.f32.mxu1 %v3346_v17  ;;  %v3347_v48 = vsub.f32 %v3345_v39, %v3346_v17  ;;  %v3358_v46 = vand.u32 4294901760, %v3357_v25  ;;  %v3948_v25 = vsub.f32 %v11671_v38, %v11699_v14 }
 0x3ba   :  { %9801 = vmatmul.mubr.f32.vlgmr.msra.gmra.mxu1 %v3356_v20  ;;  %9810 = vmatprep.subr.mxu1 %v14782_v21  ;;  %v11723_v20 = vand.u32 4294901760, %v11690_v30 }
 0x3bb   :  { %9811 = vmatpush3.msra.mxu1 %v14782_v21  ;;  %9814 = vmatprep.mubr.f32.mxu1 %v11615_v33  ;;  %v3348_v59 = vand.u32 4294901760, %v3347_v48  ;;  %v14792_v48 = vld [vmem:[#allocation8_spill] sm:$0xff] }
 0x3bc   :  { %9812 = vmatprep.subr.mxu1 %v14784_v16 }
 0x3bd   :  { %9779 = vmatprep.mubr.f32.mxu0 %v3348_v59  ;;  %9813 = vmatpush3.msra.mxu1 %v14784_v16 }
 0x3be   :  { %9780 = vmatmul.mubr.f32.vlgmr.msra.gmra.mxu0 %v3358_v46  ;;  %9815 = vmatmul.mubr.f32.vlgmr.msra.gmra.mxu1 %v11606_v27  ;;  %v3942_v46 = vand.u32 4294901760, %v3941_v36  ;;  %v11766_v36 = vsub.f32 %v3804_v4, %v11735_v28 }
 0x3bf   :  { %9790 = vmatpush3.msra.mxu0 %v14785_v24  ;;  %9793 = vmatprep.mubr.f32.mxu0 %v3345_v39  ;;  %v2566_v2 = vpop.permute.xlu0 %2565  ;;  %v14791_v39 = vld [vmem:[#allocation6_spill] sm:$0xff] }
 0x3c0   :  { %9791 = vmatprep.subr.mxu0 %v14790_v18  ;;  %2570 = vst.msk [vmem:[#allocation2 + $0xe8] sm:$0xf] %vm1323_vm3, %v2566_v2  ;;  %9852 = vmatprep.subr.mxu1 %v3921_v7  ;;  %v3962_v2 = vsub.f32 %v11690_v30, %v11723_v20 }
 0x3c1   :  { %9792 = vmatpush3.msra.mxu0 %v14790_v18  ;;  %v2564_v9 = vpop.permute.xlu1 %2563  ;;  %9853 = vmatpush3.msra.mxu1 %v3921_v7  ;;  %v3955_v7 = vsub.f32 %v11686_v58, %v11715_v44  ;;  %v3799_v18 = vld [vmem:[%s14496_s0 + $0x240] sm:$0xff] }
 0x3c2   :  { %9803 = vmatprep.subr.mxu0 %v14791_v39  ;;  %9794 = vmatmul.mubr.f32.vlgmr.msra.gmra.mxu0 %v11613_v55  ;;  %2569 = vst.msk [vmem:[#allocation2 + $0xe0] sm:$0xff] %vm32_vm2, %v2564_v9  ;;  %v11733_v55 = vsub.f32 %v3806_v41, %v11701_v40  ;;  %v11751_v41 = vand.u32 4294901760, %v3803_v12 }
 0x3c3   :  { %9804 = vmatpush3.msra.mxu0 %v14791_v39  ;;  %9807 = vmatprep.mubr.f32.mxu0 %v11615_v33  ;;  %v2558_v17 = vpop.permute.xlu0 %2557  ;;  %v3802_v33 = vld [vmem:[%s14496_s0 + $0x258] sm:$0xff]  ;;  %v3956_v4 = vand.u32 4294901760, %v3955_v7 }
 0x3c4   :  { %9805 = vmatprep.subr.mxu0 %v14792_v48  ;;  %2562 = vst.msk [vmem:[#allocation2 + $0xd8] sm:$0xf] %vm1323_vm3, %v2558_v17  ;;  %9854 = vmatprep.subr.mxu1 %v3928_v13  ;;  %v11763_v9 = vand.u32 4294901760, %v11733_v55  ;;  %v3969_v17 = vsub.f32 %v11706_v42, %v11740_v10  ;;  %v11782_v39 = vsub.f32 %v3803_v12, %v11751_v41  ;;  %v11795_v12 = vand.u32 4294901760, %v11766_v36 }
 0x3c5   :  { %9806 = vmatpush3.msra.mxu0 %v14792_v48  ;;  %9855 = vmatpush3.msra.mxu1 %v3928_v13  ;;  %v2556_v59 = vpop.permute.xlu1 %2555  ;;  %v3949_v13 = vand.u32 4294901760, %v3948_v25  ;;  %v3800_v25 = vld [vmem:[%s14496_s0 + $0x248] sm:$0xff]  ;;  %v11779_v48 = vand.u32 4294901760, %v11749_v61 }
 0x3c6   :  { %9817 = vmatprep.subr.mxu0 %v11592_v45  ;;  %9808 = vmatmul.mubr.f32.vlgmr.msra.gmra.mxu0 %v11606_v27  ;;  %2561 = vst.msk [vmem:[#allocation2 + $0xd0] sm:$0xff] %vm32_vm2, %v2556_v59  ;;  %v11768_v27 = vand.u32 4294901760, %v3802_v33  ;;  %v3976_v7 = vsub.f32 %v11733_v55, %v11763_v9  ;;  %v11807_v54 = vand.u32 4294901760, %v11782_v39 }
 0x3c7   :  { %9818 = vmatpush3.msra.mxu0 %v11592_v45  ;;  %9856 = vmatprep.subr.mxu1 %v3935_v11  ;;  %v1338_v35 = vpop.permute.xlu0 %1337 }
 0x3c8   :  { %9819 = vmatprep.subr.mxu0 %v11601_v32  ;;  %9857 = vmatpush3.msra.mxu1 %v3935_v11  ;;  %1342 = vst.msk [vmem:[#allocation2 + $0x88] sm:$0xf] %vm1323_vm3, %v1338_v35  ;;  %v11784_v11 = vand.u32 4294901760, %v3801_v56  ;;  %v3963_v35 = vand.u32 4294901760, %v3962_v2  ;;  %v11798_v8 = vsub.f32 %v3802_v33, %v11768_v27  ;;  %v3970_v2 = vand.u32 4294901760, %v3969_v17 }
 0x3c9   :  { %9820 = vmatpush3.msra.mxu0 %v11601_v32  ;;  %9858 = vmatprep.subr.mxu1 %v3942_v46  ;;  %v1336_v59 = vpop.permute.xlu1 %1335  ;;  %v11812_v33 = vand.u32 4294901760, %v3799_v18  ;;  %v3990_v17 = vsub.f32 %v11766_v36, %v11795_v12 }
 0x3ca   :  { %9821 = vmatprep.subr.mxu0 %v11617_v53  ;;  %9859 = vmatpush3.msra.mxu1 %v3942_v46  ;;  %1341 = vst.msk [vmem:[#allocation2 + $0x80] sm:$0xff] %vm32_vm2, %v1336_v59  ;;  %v11800_v46 = vand.u32 4294901760, %v3800_v25  ;;  %v3983_v59 = vsub.f32 %v11749_v61, %v11779_v48  ;;  %v11810_v24 = vsub.f32 %v3801_v56, %v11784_v11  ;;  %v11819_v16 = vand.u32 4294901760, %v11798_v8 }
 0x3cb   :  { %9822 = vmatpush3.msra.mxu0 %v11617_v53  ;;  %9860 = vmatprep.subr.mxu1 %v3949_v13  ;;  %v11832_v21 = vsub.f32 %v3799_v18, %v11812_v33 }
 0x3cc   :  { %9823 = vmatprep.subr.mxu0 %v11631_v26  ;;  %9861 = vmatpush3.msra.mxu1 %v3949_v13  ;;  %v3977_v13 = vand.u32 4294901760, %v3976_v7  ;;  %v11822_v22 = vsub.f32 %v3800_v25, %v11800_v46  ;;  %v3984_v56 = vand.u32 4294901760, %v3983_v59  ;;  %v11829_v7 = vand.u32 4294901760, %v11810_v24 }
 0x3cd   :  { %9824 = vmatpush3.msra.mxu0 %v11631_v26  ;;  %9862 = vmatprep.subr.mxu1 %v3956_v4  ;;  %v3991_v25 = vand.u32 4294901760, %v3990_v17  ;;  %v11846_v15 = vand.u32 4294901760, %v11832_v21 }
 0x3ce   :  { %9825 = vmatprep.subr.mxu0 %v11641_v62  ;;  %9863 = vmatpush3.msra.mxu1 %v3956_v4  ;;  %v3997_v4 = vsub.f32 %v11782_v39, %v11807_v54  ;;  %14793 = vst [vmem:[#allocation15_spill] sm:$0xff] %v11829_v7  ;;  %v11839_v59 = vand.u32 4294901760, %v11822_v22 }
 0x3cf   :  { %9826 = vmatpush3.msra.mxu0 %v11641_v62  ;;  %9864 = vmatprep.subr.mxu1 %v3963_v35 }
 0x3d0   :  { %9827 = vmatprep.subr.mxu0 %v11657_v19  ;;  %9865 = vmatpush3.msra.mxu1 %v3963_v35  ;;  %v4004_v35 = vsub.f32 %v11798_v8, %v11819_v16  ;;  %v3998_v18 = vand.u32 4294901760, %v3997_v4 }
 0x3d1   :  { %9828 = vmatpush3.msra.mxu0 %v11657_v19  ;;  %9866 = vmatprep.subr.mxu1 %v3970_v2 }
 0x3d2   :  { %9829 = vmatprep.subr.mxu0 %v11663_v6  ;;  %9867 = vmatpush3.msra.mxu1 %v3970_v2  ;;  %v4011_v2 = vsub.f32 %v11810_v24, %v11829_v7  ;;  %v4005_v17 = vand.u32 4294901760, %v4004_v35  ;;  %v4025_v7 = vsub.f32 %v11832_v21, %v11846_v15 }
 0x3d3   :  { %9830 = vmatpush3.msra.mxu0 %v11663_v6  ;;  %9868 = vmatprep.subr.mxu1 %v3977_v13 }
 0x3d4   :  { %9831 = vmatprep.subr.mxu0 %v11676_v23  ;;  %9869 = vmatpush3.msra.mxu1 %v3977_v13  ;;  %v4018_v13 = vsub.f32 %v11822_v22, %v11839_v59  ;;  %v4012_v4 = vand.u32 4294901760, %v4011_v2 }
 0x3d5   :  { %9832 = vmatpush3.msra.mxu0 %v11676_v23  ;;  %9870 = vmatprep.subr.mxu1 %v3984_v56 }
 0x3d6   :  { %9833 = vmatprep.subr.mxu0 %v11701_v40  ;;  %9871 = vmatpush3.msra.mxu1 %v3984_v56  ;;  %v4019_v56 = vand.u32 4294901760, %v4018_v13 }
 0x3d7   :  { %9834 = vmatpush3.msra.mxu0 %v11701_v40  ;;  %9872 = vmatprep.subr.mxu1 %v3991_v25 }
 0x3d8   :  { %9835 = vmatprep.subr.mxu0 %v11717_v49  ;;  %9873 = vmatpush3.msra.mxu1 %v3991_v25  ;;  %v4026_v25 = vand.u32 4294901760, %v4025_v7 }
 0x3d9   :  { %9836 = vmatpush3.msra.mxu0 %v11717_v49  ;;  %9874 = vmatprep.subr.mxu1 %v3998_v18 }
 0x3da   :  { %9837 = vmatprep.subr.mxu0 %v11735_v28  ;;  %9875 = vmatpush3.msra.mxu1 %v3998_v18 }
 0x3db   :  { %9838 = vmatpush3.msra.mxu0 %v11735_v28  ;;  %9876 = vmatprep.subr.mxu1 %v4005_v17 }
 0x3dc   :  { %9839 = vmatprep.subr.mxu0 %v11751_v41  ;;  %9877 = vmatpush3.msra.mxu1 %v4005_v17 }
 0x3dd   :  { %9840 = vmatpush3.msra.mxu0 %v11751_v41  ;;  %9878 = vmatprep.subr.mxu1 %v4012_v4 }
 0x3de   :  { %9841 = vmatprep.subr.mxu0 %v11768_v27  ;;  %9879 = vmatpush3.msra.mxu1 %v4012_v4  ;;  %v5039_v4 = vld [vmem:[#allocation2 + $0x60] sm:$0xff] }
 0x3df   :  { %9842 = vmatpush3.msra.mxu0 %v11768_v27  ;;  %9880 = vmatprep.subr.mxu1 %v4019_v56 }
 0x3e0   :  { %9843 = vmatprep.subr.mxu0 %v11784_v11  ;;  %9881 = vmatpush3.msra.mxu1 %v4019_v56 }
 0x3e1   :  { %9844 = vmatpush3.msra.mxu0 %v11784_v11  ;;  %9882 = vmatprep.subr.mxu1 %v4026_v25 }
 0x3e2   :  { %9845 = vmatprep.subr.mxu0 %v11800_v46  ;;  %9849 = vmatprep.mubr.f32.mxu0 %v10383_v43 }
 0x3e3   :  { %9846 = vmatpush3.msra.mxu0 %v11800_v46  ;;  %9883 = vmatpush3.msra.mxu1 %v4026_v25 }
 0x3e4   :  { %9847 = vmatprep.subr.mxu0 %v11812_v33  ;;  %9884 = vmatprep.mubr.f32.mxu1 %v10285_v63 }
 0x3e5   :  { %9848 = vmatpush3.msra.mxu0 %v11812_v33  ;;  %9922 = vmatprep.subr.mxu1 %v11592_v45 }
 0x3e6   :  { %9850 = vmatmul.mubr.f32.vlgmr.msra.gmra.mxu0 %v10386_v51  ;;  %9887 = vmatprep.subr.mxu0 %v11599_v37  ;;  %v14797_v51 = vld [vmem:[#allocation10_spill] sm:$0xff] }
 0x3e7   :  { %9885 = vmatmul.mubr.f32.vlgmr.msra.gmra.mxu1 %v10288_v0  ;;  %9888 = vmatpush3.msra.mxu0 %v11599_v37 }
 0x3e8   :  { %9923 = vmatpush3.msra.mxu1 %v11592_v45  ;;  %9889 = vmatprep.subr.mxu0 %v11623_v47 }
 0x3e9   :  { %9924 = vmatprep.subr.mxu1 %v11601_v32  ;;  %9890 = vmatpush3.msra.mxu0 %v11623_v47 }
 0x3ea   :  { %9925 = vmatpush3.msra.mxu1 %v11601_v32  ;;  %9891 = vmatprep.subr.mxu0 %v11639_v57 }
 0x3eb   :  { %9926 = vmatprep.subr.mxu1 %v11617_v53  ;;  %9892 = vmatpush3.msra.mxu0 %v11639_v57 }
 0x3ec   :  { %9927 = vmatpush3.msra.mxu1 %v11617_v53  ;;  %9893 = vmatprep.subr.mxu0 %v11655_v3 }
 0x3ed   :  { %9928 = vmatprep.subr.mxu1 %v11631_v26  ;;  %9894 = vmatpush3.msra.mxu0 %v11655_v3 }
 0x3ee   :  { %9929 = vmatpush3.msra.mxu1 %v11631_v26  ;;  %9895 = vmatprep.subr.mxu0 %v11671_v38 }
 0x3ef   :  { %9930 = vmatprep.subr.mxu1 %v11641_v62  ;;  %9896 = vmatpush3.msra.mxu0 %v11671_v38 }
 0x3f0   :  { %9931 = vmatpush3.msra.mxu1 %v11641_v62  ;;  %9897 = vmatprep.subr.mxu0 %v11686_v58 }
 0x3f1   :  { %9932 = vmatprep.subr.mxu1 %v11657_v19  ;;  %9898 = vmatpush3.msra.mxu0 %v11686_v58 }
 0x3f2   :  { %9933 = vmatpush3.msra.mxu1 %v11657_v19  ;;  %9899 = vmatprep.subr.mxu0 %v11690_v30 }
 0x3f3   :  { %9934 = vmatprep.subr.mxu1 %v11663_v6  ;;  %9900 = vmatpush3.msra.mxu0 %v11690_v30 }
 0x3f4   :  { %9935 = vmatpush3.msra.mxu1 %v11663_v6  ;;  %9901 = vmatprep.subr.mxu0 %v11706_v42 }
 0x3f5   :  { %9936 = vmatprep.subr.mxu1 %v11676_v23  ;;  %9902 = vmatpush3.msra.mxu0 %v11706_v42 }
 0x3f6   :  { %9937 = vmatpush3.msra.mxu1 %v11676_v23  ;;  %9903 = vmatprep.subr.mxu0 %v11733_v55 }
 0x3f7   :  { %9938 = vmatprep.subr.mxu1 %v11701_v40  ;;  %9904 = vmatpush3.msra.mxu0 %v11733_v55 }
 0x3f8   :  { %9939 = vmatpush3.msra.mxu1 %v11701_v40  ;;  %9905 = vmatprep.subr.mxu0 %v11749_v61 }
 0x3f9   :  { %9940 = vmatprep.subr.mxu1 %v11717_v49  ;;  %9906 = vmatpush3.msra.mxu0 %v11749_v61 }
 0x3fa   :  { %9941 = vmatpush3.msra.mxu1 %v11717_v49  ;;  %9907 = vmatprep.subr.mxu0 %v11766_v36 }
 0x3fb   :  { %9942 = vmatprep.subr.mxu1 %v11735_v28  ;;  %9908 = vmatpush3.msra.mxu0 %v11766_v36 }
 0x3fc   :  { %9943 = vmatpush3.msra.mxu1 %v11735_v28  ;;  %9909 = vmatprep.subr.mxu0 %v11782_v39 }
 0x3fd   :  { %9944 = vmatprep.subr.mxu1 %v11751_v41  ;;  %9910 = vmatpush3.msra.mxu0 %v11782_v39 }
 0x3fe   :  { %9945 = vmatpush3.msra.mxu1 %v11751_v41  ;;  %9911 = vmatprep.subr.mxu0 %v11798_v8 }
 0x3ff   :  { %9946 = vmatprep.subr.mxu1 %v11768_v27  ;;  %9912 = vmatpush3.msra.mxu0 %v11798_v8 }
 0x400   :  { %9947 = vmatpush3.msra.mxu1 %v11768_v27  ;;  %9913 = vmatprep.subr.mxu0 %v11810_v24 }
 0x401   :  { %9948 = vmatprep.subr.mxu1 %v11784_v11  ;;  %9914 = vmatpush3.msra.mxu0 %v11810_v24 }
 0x402   :  { %9949 = vmatpush3.msra.mxu1 %v11784_v11  ;;  %9915 = vmatprep.subr.mxu0 %v11822_v22 }
 0x403   :  { %9950 = vmatprep.subr.mxu1 %v11800_v46  ;;  %9916 = vmatpush3.msra.mxu0 %v11822_v22 }
 0x404   :  { %9951 = vmatpush3.msra.mxu1 %v11800_v46  ;;  %9917 = vmatprep.subr.mxu0 %v11832_v21 }
 0x405   :  { %9952 = vmatprep.subr.mxu1 %v11812_v33  ;;  %9918 = vmatpush3.msra.mxu0 %v11832_v21 }
 0x406   :  { %9919 = vmatprep.mubr.f32.mxu0 %v10315_v31  ;;  %9953 = vmatpush3.msra.mxu1 %v11812_v33  ;;  %v14794_v31 = vld [vmem:[#allocation15_spill] sm:$0xff] }
 0x407   :  { %9920 = vmatmul.mubr.f32.vlgmr.msra.gmra.mxu0 %v10324_v34  ;;  %9954 = vmatprep.mubr.f32.mxu1 %v10342_v50  ;;  %v14795_v34 = vld [vmem:[#allocation9_spill] sm:$0xff]  ;;  %v14796_v50 = vld [vmem:[#allocation3_spill] sm:$0xff] }
 0x408   :  { %9957 = vmatprep.subr.mxu0 %v11620_v29  ;;  %9992 = vmatprep.subr.mxu1 %v11592_v45 }
 0x409   :  { %9955 = vmatmul.mubr.f32.vlgmr.msra.gmra.mxu1 %v10349_v52  ;;  %9958 = vmatpush3.msra.mxu0 %v11620_v29  ;;  %v14798_v52 = vld [vmem:[#allocation5_spill] sm:$0xff] }
 0x40a   :  { %9993 = vmatpush3.msra.mxu1 %v11592_v45  ;;  %9959 = vmatprep.subr.mxu0 %v11651_v1 }
 0x40b   :  { %9994 = vmatprep.subr.mxu1 %v11601_v32  ;;  %9960 = vmatpush3.msra.mxu0 %v11651_v1 }
 0x40c   :  { %9995 = vmatpush3.msra.mxu1 %v11601_v32  ;;  %9961 = vmatprep.subr.mxu0 %v11668_v60 }
 0x40d   :  { %9996 = vmatprep.subr.mxu1 %v11617_v53  ;;  %9962 = vmatpush3.msra.mxu0 %v11668_v60 }
 0x40e   :  { %9997 = vmatpush3.msra.mxu1 %v11617_v53  ;;  %9963 = vmatprep.subr.mxu0 %v11683_v5 }
 0x40f   :  { %9998 = vmatprep.subr.mxu1 %v11631_v26  ;;  %9964 = vmatpush3.msra.mxu0 %v11683_v5  ;;  %v14800_v5 = vld [vmem:[#allocation12_spill] sm:$0xff] }
 0x410   :  { %9999 = vmatpush3.msra.mxu1 %v11631_v26  ;;  %9965 = vmatprep.subr.mxu0 %v11699_v14 }
 0x411   :  { %10000 = vmatprep.subr.mxu1 %v11641_v62  ;;  %9966 = vmatpush3.msra.mxu0 %v11699_v14  ;;  %v14801_v14 = vld [vmem:[#allocation11_spill] sm:$0xff] }
 0x412   :  { %10001 = vmatpush3.msra.mxu1 %v11641_v62  ;;  %9967 = vmatprep.subr.mxu0 %v11715_v44 }
 0x413   :  { %10002 = vmatprep.subr.mxu1 %v11657_v19  ;;  %9968 = vmatpush3.msra.mxu0 %v11715_v44 }
 0x414   :  { %10003 = vmatpush3.msra.mxu1 %v11657_v19  ;;  %9969 = vmatprep.subr.mxu0 %v11723_v20 }
 0x415   :  { %10004 = vmatprep.subr.mxu1 %v11663_v6  ;;  %9970 = vmatpush3.msra.mxu0 %v11723_v20 }
 0x416   :  { %10005 = vmatpush3.msra.mxu1 %v11663_v6  ;;  %9971 = vmatprep.subr.mxu0 %v11740_v10 }
 0x417   :  { %10006 = vmatprep.subr.mxu1 %v11676_v23  ;;  %9972 = vmatpush3.msra.mxu0 %v11740_v10 }
 0x418   :  { %10007 = vmatpush3.msra.mxu1 %v11676_v23  ;;  %9973 = vmatprep.subr.mxu0 %v11763_v9 }
 0x419   :  { %10008 = vmatprep.subr.mxu1 %v11701_v40  ;;  %9974 = vmatpush3.msra.mxu0 %v11763_v9 }
 0x41a   :  { %10009 = vmatpush3.msra.mxu1 %v11701_v40  ;;  %9975 = vmatprep.subr.mxu0 %v11779_v48 }
 0x41b   :  { %10010 = vmatprep.subr.mxu1 %v11717_v49  ;;  %9976 = vmatpush3.msra.mxu0 %v11779_v48 }
 0x41c   :  { %10011 = vmatpush3.msra.mxu1 %v11717_v49  ;;  %9977 = vmatprep.subr.mxu0 %v11795_v12 }
 0x41d   :  { %10012 = vmatprep.subr.mxu1 %v11735_v28  ;;  %9978 = vmatpush3.msra.mxu0 %v11795_v12  ;;  %v5041_v12 = vld [vmem:[#allocation2 + $0x70] sm:$0xff] }
 0x41e   :  { %10013 = vmatpush3.msra.mxu1 %v11735_v28  ;;  %9979 = vmatprep.subr.mxu0 %v11807_v54  ;;  %v12029_v17 = vand.u32 4294901760, %v5041_v12 }
 0x41f   :  { %10014 = vmatprep.subr.mxu1 %v11751_v41  ;;  %9980 = vmatpush3.msra.mxu0 %v11807_v54 }
 0x420   :  { %10015 = vmatpush3.msra.mxu1 %v11751_v41  ;;  %9981 = vmatprep.subr.mxu0 %v11819_v16  ;;  %v5042_v41 = vld [vmem:[#allocation2 + $0x78] sm:$0xff] }
 0x421   :  { %10016 = vmatprep.subr.mxu1 %v11768_v27  ;;  %9982 = vmatpush3.msra.mxu0 %v11819_v16  ;;  %v12026_v7 = vand.u32 4294901760, %v5042_v41 }
 0x422   :  { %10017 = vmatpush3.msra.mxu1 %v11768_v27  ;;  %9983 = vmatprep.subr.mxu0 %v14794_v31 }
 0x423   :  { %10018 = vmatprep.subr.mxu1 %v11784_v11  ;;  %9984 = vmatpush3.msra.mxu0 %v14794_v31  ;;  %v12035_v25 = vsub.f32 %v5042_v41, %v12026_v7 }
 0x424   :  { %10019 = vmatpush3.msra.mxu1 %v11784_v11  ;;  %9985 = vmatprep.subr.mxu0 %v11839_v59 }
 0x425   :  { %10020 = vmatprep.subr.mxu1 %v11800_v46  ;;  %9986 = vmatpush3.msra.mxu0 %v11839_v59  ;;  %v5040_v59 = vld [vmem:[#allocation2 + $0x68] sm:$0xff] }
 0x426   :  { %10021 = vmatpush3.msra.mxu1 %v11800_v46  ;;  %9987 = vmatprep.subr.mxu0 %v11846_v15  ;;  %v12037_v31 = vand.u32 4294901760, %v5040_v59 }
 0x427   :  { %10022 = vmatprep.subr.mxu1 %v11812_v33  ;;  %9988 = vmatpush3.msra.mxu0 %v11846_v15 }
 0x428   :  { %9989 = vmatprep.mubr.f32.mxu0 %v10285_v63  ;;  %10023 = vmatpush3.msra.mxu1 %v11812_v33 }
 0x429   :  { %10024 = vmatprep.mubr.f32.mxu1 %v10285_v63  ;;  %9990 = vmatmul.mubr.f32.vlgmr.msra.gmra.mxu0 %v10288_v0  ;;  %v14799_v63 = vld [vmem:[#allocation4_spill] sm:$0xff] }
 0x42a   :  { %10025 = vmatmul.mubr.f32.vlgmr.msra.gmra.mxu1 %v10288_v0  ;;  %10034 = vmatprep.subr.mxu1 %v14795_v34 }
 0x42b   :  { %10035 = vmatpush3.msra.mxu1 %v14795_v34  ;;  %10027 = vmatprep.subr.mxu0 %v14796_v50  ;;  %v5038_v34 = vld [vmem:[#allocation2 + $0x58] sm:$0xff] }
 0x42c   :  { %10036 = vmatprep.subr.mxu1 %v14797_v51  ;;  %10028 = vmatpush3.msra.mxu0 %v14796_v50 }
 0x42d   :  { %10037 = vmatpush3.msra.mxu1 %v14797_v51  ;;  %10029 = vmatprep.subr.mxu0 %v14798_v52 }
 0x42e   :  { %10048 = vmatprep.subr.mxu1 %v14796_v50  ;;  %10030 = vmatpush3.msra.mxu0 %v14798_v52 }
 0x42f   :  { %10041 = vmatprep.subr.mxu0 %v14799_v63 }
 0x476   :  { %v9788_v0 = vpop.f32.mrf.mxu1 }
 0x478   :  { %v3441_v43 = vpop.f32.mrf.mxu1 }
 0x47a   :  { %v9802_v15 = vpop.f32.mrf.mxu1 }
 0x47c   :  { %v3605_v24 = vpop.f32.mrf.mxu1 }
 0x47e   :  { %v9781_v21 = vpop.f32.mrf.mxu0  ;;  %v9816_v29 = vpop.f32.mrf.mxu1 }
 0x47f   :  { %v3448_v16 = vadd.f32 %v9788_v0, %v9781_v21  ;;  %v5037_v21 = vld [vmem:[#allocation2 + $0x50] sm:$0xff] }
 0x480   :  { %v3350_v22 = vpop.f32.mrf.mxu0  ;;  %v3769_v19 = vpop.f32.mrf.mxu1 }
 0x481   :  { %v3442_v8 = vadd.f32 %v3441_v43, %v3350_v22  ;;  %v12045_v43 = vsub.f32 %v5041_v12, %v12029_v17 }
 0x482   :  { %v9795_v54 = vpop.f32.mrf.mxu0 }
 0x483   :  { %v3531_v45 = vadd.f32 %v9795_v54, %v3448_v16  ;;  %v5036_v54 = vld [vmem:[#allocation2 + $0x48] sm:$0xff] }
 0x484   :  { %v3523_v37 = vpop.f32.mrf.mxu0 }
 0x485   :  { %v3524_v32 = vadd.f32 %v3523_v37, %v3442_v8  ;;  %v3614_v53 = vadd.f32 %v9802_v15, %v3531_v45  ;;  %v12047_v15 = vand.u32 4294901760, %v5039_v4  ;;  %v14568_v8 = vand.u32 4294901760, %v12035_v25 }
 0x486   :  { %v9809_v47 = vpop.f32.mrf.mxu0  ;;  %v12057_v45 = vsub.f32 %v5040_v59, %v12037_v31  ;;  %v14804_v59 = vld [vmem:[#allocation6_spill] sm:$0xff] }
 0x487   :  { %v3697_v26 = vadd.f32 %v9809_v47, %v3614_v53  ;;  %v3606_v57 = vadd.f32 %v3605_v24, %v3524_v32  ;;  %v12052_v24 = vand.u32 4294901760, %v5038_v34  ;;  %v12060_v32 = vand.u32 4294901760, %v5037_v21  ;;  %v5035_v53 = vld [vmem:[#allocation2 + $0x40] sm:$0xff] }
 0x488   :  { %v3690_v62 = vpop.f32.mrf.mxu0  ;;  %v14567_v47 = vand.u32 4294901760, %v12045_v43 }
 0x489   :  { %v3776_v1 = vadd.f32 %v9816_v29, %v3697_v26  ;;  %v3691_v3 = vadd.f32 %v3690_v62, %v3606_v57  ;;  %v12066_v26 = vsub.f32 %v5039_v4, %v12047_v15  ;;  %v12068_v57 = vand.u32 4294901760, %v5036_v54 }
 0x48b   :  { %3780 = vst.msk [vmem:[#allocation2 + $0x128] sm:$0xf] %vm1323_vm3, %v3776_v1  ;;  %v3770_v6 = vadd.f32 %v3769_v19, %v3691_v3  ;;  %3793 = vrot.lane.b32.xlu0 %v3776_v1, %s10082_s26  ;;  %v5175_v3 = vsub.f32 %v12035_v25, %v14568_v8  ;;  %v14566_v19 = vand.u32 4294901760, %v12057_v45 }
 0x48d   :  { %3779 = vst.msk [vmem:[#allocation2 + $0x120] sm:$0xff] %vm32_vm2, %v3770_v6  ;;  %3791 = vrot.lane.b32.xlu1 %v3770_v6, %s10082_s26 }
 0x48f   :  { %3785 = vrot.lane.b32.xlu0 %v3776_v1, %s10081_s19  ;;  %v12072_v1 = vsub.f32 %v5038_v34, %v12052_v24 }
 0x491   :  { %3783 = vrot.lane.b32.xlu1 %v3770_v6, %s10081_s19  ;;  %v12079_v6 = vand.u32 4294901760, %v5035_v53 }
 0x4a6   :  { %v9851_v60 = vpop.f32.mrf.mxu0 }
 0x4a7   :  { %v9886_v38 = vpop.f32.mrf.mxu1  ;;  %v3913_v58 = vadd.f32 %v9851_v60, %v14800_v5  ;;  %v5034_v60 = vld [vmem:[#allocation2 + $0x38] sm:$0xff] }
 0x4a8   :  { %v3902_v23 = vpop.f32.mrf.mxu0 }
 0x4a9   :  { %v3903_v40 = vadd.f32 %v3902_v23, %v14801_v14  ;;  %v4063_v42 = vpop.f32.mrf.mxu1  ;;  %v4070_v44 = vadd.f32 %v9886_v38, %v3913_v58  ;;  %v12084_v23 = vsub.f32 %v5037_v21, %v12060_v32  ;;  %v5182_v58 = vsub.f32 %v12045_v43, %v14567_v47 }
 0x4aa   :  { %v12092_v14 = vsub.f32 %v5036_v54, %v12068_v57 }
 0x4ab   :  { %v4064_v20 = vadd.f32 %v4063_v42, %v3903_v40  ;;  %v5033_v40 = vld [vmem:[#allocation2 + $0x30] sm:$0xff]  ;;  %v12096_v42 = vand.u32 4294901760, %v5034_v60 }
 0x4c7   :  { %v9921_v30 = vpop.f32.mrf.mxu0 }
 0x4c8   :  { %v4181_v55 = vadd.f32 %v9921_v30, %v4070_v44  ;;  %v14564_v30 = vand.u32 4294901760, %v12066_v26  ;;  %v14802_v44 = vmov 0.0  }
 0x4c9   :  { %v9956_v49 = vpop.f32.mrf.mxu1  ;;  %v4173_v39 = vpop.f32.mrf.mxu0 }
 0x4ca   :  { %v4174_v28 = vadd.f32 %v4173_v39, %v4064_v20  ;;  %v4278_v10 = vadd.f32 %v9956_v49, %v4181_v55  ;;  %v5176_v49 = vand.u32 4294901760, %v5175_v3  ;;  %v5189_v39 = vsub.f32 %v12057_v45, %v14566_v19  ;;  %v5032_v55 = vld [vmem:[#allocation2 + $0x28] sm:$0xff] }
 0x4cb   :  { %v4269_v48 = vpop.f32.mrf.mxu1  ;;  %v12103_v20 = vsub.f32 %v5035_v53, %v12079_v6  ;;  %v5196_v41 = vsub.f32 %v12066_v26, %v14564_v30  ;;  %v12123_v12 = vand.u32 4294901760, %v5032_v55 }
 0x4cc   :  { %v4270_v9 = vadd.f32 %v4269_v48, %v4174_v28  ;;  %v14561_v28 = vand.u32 4294901760, %v12084_v23  ;;  %v12108_v48 = vand.u32 4294901760, %v5033_v40 }
 0x4cd   :  { %v5197_v34 = vand.u32 4294901760, %v5196_v41  ;;  %v12147_v53 = vsub.f32 %v5032_v55, %v12123_v12 }
 0x4ce   :  { %v12134_v4 = vsub.f32 %v5033_v40, %v12108_v48  ;;  %v5027_v40 = vld [vmem:[#allocation2] sm:$0xff] }
 0x4e9   :  { %v9991_v61 = vpop.f32.mrf.mxu0 }
 0x4ea   :  { %v4403_v36 = vadd.f32 %v9991_v61, %v4278_v10  ;;  %v10026_v27 = vpop.f32.mrf.mxu1  ;;  %v14803_v10 = vld [vmem:[#allocation7_spill] sm:$0xff]  ;;  %v5183_v61 = vand.u32 4294901760, %v5182_v58 }
 0x4eb   :  { %v4396_v11 = vpop.f32.mrf.mxu0 }
 0x4ec   :  { %v4496_v46 = vadd.f32 %v10026_v27, %v4403_v36  ;;  %v4397_v33 = vadd.f32 %v4396_v11, %v4270_v9  ;;  %v4489_v35 = vpop.f32.mrf.mxu1  ;;  %v14560_v9 = vand.u32 4294901760, %v12092_v14  ;;  %v12121_v11 = vsub.f32 %v5034_v60, %v12096_v42 }
 0x4ed   :  { %v14556_v60 = vand.u32 4294901760, %v12134_v4 }
 0x4ee   :  { %v4503_v18 = vsel %vm809_vm1, %v4496_v46, 0  ;;  %v4490_v2 = vadd.f32 %v4489_v35, %v4397_v33  ;;  %v5190_v46 = vand.u32 4294901760, %v5189_v39  ;;  %v14558_v33 = vand.u32 4294901760, %v12103_v20  ;;  %v5030_v35 = vld [vmem:[#allocation2 + $0x18] sm:$0xff] }
 0x4ef   :  { %v12031_v13 = vand.u32 4294901760, %v4503_v18  ;;  %v5217_v21 = vsub.f32 %v12092_v14, %v14560_v9  ;;  %v14554_v39 = vand.u32 4294901760, %v12147_v53  ;;  %v5048_v9 = vld [vmem:[#allocation2 + $0xa8] sm:$0xff] }
 0x4f0   :  { %v4500_v56 = vsel %vm809_vm1, %v4490_v2, 0  ;;  %v5210_v2 = vsub.f32 %v12084_v23, %v14561_v28  ;;  %v12294_v30 = vand.u32 4294901760, %v5048_v9 }
 0x4f1   :  { %v12040_v51 = vsub.f32 %v4503_v18, %v12031_v13  ;;  %v12042_v0 = vand.u32 4294901760, %v4500_v56  ;;  %v5218_v58 = vand.u32 4294901760, %v5217_v21 }
 0x4f2   :  { %v5211_v3 = vand.u32 4294901760, %v5210_v2 }
 0x4f3   :  { %v4573_v22 = vsub.f32 %v4500_v56, %v12042_v0  ;;  %10038 = vmatprep.mubr.f32.mxu1 %v12042_v0  ;;  %v4584_v16 = vand.u32 4294901760, %v12040_v51 }
 0x4f4   :  { %10039 = vmatmul.mubr.f32.vlgmr.msra.gmra.mxu1 %v12031_v13 }
 0x4f5   :  { %10049 = vmatpush3.msra.mxu1 %v14796_v50  ;;  %v4574_v37 = vand.u32 4294901760, %v4573_v22  ;;  %v4585_v29 = vsub.f32 %v12040_v51, %v4584_v16 }
 0x4f6   :  { %10050 = vmatprep.subr.mxu1 %v14798_v52 }
 0x4f7   :  { %10051 = vmatpush3.msra.mxu1 %v14798_v52  ;;  %10052 = vmatprep.mubr.f32.mxu1 %v4574_v37  ;;  %v4575_v62 = vsub.f32 %v4573_v22, %v4574_v37  ;;  %v4586_v5 = vand.u32 4294901760, %v4585_v29  ;;  %v14557_v37 = vand.u32 4294901760, %v12121_v11  ;;  %v14805_v29 = vld [vmem:[#allocation8_spill] sm:$0xff] }
 0x4f8   :  { %10062 = vmatprep.subr.mxu1 %v14796_v50  ;;  %10053 = vmatmul.mubr.f32.vlgmr.msra.gmra.mxu1 %v4584_v16 }
 0x4f9   :  { %10063 = vmatpush3.msra.mxu1 %v14796_v50  ;;  %10066 = vmatprep.mubr.f32.mxu1 %v12042_v0  ;;  %v4576_v38 = vand.u32 4294901760, %v4575_v62  ;;  %v14563_v50 = vand.u32 4294901760, %v12072_v1  ;;  %v5224_v62 = vsub.f32 %v12103_v20, %v14558_v33  ;;  %v5049_v33 = vld [vmem:[#allocation2 + $0xb0] sm:$0xff] }
 0x4fa   :  { %10064 = vmatprep.subr.mxu1 %v14798_v52 }
 0x4fb   :  { %10065 = vmatpush3.msra.mxu1 %v14798_v52  ;;  %10031 = vmatprep.mubr.f32.mxu0 %v4576_v38  ;;  %v5203_v27 = vsub.f32 %v12072_v1, %v14563_v50 }
 0x4fc   :  { %5171 = vmatprep.subr.mxu1 %v14802_v44  ;;  %10032 = vmatmul.mubr.f32.vlgmr.msra.gmra.mxu0 %v4586_v5 }
 0x4fd   :  { %10042 = vmatpush3.msra.mxu0 %v14799_v63  ;;  %10067 = vmatmul.mubr.f32.vlgmr.msra.gmra.mxu1 %v12031_v13  ;;  %v3794_v52 = vpop.permute.xlu0 %3793  ;;  %v5031_v63 = vld [vmem:[#allocation2 + $0x20] sm:$0xff]  ;;  %v5204_v16 = vand.u32 4294901760, %v5203_v27 }
 0x4fe   :  { %5177 = vmatpush1.msra.mxu1 %v5176_v49  ;;  %10043 = vmatprep.subr.mxu0 %v14803_v10  ;;  %3798 = vst.msk [vmem:[#allocation2 + $0x148] sm:$0xf] %vm1323_vm3, %v3794_v52  ;;  %v12136_v56 = vand.u32 4294901760, %v5031_v63  ;;  %v5231_v49 = vsub.f32 %v12121_v11, %v14557_v37 }
 0x4ff   :  { %10045 = vmatprep.mubr.f32.mxu0 %v4573_v22  ;;  %5178 = vmatprep.subr.mxu1 %v14802_v44  ;;  %v3792_v36 = vpop.permute.xlu1 %3791  ;;  %v5029_v22 = vld [vmem:[#allocation2 + $0x10] sm:$0xff] }
 0x500   :  { %10044 = vmatpush3.msra.mxu0 %v14803_v10  ;;  %5184 = vmatpush1.msra.mxu1 %v5183_v61  ;;  %3797 = vst.msk [vmem:[#allocation2 + $0x140] sm:$0xff] %vm32_vm2, %v3792_v36  ;;  %v12160_v38 = vsub.f32 %v5031_v63, %v12136_v56  ;;  %v12162_v5 = vand.u32 4294901760, %v5029_v22  ;;  %v5225_v10 = vand.u32 4294901760, %v5224_v62  ;;  %v12186_v63 = vand.u32 4294901760, %v5027_v40  ;;  %v5056_v36 = vld [vmem:[#allocation2 + $0xe8] sm:$0xff] }
 0x501   :  { %10055 = vmatprep.subr.mxu0 %v14804_v59  ;;  %5185 = vmatprep.subr.mxu1 %v14802_v44  ;;  %v3786_v18 = vpop.permute.xlu0 %3785  ;;  %v5232_v27 = vand.u32 4294901760, %v5231_v49  ;;  %v12200_v2 = vand.u32 4294901760, %v5056_v36 }
 0x502   :  { %10046 = vmatmul.mubr.f32.vlgmr.msra.gmra.mxu0 %v12040_v51  ;;  %5191 = vmatpush1.msra.mxu1 %v5190_v46  ;;  %3790 = vst.msk [vmem:[#allocation2 + $0x138] sm:$0xf] %vm1323_vm3, %v3786_v18  ;;  %v12149_v51 = vand.u32 4294901760, %v5030_v35  ;;  %v14553_v61 = vand.u32 4294901760, %v12160_v38  ;;  %v12184_v41 = vsub.f32 %v5029_v22, %v12162_v5  ;;  %v5245_v46 = vsub.f32 %v12147_v53, %v14554_v39  ;;  %v5055_v18 = vld [vmem:[#allocation2 + $0xe0] sm:$0xff]  ;;  %v5050_v39 = vld [vmem:[#allocation2 + $0xb8] sm:$0xff] }
 0x503   :  { %10056 = vmatpush3.msra.mxu0 %v14804_v59  ;;  %10059 = vmatprep.mubr.f32.mxu0 %v12042_v0  ;;  %v3784_v54 = vpop.permute.xlu1 %3783  ;;  %v5028_v0 = vld [vmem:[#allocation2 + $0x8] sm:$0xff] }
 0x504   :  { %10057 = vmatprep.subr.mxu0 %v14805_v29  ;;  %5192 = vmatprep.subr.mxu1 %v14802_v44  ;;  %3789 = vst.msk [vmem:[#allocation2 + $0x130] sm:$0xff] %vm32_vm2, %v3784_v54  ;;  %v12172_v55 = vsub.f32 %v5030_v35, %v12149_v51  ;;  %v12174_v52 = vand.u32 4294901760, %v5028_v0  ;;  %v5252_v21 = vsub.f32 %v12160_v38, %v14553_v61  ;;  %v14551_v22 = vand.u32 4294901760, %v12184_v41 }
 0x505   :  { %10058 = vmatpush3.msra.mxu0 %v14805_v29  ;;  %5198 = vmatpush1.msra.mxu1 %v5197_v34  ;;  %v12212_v54 = vand.u32 4294901760, %v5055_v18  ;;  %v5054_v29 = vld [vmem:[#allocation2 + $0xd8] sm:$0xff]  ;;  %v5246_v62 = vand.u32 4294901760, %v5245_v46  ;;  %v5052_v46 = vld [vmem:[#allocation2 + $0xc8] sm:$0xff] }
 0x506   :  { %5061 = vmatprep.subr.mxu0 %v14802_v44  ;;  %5199 = vmatprep.subr.mxu1 %v14802_v44  ;;  %v14552_v35 = vand.u32 4294901760, %v12172_v55  ;;  %v12196_v59 = vsub.f32 %v5028_v0, %v12174_v52  ;;  %v5253_v49 = vand.u32 4294901760, %v5252_v21  ;;  %v12244_v61 = vand.u32 4294901760, %v5052_v46 }
 0x507   :  { %10060 = vmatmul.mubr.f32.vlgmr.msra.gmra.mxu0 %v12031_v13  ;;  %5205 = vmatpush1.msra.mxu1 %v5204_v16  ;;  %v5238_v13 = vsub.f32 %v12134_v4, %v14556_v60  ;;  %v12208_v16 = vsub.f32 %v5027_v40, %v12186_v63  ;;  %v5053_v40 = vld [vmem:[#allocation2 + $0xd0] sm:$0xff] }
 0x508   :  { %5063 = vmatpush1.msra.mxu0 %v12026_v7  ;;  %5206 = vmatprep.subr.mxu1 %v14802_v44  ;;  %v5259_v0 = vsub.f32 %v12172_v55, %v14552_v35  ;;  %v5051_v35 = vld [vmem:[#allocation2 + $0xc0] sm:$0xff] }
 0x509   :  { %5064 = vmatprep.subr.mxu0 %v14802_v44  ;;  %5212 = vmatpush1.msra.mxu1 %v5211_v3  ;;  %v5239_v34 = vand.u32 4294901760, %v5238_v13  ;;  %v14555_v3 = vand.u32 4294901760, %v12196_v59  ;;  %v14559_v13 = vand.u32 4294901760, %v12208_v16  ;;  %v12257_v37 = vand.u32 4294901760, %v5051_v35 }
 0x50a   :  { %5066 = vmatpush1.msra.mxu0 %v12029_v17  ;;  %5213 = vmatprep.subr.mxu1 %v14802_v44 }
 0x50b   :  { %5067 = vmatprep.subr.mxu0 %v14802_v44  ;;  %5219 = vmatpush1.msra.mxu1 %v5218_v58  ;;  %v12222_v58 = vsub.f32 %v5056_v36, %v12200_v2  ;;  %v12234_v36 = vsub.f32 %v5055_v18, %v12212_v54  ;;  %v5273_v21 = vsub.f32 %v12196_v59, %v14555_v3 }
 0x50c   :  { %5069 = vmatpush1.msra.mxu0 %v12037_v31  ;;  %5220 = vmatprep.subr.mxu1 %v14802_v44 }
 0x50d   :  { %5070 = vmatprep.subr.mxu0 %v14802_v44  ;;  %5226 = vmatpush1.msra.mxu1 %v5225_v10  ;;  %14806 = vst [vmem:[#allocation13_spill] sm:$0xff] %v12222_v58  ;;  %v5266_v10 = vsub.f32 %v12184_v41, %v14551_v22  ;;  %14807 = vst [vmem:[#allocation14_spill] sm:$0xff] %v12234_v36  ;;  %v12240_v22 = vand.u32 4294901760, %v5053_v40  ;;  %v14565_v60 = vand.u32 4294901760, %v12234_v36 }
 0x50e   :  { %5072 = vmatpush1.msra.mxu0 %v12047_v15  ;;  %5227 = vmatprep.subr.mxu1 %v14802_v44 }
 0x50f   :  { %5073 = vmatprep.subr.mxu0 %v14802_v44  ;;  %5233 = vmatpush1.msra.mxu1 %v5232_v27  ;;  %v12229_v27 = vand.u32 4294901760, %v5054_v29  ;;  %v5267_v18 = vand.u32 4294901760, %v5266_v10  ;;  %v12261_v10 = vsub.f32 %v5053_v40, %v12240_v22 }
 0x510   :  { %5075 = vmatpush1.msra.mxu0 %v12052_v24  ;;  %5234 = vmatprep.subr.mxu1 %v14802_v44 }
 0x511   :  { %5076 = vmatprep.subr.mxu0 %v14802_v44  ;;  %5240 = vmatpush1.msra.mxu1 %v5239_v34  ;;  %v5260_v34 = vand.u32 4294901760, %v5259_v0  ;;  %v14562_v0 = vand.u32 4294901760, %v12222_v58  ;;  %v12252_v3 = vsub.f32 %v5054_v29, %v12229_v27  ;;  %14809 = vst [vmem:[#allocation9_spill] sm:$0xff] %v12261_v10  ;;  %v12268_v29 = vsub.f32 %v5052_v46, %v12244_v61 }
 0x512   :  { %5078 = vmatpush1.msra.mxu0 %v12060_v32  ;;  %5241 = vmatprep.subr.mxu1 %v14802_v44  ;;  %v5298_v46 = vsub.f32 %v12234_v36, %v14565_v60 }
 0x513   :  { %5079 = vmatprep.subr.mxu0 %v14802_v44  ;;  %5247 = vmatpush1.msra.mxu1 %v5246_v62  ;;  %v5280_v62 = vsub.f32 %v12208_v16, %v14559_v13  ;;  %14808 = vst [vmem:[#allocation15_spill] sm:$0xff] %v12252_v3  ;;  %v12263_v13 = vand.u32 4294901760, %v5050_v39  ;;  %14810 = vst [vmem:[#allocation3_spill] sm:$0xff] %v12268_v29  ;;  %v12275_v40 = vand.u32 4294901760, %v12252_v3  ;;  %v12299_v60 = vand.u32 4294901760, %v12268_v29 }
 0x514   :  { %5081 = vmatpush1.msra.mxu0 %v12068_v57  ;;  %5248 = vmatprep.subr.mxu1 %v14802_v44  ;;  %v5299_v8 = vand.u32 4294901760, %v5298_v46 }
 0x515   :  { %5082 = vmatprep.subr.mxu0 %v14802_v44  ;;  %5254 = vmatpush1.msra.mxu1 %v5253_v49  ;;  %v5274_v49 = vand.u32 4294901760, %v5273_v21  ;;  %v5281_v28 = vand.u32 4294901760, %v5280_v62  ;;  %14811 = vst [vmem:[#allocation10_spill] sm:$0xff] %v12275_v40  ;;  %v12277_v21 = vand.u32 4294901760, %v5049_v33  ;;  %v5047_v62 = vld [vmem:[#allocation2 + $0xa0] sm:$0xff]  ;;  %v12292_v50 = vsub.f32 %v5050_v39, %v12263_v13  ;;  %14815 = vst [vmem:[#allocation11_spill] sm:$0xff] %v12299_v60 }
 0x516   :  { %5084 = vmatpush1.msra.mxu0 %v12079_v6  ;;  %5255 = vmatprep.subr.mxu1 %v14802_v44  ;;  %v5305_v19 = vsub.f32 %v12252_v3, %v12275_v40  ;;  %v12307_v47 = vand.u32 4294901760, %v5047_v62  ;;  %v5319_v46 = vsub.f32 %v12268_v29, %v12299_v60  ;;  %v5044_v3 = vld [vmem:[#allocation2 + $0x88] sm:$0xff] }
 0x517   :  { %5085 = vmatprep.subr.mxu0 %v14802_v44  ;;  %5261 = vmatpush1.msra.mxu1 %v5260_v34  ;;  %v5291_v34 = vsub.f32 %v12222_v58, %v14562_v0  ;;  %v12289_v0 = vand.u32 4294901760, %v12261_v10  ;;  %14814 = vst [vmem:[#allocation12_spill] sm:$0xff] %v12292_v50  ;;  %v12305_v39 = vsub.f32 %v5049_v33, %v12277_v21  ;;  %v5045_v58 = vld [vmem:[#allocation2 + $0x90] sm:$0xff]  ;;  %v12318_v33 = vand.u32 4294901760, %v12292_v50 }
 0x518   :  { %5087 = vmatpush1.msra.mxu0 %v12096_v42  ;;  %5262 = vmatprep.subr.mxu1 %v14802_v44 }
 0x519   :  { %5088 = vmatprep.subr.mxu0 %v14802_v44  ;;  %5268 = vmatpush1.msra.mxu1 %v5267_v18  ;;  %v12285_v18 = vsub.f32 %v5051_v35, %v12257_v37  ;;  %14813 = vst [vmem:[#allocation4_spill] sm:$0xff] %v12289_v0  ;;  %v5046_v35 = vld [vmem:[#allocation2 + $0x98] sm:$0xff]  ;;  %14817 = vst [vmem:[#allocation6_spill] sm:$0xff] %v12318_v33 }
 0x51a   :  { %5090 = vmatpush1.msra.mxu0 %v12108_v48  ;;  %5269 = vmatprep.subr.mxu1 %v14802_v44  ;;  %v12323_v40 = vand.u32 4294901760, %v5046_v35 }
 0x51b   :  { %14812 = vst [vmem:[#allocation5_spill] sm:$0xff] %v12285_v18  ;;  %5091 = vmatprep.subr.mxu0 %v14802_v44  ;;  %5275 = vmatpush1.msra.mxu1 %v5274_v49  ;;  %v5292_v49 = vand.u32 4294901760, %v5291_v34  ;;  %v12312_v36 = vand.u32 4294901760, %v12285_v18  ;;  %v12321_v34 = vsub.f32 %v5048_v9, %v12294_v30  ;;  %v12336_v9 = vsub.f32 %v5047_v62, %v12307_v47 }
 0x51c   :  { %5093 = vmatpush1.msra.mxu0 %v12123_v12  ;;  %5276 = vmatprep.subr.mxu1 %v14802_v44  ;;  %v12354_v29 = vsub.f32 %v5046_v35, %v12323_v40 }
 0x51d   :  { %5094 = vmatprep.subr.mxu0 %v14802_v44  ;;  %5282 = vmatpush1.msra.mxu1 %v5281_v28  ;;  %14816 = vst [vmem:[#allocation7_spill] sm:$0xff] %v12312_v36  ;;  %v5312_v28 = vsub.f32 %v12261_v10, %v12289_v0  ;;  %14818 = vst [vmem:[#allocation8_spill] sm:$0xff] %v12321_v34  ;;  %v12333_v0 = vand.u32 4294901760, %v12305_v39  ;;  %v12338_v10 = vand.u32 4294901760, %v5045_v58  ;;  %v12351_v62 = vand.u32 4294901760, %v12321_v34 }
 0x51e   :  { %5096 = vmatpush1.msra.mxu0 %v12136_v56  ;;  %5287 = vmatprep.subr.mxu1 %v14802_v44  ;;  %14821 = vst [vmem:[#allocation18_spill] sm:$0xff] %v12336_v9  ;;  %v5326_v60 = vsub.f32 %v12285_v18, %v12312_v36  ;;  %v12358_v36 = vand.u32 4294901760, %v5044_v3  ;;  %v5043_v18 = vld [vmem:[#allocation2 + $0x80] sm:$0xff] }
 0x51f   :  { %5097 = vmatprep.subr.mxu0 %v14802_v44  ;;  %5293 = vmatpush2.msra.mxu1 %v5292_v49  ;;  %v12330_v49 = vand.u32 4294901760, %v5305_v19  ;;  %14820 = vst [vmem:[#allocation17_spill] sm:$0xff] %v12333_v0  ;;  %v5333_v19 = vsub.f32 %v12292_v50, %v12318_v33  ;;  %14823 = vst [vmem:[#allocation20_spill] sm:$0xff] %v12351_v62  ;;  %v12367_v33 = vand.u32 4294901760, %v12336_v9 }
 0x520   :  { %5099 = vmatpush1.msra.mxu0 %v12149_v51  ;;  %5294 = vmatprep.subr.mxu1 %v14802_v44  ;;  %v12370_v35 = vsub.f32 %v5045_v58, %v12338_v10  ;;  %v12374_v50 = vand.u32 4294901760, %v5326_v60  ;;  %v12385_v58 = vand.u32 4294901760, %v5043_v18  ;;  %v12390_v60 = vsub.f32 %v5044_v3, %v12358_v36 }
 0x521   :  { %5100 = vmatprep.subr.mxu0 %v14802_v44  ;;  %5300 = vmatpush2.msra.mxu1 %v5299_v8  ;;  %14819 = vst [vmem:[#allocation16_spill] sm:$0xff] %v12330_v49  ;;  %v12346_v8 = vand.u32 4294901760, %v5312_v28  ;;  %v12362_v28 = vand.u32 4294901760, %v5319_v46  ;;  %14825 = vst [vmem:[#allocation22_spill] sm:$0xff] %v12367_v33  ;;  %v12378_v46 = vand.u32 4294901760, %v5333_v19 }
 0x522   :  { %5102 = vmatpush1.msra.mxu0 %v12162_v5  ;;  %5301 = vmatprep.subr.mxu1 %v14802_v44  ;;  %14826 = vst [vmem:[#allocation23_spill] sm:$0xff] %v12370_v35  ;;  %14827 = vst [vmem:[#allocation24_spill] sm:$0xff] %v12374_v50 }
 0x523   :  { %5103 = vmatprep.subr.mxu0 %v14802_v44  ;;  %5307 = vmatpush2.msra.mxu1 %v12330_v49  ;;  %14822 = vst [vmem:[#allocation19_spill] sm:$0xff] %v12346_v8  ;;  %14824 = vst [vmem:[#allocation21_spill] sm:$0xff] %v12362_v28  ;;  %v5340_v49 = vsub.f32 %v12305_v39, %v12333_v0  ;;  %v12383_v0 = vand.u32 4294901760, %v12354_v29 }
 0x524   :  { %5105 = vmatpush1.msra.mxu0 %v12174_v52  ;;  %5308 = vmatprep.subr.mxu1 %v14802_v44  ;;  %14828 = vst [vmem:[#allocation25_spill] sm:$0xff] %v12378_v46 }
 0x525   :  { %5106 = vmatprep.subr.mxu0 %v14802_v44  ;;  %5314 = vmatpush2.msra.mxu1 %v12346_v8  ;;  %v5347_v8 = vsub.f32 %v12321_v34, %v12351_v62  ;;  %14829 = vst [vmem:[#allocation26_spill] sm:$0xff] %v12383_v0  ;;  %v12394_v19 = vand.u32 4294901760, %v5340_v49  ;;  %v12399_v62 = vand.u32 4294901760, %v12370_v35  ;;  %v30_v34 = vld [vmem:[%s14500_s4 + $0x8] sm:$0xff]  ;;  %v5361_v49 = vsub.f32 %v12354_v29, %v12383_v0 }
 0x526   :  { %5108 = vmatpush1.msra.mxu0 %v12186_v63  ;;  %5315 = vmatprep.subr.mxu1 %v14802_v44 }
 0x527   :  { %5113 = vmatprep.subr.mxu0 %v14802_v44  ;;  %5321 = vmatpush2.msra.mxu1 %v12362_v28  ;;  %14830 = vst [vmem:[#allocation27_spill] sm:$0xff] %v12394_v19  ;;  %v5354_v28 = vsub.f32 %v12336_v9, %v12367_v33  ;;  %14831 = vst [vmem:[#allocation28_spill] sm:$0xff] %v12399_v62  ;;  %v12408_v3 = vand.u32 4294901760, %v5347_v8  ;;  %v5059_v33 = vsel %vm5057_vm4, %v30_v34, 0  ;;  %v12433_v34 = vand.u32 4294901760, %v5361_v49 }
 0x528   :  { %5115 = vmatpush2.msra.mxu0 %v12200_v2  ;;  %5322 = vmatprep.subr.mxu1 %v14802_v44  ;;  %v5368_v8 = vsub.f32 %v12370_v35, %v12399_v62 }
 0x529   :  { %5116 = vmatprep.subr.mxu0 %v14802_v44  ;;  %5328 = vmatpush2.msra.mxu1 %v12374_v50  ;;  %14832 = vst [vmem:[#allocation29_spill] sm:$0xff] %v12408_v3  ;;  %v12413_v50 = vsub.f32 %v5043_v18, %v12385_v58  ;;  %v12419_v9 = vand.u32 4294901760, %v5354_v28  ;;  %v29_v18 = vld [vmem:[%s14500_s4] sm:$0xff]  ;;  %14835 = vst [vmem:[#allocation32_spill] sm:$0xff] %v12433_v34 }
 0x52a   :  { %5118 = vmatpush2.msra.mxu0 %v12212_v54  ;;  %5329 = vmatprep.subr.mxu1 %v14802_v44  ;;  %v12442_v62 = vand.u32 4294901760, %v29_v18  ;;  %v12446_v0 = vand.u32 4294901760, %v5368_v8 }
 0x52b   :  { %5119 = vmatprep.subr.mxu0 %v14802_v44  ;;  %5335 = vmatpush2.msra.mxu1 %v12378_v46  ;;  %14833 = vst [vmem:[#allocation30_spill] sm:$0xff] %v12419_v9  ;;  %v12424_v46 = vand.u32 4294901760, %v12390_v60  ;;  %v12436_v28 = vand.u32 4294901760, %v12413_v50 }
 0x52c   :  { %5121 = vmatpush2.msra.mxu0 %v12229_v27  ;;  %5336 = vmatprep.subr.mxu1 %v14802_v44  ;;  %14837 = vst [vmem:[#allocation34_spill] sm:$0xff] %v12446_v0  ;;  %v12462_v8 = vsub.f32 %v29_v18, %v12442_v62 }
 0x52d   :  { %5122 = vmatprep.subr.mxu0 %v14802_v44  ;;  %5342 = vmatpush2.msra.mxu1 %v12394_v19  ;;  %14834 = vst [vmem:[#allocation31_spill] sm:$0xff] %v12424_v46  ;;  %14836 = vst [vmem:[#allocation33_spill] sm:$0xff] %v12436_v28  ;;  %v12438_v19 = vand.u32 4294901760, %v5059_v33  ;;  %v5375_v49 = vsub.f32 %v12390_v60, %v12424_v46 }
 0x52e   :  { %5124 = vmatpush2.msra.mxu0 %v12240_v22  ;;  %5343 = vmatprep.subr.mxu1 %v14802_v44  ;;  %14839 = vst [vmem:[#allocation36_spill] sm:$0xff] %v12462_v8  ;;  %v12480_v18 = vand.u32 4294901760, %v12462_v8 }
 0x52f   :  { %5125 = vmatprep.subr.mxu0 %v14802_v44  ;;  %5349 = vmatpush2.msra.mxu1 %v12408_v3  ;;  %v5382_v3 = vsub.f32 %v12413_v50, %v12436_v28  ;;  %v12457_v35 = vsub.f32 %v5059_v33, %v12438_v19 }
 0x530   :  { %5127 = vmatpush2.msra.mxu0 %v12244_v61  ;;  %5350 = vmatprep.subr.mxu1 %v14802_v44  ;;  %14843 = vst [vmem:[#allocation40_spill] sm:$0xff] %v12480_v18 }
 0x531   :  { %5128 = vmatprep.subr.mxu0 %v14802_v44  ;;  %5356 = vmatpush2.msra.mxu1 %v12419_v9  ;;  %14838 = vst [vmem:[#allocation35_spill] sm:$0xff] %v12457_v35  ;;  %v12466_v9 = vand.u32 4294901760, %v5375_v49  ;;  %v12472_v33 = vand.u32 4294901760, %v5382_v3  ;;  %v5164_v49 = vsub.f32 %v12462_v8, %v12480_v18 }
 0x532   :  { %5130 = vmatpush2.msra.mxu0 %v12257_v37  ;;  %5357 = vmatprep.subr.mxu1 %v14802_v44 }
 0x533   :  { %5131 = vmatprep.subr.mxu0 %v14802_v44  ;;  %5363 = vmatpush2.msra.mxu1 %v12433_v34  ;;  %14840 = vst [vmem:[#allocation37_spill] sm:$0xff] %v12466_v9  ;;  %14841 = vst [vmem:[#allocation38_spill] sm:$0xff] %v12472_v33  ;;  %v12475_v34 = vand.u32 4294901760, %v12457_v35 }
 0x534   :  { %5133 = vmatpush2.msra.mxu0 %v12263_v13  ;;  %5364 = vmatprep.subr.mxu1 %v14802_v44 }
 0x535   :  { %5134 = vmatprep.subr.mxu0 %v14802_v44  ;;  %5370 = vmatpush2.msra.mxu1 %v12446_v0  ;;  %14842 = vst [vmem:[#allocation39_spill] sm:$0xff] %v12475_v34  ;;  %v5158_v3 = vsub.f32 %v12457_v35, %v12475_v34  ;;  %v14850_v0 = vld [vmem:[#allocation3_spill] sm:$0xff] }
 0x536   :  { %5136 = vmatpush2.msra.mxu0 %v12277_v21  ;;  %5371 = vmatprep.subr.mxu1 %v14802_v44 }
 0x537   :  { %5137 = vmatprep.subr.mxu0 %v14802_v44  ;;  %5377 = vmatpush2.msra.mxu1 %v12466_v9  ;;  %v12504_v9 = vand.u32 4294901760, %v5164_v49  ;;  %v14847_v49 = vld [vmem:[#allocation14_spill] sm:$0xff] }
 0x538   :  { %5139 = vmatpush2.msra.mxu0 %v12294_v30  ;;  %5378 = vmatprep.subr.mxu1 %v14802_v44 }
 0x539   :  { %5140 = vmatprep.subr.mxu0 %v14802_v44  ;;  %5384 = vmatpush2.msra.mxu1 %v12472_v33  ;;  %v12500_v33 = vand.u32 4294901760, %v5158_v3  ;;  %14845 = vst [vmem:[#allocation42_spill] sm:$0xff] %v12504_v9  ;;  %v14846_v3 = vld [vmem:[#allocation13_spill] sm:$0xff] }
 0x53a   :  { %5142 = vmatpush2.msra.mxu0 %v12307_v47  ;;  %5386 = vmatprep.mubr.f32.mxu1 %v12438_v19 }
 0x53b   :  { %5143 = vmatprep.subr.mxu0 %v14802_v44  ;;  %5527 = vmatprep.subr.mxu1 %v14802_v44  ;;  %14844 = vst [vmem:[#allocation41_spill] sm:$0xff] %v12500_v33 }
 0x53c   :  { %5145 = vmatpush2.msra.mxu0 %v12323_v40  ;;  %5388 = vmatmul.mubr.f32.vlgmr.msra.gmra.mxu1 %v12442_v62 }
 0x53d   :  { %5529 = vmatpush1.msra.mxu1 %v12026_v7  ;;  %5146 = vmatprep.subr.mxu0 %v14802_v44 }
 0x53e   :  { %5530 = vmatprep.subr.mxu1 %v14802_v44  ;;  %5148 = vmatpush2.msra.mxu0 %v12338_v10 }
 0x53f   :  { %5532 = vmatpush1.msra.mxu1 %v12029_v17  ;;  %5149 = vmatprep.subr.mxu0 %v14802_v44 }
 0x540   :  { %5533 = vmatprep.subr.mxu1 %v14802_v44  ;;  %5151 = vmatpush2.msra.mxu0 %v12358_v36 }
 0x541   :  { %5535 = vmatpush1.msra.mxu1 %v12037_v31  ;;  %5152 = vmatprep.subr.mxu0 %v14802_v44 }
 0x542   :  { %5536 = vmatprep.subr.mxu1 %v14802_v44  ;;  %5154 = vmatpush2.msra.mxu0 %v12385_v58 }
 0x543   :  { %5160 = vmatprep.mubr.f32.mxu0 %v12500_v33  ;;  %5538 = vmatpush1.msra.mxu1 %v12047_v15  ;;  %v14849_v33 = vld [vmem:[#allocation9_spill] sm:$0xff] }
 0x544   :  { %5166 = vmatmul.mubr.f32.vlgmr.msra.gmra.mxu0 %v12504_v9  ;;  %5393 = vmatprep.subr.mxu0 %v14802_v44  ;;  %v14848_v9 = vld [vmem:[#allocation15_spill] sm:$0xff] }
 0x545   :  { %5539 = vmatprep.subr.mxu1 %v14802_v44  ;;  %5396 = vmatpush1.msra.mxu0 %v12035_v25 }
 0x546   :  { %5541 = vmatpush1.msra.mxu1 %v12052_v24  ;;  %5397 = vmatprep.subr.mxu0 %v14802_v44 }
 0x547   :  { %5542 = vmatprep.subr.mxu1 %v14802_v44  ;;  %5400 = vmatpush1.msra.mxu0 %v12045_v43 }
 0x548   :  { %5544 = vmatpush1.msra.mxu1 %v12060_v32  ;;  %5401 = vmatprep.subr.mxu0 %v14802_v44 }
 0x549   :  { %5545 = vmatprep.subr.mxu1 %v14802_v44  ;;  %5404 = vmatpush1.msra.mxu0 %v12057_v45 }
 0x54a   :  { %5547 = vmatpush1.msra.mxu1 %v12068_v57  ;;  %5405 = vmatprep.subr.mxu0 %v14802_v44 }
 0x54b   :  { %5548 = vmatprep.subr.mxu1 %v14802_v44  ;;  %5408 = vmatpush1.msra.mxu0 %v12066_v26 }
 0x54c   :  { %5550 = vmatpush1.msra.mxu1 %v12079_v6  ;;  %5409 = vmatprep.subr.mxu0 %v14802_v44 }
 0x54d   :  { %5551 = vmatprep.subr.mxu1 %v14802_v44  ;;  %5412 = vmatpush1.msra.mxu0 %v12072_v1 }
 0x54e   :  { %5553 = vmatpush1.msra.mxu1 %v12096_v42  ;;  %5413 = vmatprep.subr.mxu0 %v14802_v44 }
 0x54f   :  { %5554 = vmatprep.subr.mxu1 %v14802_v44  ;;  %5416 = vmatpush1.msra.mxu0 %v12084_v23 }
 0x550   :  { %5556 = vmatpush1.msra.mxu1 %v12108_v48  ;;  %5417 = vmatprep.subr.mxu0 %v14802_v44 }
 0x551   :  { %5557 = vmatprep.subr.mxu1 %v14802_v44  ;;  %5420 = vmatpush1.msra.mxu0 %v12092_v14 }
 0x552   :  { %5559 = vmatpush1.msra.mxu1 %v12123_v12  ;;  %5421 = vmatprep.subr.mxu0 %v14802_v44 }
 0x553   :  { %5560 = vmatprep.subr.mxu1 %v14802_v44  ;;  %5424 = vmatpush1.msra.mxu0 %v12103_v20 }
 0x554   :  { %5562 = vmatpush1.msra.mxu1 %v12136_v56  ;;  %5425 = vmatprep.subr.mxu0 %v14802_v44 }
 0x555   :  { %5563 = vmatprep.subr.mxu1 %v14802_v44  ;;  %5428 = vmatpush1.msra.mxu0 %v12121_v11 }
 0x556   :  { %5565 = vmatpush1.msra.mxu1 %v12149_v51  ;;  %5429 = vmatprep.subr.mxu0 %v14802_v44 }
 0x557   :  { %5566 = vmatprep.subr.mxu1 %v14802_v44  ;;  %5432 = vmatpush1.msra.mxu0 %v12134_v4 }
 0x558   :  { %5568 = vmatpush1.msra.mxu1 %v12162_v5  ;;  %5433 = vmatprep.subr.mxu0 %v14802_v44 }
 0x559   :  { %5569 = vmatprep.subr.mxu1 %v14802_v44  ;;  %5436 = vmatpush1.msra.mxu0 %v12147_v53 }
 0x55a   :  { %5571 = vmatpush1.msra.mxu1 %v12174_v52  ;;  %5437 = vmatprep.subr.mxu0 %v14802_v44 }
 0x55b   :  { %5572 = vmatprep.subr.mxu1 %v14802_v44  ;;  %5440 = vmatpush1.msra.mxu0 %v12160_v38 }
 0x55c   :  { %5574 = vmatpush1.msra.mxu1 %v12186_v63  ;;  %5441 = vmatprep.subr.mxu0 %v14802_v44 }
 0x55d   :  { %5579 = vmatprep.subr.mxu1 %v14802_v44  ;;  %5444 = vmatpush1.msra.mxu0 %v12172_v55 }
 0x55e   :  { %5581 = vmatpush2.msra.mxu1 %v12200_v2  ;;  %5445 = vmatprep.subr.mxu0 %v14802_v44 }
 0x55f   :  { %5582 = vmatprep.subr.mxu1 %v14802_v44  ;;  %5448 = vmatpush1.msra.mxu0 %v12184_v41 }
 0x560   :  { %5584 = vmatpush2.msra.mxu1 %v12212_v54  ;;  %5449 = vmatprep.subr.mxu0 %v14802_v44 }
 0x561   :  { %5585 = vmatprep.subr.mxu1 %v14802_v44  ;;  %5452 = vmatpush1.msra.mxu0 %v12196_v59 }
 0x562   :  { %5587 = vmatpush2.msra.mxu1 %v12229_v27  ;;  %5453 = vmatprep.subr.mxu0 %v14802_v44 }
 0x563   :  { %5588 = vmatprep.subr.mxu1 %v14802_v44  ;;  %5456 = vmatpush1.msra.mxu0 %v12208_v16 }
 0x564   :  { %5590 = vmatpush2.msra.mxu1 %v12240_v22  ;;  %5461 = vmatprep.subr.mxu0 %v14802_v44 }
 0x565   :  { %5591 = vmatprep.subr.mxu1 %v14802_v44  ;;  %5464 = vmatpush2.msra.mxu0 %v14846_v3 }
 0x566   :  { %5593 = vmatpush2.msra.mxu1 %v12244_v61  ;;  %5465 = vmatprep.subr.mxu0 %v14802_v44 }
 0x567   :  { %5594 = vmatprep.subr.mxu1 %v14802_v44  ;;  %5468 = vmatpush2.msra.mxu0 %v14847_v49 }
 0x568   :  { %5596 = vmatpush2.msra.mxu1 %v12257_v37  ;;  %5469 = vmatprep.subr.mxu0 %v14802_v44 }
 0x569   :  { %5597 = vmatprep.subr.mxu1 %v14802_v44  ;;  %5472 = vmatpush2.msra.mxu0 %v14848_v9  ;;  %v14851_v9 = vld [vmem:[#allocation5_spill] sm:$0xff] }
 0x56a   :  { %5599 = vmatpush2.msra.mxu1 %v12263_v13  ;;  %5473 = vmatprep.subr.mxu0 %v14802_v44 }
 0x56b   :  { %5600 = vmatprep.subr.mxu1 %v14802_v44  ;;  %5476 = vmatpush2.msra.mxu0 %v14849_v33  ;;  %v14852_v33 = vld [vmem:[#allocation12_spill] sm:$0xff] }
 0x56c   :  { %5602 = vmatpush2.msra.mxu1 %v12277_v21  ;;  %5477 = vmatprep.subr.mxu0 %v14802_v44 }
 0x56d   :  { %5603 = vmatprep.subr.mxu1 %v14802_v44  ;;  %5480 = vmatpush2.msra.mxu0 %v14850_v0 }
 0x56e   :  { %5605 = vmatpush2.msra.mxu1 %v12294_v30  ;;  %5481 = vmatprep.subr.mxu0 %v14802_v44 }
 0x56f   :  { %5606 = vmatprep.subr.mxu1 %v14802_v44  ;;  %5484 = vmatpush2.msra.mxu0 %v14851_v9  ;;  %v14853_v9 = vld [vmem:[#allocation8_spill] sm:$0xff] }
 0x570   :  { %5608 = vmatpush2.msra.mxu1 %v12307_v47  ;;  %5485 = vmatprep.subr.mxu0 %v14802_v44 }
 0x571   :  { %5609 = vmatprep.subr.mxu1 %v14802_v44  ;;  %5488 = vmatpush2.msra.mxu0 %v14852_v33  ;;  %v14854_v33 = vld [vmem:[#allocation18_spill] sm:$0xff] }
 0x572   :  { %5611 = vmatpush2.msra.mxu1 %v12323_v40  ;;  %5489 = vmatprep.subr.mxu0 %v14802_v44 }
 0x573   :  { %5612 = vmatprep.subr.mxu1 %v14802_v44  ;;  %5492 = vmatpush2.msra.mxu0 %v12305_v39 }
 0x574   :  { %5614 = vmatpush2.msra.mxu1 %v12338_v10  ;;  %5493 = vmatprep.subr.mxu0 %v14802_v44 }
 0x575   :  { %5615 = vmatprep.subr.mxu1 %v14802_v44  ;;  %5496 = vmatpush2.msra.mxu0 %v14853_v9  ;;  %v14855_v9 = vld [vmem:[#allocation23_spill] sm:$0xff] }
 0x576   :  { %5617 = vmatpush2.msra.mxu1 %v12358_v36  ;;  %5497 = vmatprep.subr.mxu0 %v14802_v44 }
 0x577   :  { %5618 = vmatprep.subr.mxu1 %v14802_v44  ;;  %5500 = vmatpush2.msra.mxu0 %v14854_v33 }
 0x578   :  { %5620 = vmatpush2.msra.mxu1 %v12385_v58  ;;  %5501 = vmatprep.subr.mxu0 %v14802_v44 }
 0x579   :  { %5624 = vmatprep.mubr.f32.mxu1 %v12475_v34  ;;  %5795 = vmatprep.subr.mxu1 %v14802_v44 }
 0x57a   :  { %5504 = vmatpush2.msra.mxu0 %v12354_v29  ;;  %5628 = vmatmul.mubr.f32.vlgmr.msra.gmra.mxu1 %v12480_v18 }
 0x57b   :  { %5797 = vmatpush1.msra.mxu1 %v12026_v7  ;;  %5505 = vmatprep.subr.mxu0 %v14802_v44  ;;  %v14856_v7 = vand.u32 4294901760, %v12035_v25  ;;  %v14859_v25 = vand.u32 4294901760, %v12066_v26  ;;  %v14865_v26 = vand.u32 4294901760, %v12134_v4  ;;  %v14876_v4 = vld [vmem:[#allocation11_spill] sm:$0xff] }
 0x57c   :  { %5798 = vmatprep.subr.mxu1 %v14802_v44  ;;  %5508 = vmatpush2.msra.mxu0 %v14855_v9 }
 0x57d   :  { %5800 = vmatpush1.msra.mxu1 %v12029_v17  ;;  %5509 = vmatprep.subr.mxu0 %v14802_v44  ;;  %v14857_v17 = vand.u32 4294901760, %v12045_v43  ;;  %v14860_v43 = vand.u32 4294901760, %v12072_v1  ;;  %v14867_v1 = vand.u32 4294901760, %v12160_v38  ;;  %v14880_v38 = vld [vmem:[#allocation20_spill] sm:$0xff] }
 0x57e   :  { %5801 = vmatprep.subr.mxu1 %v14802_v44  ;;  %5512 = vmatpush2.msra.mxu0 %v12390_v60 }
 0x57f   :  { %5803 = vmatpush1.msra.mxu1 %v12037_v31  ;;  %5513 = vmatprep.subr.mxu0 %v14802_v44  ;;  %v14858_v31 = vand.u32 4294901760, %v12057_v45  ;;  %v14863_v45 = vand.u32 4294901760, %v12103_v20  ;;  %v14872_v20 = vand.u32 4294901760, %v14846_v3  ;;  %v5900_v3 = vld [vmem:[#allocation2 + $0x78] sm:$0xff] }
 0x580   :  { %5804 = vmatprep.subr.mxu1 %v14802_v44  ;;  %5516 = vmatpush2.msra.mxu0 %v12413_v50 }
 0x581   :  { %5519 = vmatprep.mubr.f32.mxu0 %v12457_v35  ;;  %5806 = vmatpush1.msra.mxu1 %v12047_v15  ;;  %v14861_v15 = vand.u32 4294901760, %v12084_v23  ;;  %v14869_v23 = vand.u32 4294901760, %v12184_v41  ;;  %v14883_v41 = vld [vmem:[#allocation16_spill] sm:$0xff] }
 0x582   :  { %5522 = vmatmul.mubr.f32.vlgmr.msra.gmra.mxu0 %v12462_v8  ;;  %5633 = vmatprep.subr.mxu0 %v14802_v44 }
 0x583   :  { %5807 = vmatprep.subr.mxu1 %v14802_v44  ;;  %5637 = vmatpush1.msra.mxu0 %v14856_v7  ;;  %v14887_v7 = vld [vmem:[#allocation24_spill] sm:$0xff] }
 0x584   :  { %5809 = vmatpush1.msra.mxu1 %v12052_v24  ;;  %5638 = vmatprep.subr.mxu0 %v14802_v44  ;;  %v14862_v24 = vand.u32 4294901760, %v12092_v14  ;;  %v14870_v14 = vand.u32 4294901760, %v12196_v59  ;;  %v14885_v59 = vld [vmem:[#allocation19_spill] sm:$0xff] }
 0x585   :  { %5810 = vmatprep.subr.mxu1 %v14802_v44  ;;  %5642 = vmatpush1.msra.mxu0 %v14857_v17 }
 0x586   :  { %5812 = vmatpush1.msra.mxu1 %v12060_v32  ;;  %5643 = vmatprep.subr.mxu0 %v14802_v44  ;;  %v14864_v32 = vand.u32 4294901760, %v12121_v11  ;;  %v14874_v11 = vld [vmem:[#allocation10_spill] sm:$0xff] }
 0x587   :  { %5813 = vmatprep.subr.mxu1 %v14802_v44  ;;  %5647 = vmatpush1.msra.mxu0 %v14858_v31  ;;  %v5899_v31 = vld [vmem:[#allocation2 + $0x70] sm:$0xff] }
 0x588   :  { %5815 = vmatpush1.msra.mxu1 %v12068_v57  ;;  %5648 = vmatprep.subr.mxu0 %v14802_v44  ;;  %v14866_v57 = vand.u32 4294901760, %v12147_v53  ;;  %v14878_v53 = vld [vmem:[#allocation6_spill] sm:$0xff] }
 0x589   :  { %5816 = vmatprep.subr.mxu1 %v14802_v44  ;;  %5652 = vmatpush1.msra.mxu0 %v14859_v25  ;;  %v12780_v25 = vand.u32 4294901760, %v5900_v3 }
 0x58a   :  { %5818 = vmatpush1.msra.mxu1 %v12079_v6  ;;  %5653 = vmatprep.subr.mxu0 %v14802_v44  ;;  %v14868_v6 = vand.u32 4294901760, %v12172_v55 }
 0x58b   :  { %5819 = vmatprep.subr.mxu1 %v14802_v44  ;;  %5657 = vmatpush1.msra.mxu0 %v14860_v43 }
 0x58c   :  { %5821 = vmatpush1.msra.mxu1 %v12096_v42  ;;  %5658 = vmatprep.subr.mxu0 %v14802_v44  ;;  %v14871_v42 = vand.u32 4294901760, %v12208_v16 }
 0x58d   :  { %5822 = vmatprep.subr.mxu1 %v14802_v44  ;;  %5662 = vmatpush1.msra.mxu0 %v14861_v15  ;;  %v14888_v15 = vld [vmem:[#allocation25_spill] sm:$0xff] }
 0x58e   :  { %5824 = vmatpush1.msra.mxu1 %v12108_v48  ;;  %5663 = vmatprep.subr.mxu0 %v14802_v44  ;;  %v14873_v48 = vand.u32 4294901760, %v14847_v49 }
 0x58f   :  { %5825 = vmatprep.subr.mxu1 %v14802_v44  ;;  %5667 = vmatpush1.msra.mxu0 %v14862_v24 }
 0x590   :  { %5827 = vmatpush1.msra.mxu1 %v12123_v12  ;;  %5668 = vmatprep.subr.mxu0 %v14802_v44  ;;  %v14875_v12 = vld [vmem:[#allocation4_spill] sm:$0xff] }
 0x591   :  { %5828 = vmatprep.subr.mxu1 %v14802_v44  ;;  %5672 = vmatpush1.msra.mxu0 %v14863_v45  ;;  %v12786_v45 = vand.u32 4294901760, %v5899_v31 }
 0x592   :  { %5830 = vmatpush1.msra.mxu1 %v12136_v56  ;;  %5673 = vmatprep.subr.mxu0 %v14802_v44  ;;  %v14877_v56 = vld [vmem:[#allocation7_spill] sm:$0xff] }
 0x593   :  { %5831 = vmatprep.subr.mxu1 %v14802_v44  ;;  %5677 = vmatpush1.msra.mxu0 %v14864_v32  ;;  %v5898_v32 = vld [vmem:[#allocation2 + $0x68] sm:$0xff] }
 0x594   :  { %5833 = vmatpush1.msra.mxu1 %v12149_v51  ;;  %5678 = vmatprep.subr.mxu0 %v14802_v44  ;;  %v14879_v51 = vld [vmem:[#allocation17_spill] sm:$0xff] }
 0x595   :  { %5834 = vmatprep.subr.mxu1 %v14802_v44  ;;  %5682 = vmatpush1.msra.mxu0 %v14865_v26 }
 0x596   :  { %5836 = vmatpush1.msra.mxu1 %v12162_v5  ;;  %5683 = vmatprep.subr.mxu0 %v14802_v44  ;;  %v14881_v5 = vld [vmem:[#allocation22_spill] sm:$0xff] }
 0x597   :  { %5837 = vmatprep.subr.mxu1 %v14802_v44  ;;  %5687 = vmatpush1.msra.mxu0 %v14866_v57 }
 0x598   :  { %5839 = vmatpush1.msra.mxu1 %v12174_v52  ;;  %5688 = vmatprep.subr.mxu0 %v14802_v44  ;;  %v14882_v52 = vld [vmem:[#allocation26_spill] sm:$0xff] }
 0x599   :  { %5840 = vmatprep.subr.mxu1 %v14802_v44  ;;  %5692 = vmatpush1.msra.mxu0 %v14867_v1 }
 0x59a   :  { %5842 = vmatpush1.msra.mxu1 %v12186_v63  ;;  %5693 = vmatprep.subr.mxu0 %v14802_v44  ;;  %v14884_v63 = vld [vmem:[#allocation28_spill] sm:$0xff] }
 0x59b   :  { %5847 = vmatprep.subr.mxu1 %v14802_v44  ;;  %5697 = vmatpush1.msra.mxu0 %v14868_v6  ;;  %v14889_v6 = vld [vmem:[#allocation27_spill] sm:$0xff] }
 0x59c   :  { %5849 = vmatpush2.msra.mxu1 %v12200_v2  ;;  %5698 = vmatprep.subr.mxu0 %v14802_v44 }
 0x59d   :  { %5850 = vmatprep.subr.mxu1 %v14802_v44  ;;  %5702 = vmatpush1.msra.mxu0 %v14869_v23 }
 0x59e   :  { %5852 = vmatpush2.msra.mxu1 %v12212_v54  ;;  %5703 = vmatprep.subr.mxu0 %v14802_v44  ;;  %v14886_v54 = vld [vmem:[#allocation21_spill] sm:$0xff] }
 0x59f   :  { %5853 = vmatprep.subr.mxu1 %v14802_v44  ;;  %5707 = vmatpush1.msra.mxu0 %v14870_v14  ;;  %v12793_v14 = vsub.f32 %v5900_v3, %v12780_v25 }
 0x5a0   :  { %5855 = vmatpush2.msra.mxu1 %v12229_v27  ;;  %5708 = vmatprep.subr.mxu0 %v14802_v44 }
 0x5a1   :  { %5856 = vmatprep.subr.mxu1 %v14802_v44  ;;  %5712 = vmatpush1.msra.mxu0 %v14871_v42  ;;  %v5897_v42 = vld [vmem:[#allocation2 + $0x60] sm:$0xff] }
 0x5a2   :  { %5858 = vmatpush2.msra.mxu1 %v12240_v22  ;;  %5717 = vmatprep.subr.mxu0 %v14802_v44  ;;  %v12806_v3 = vand.u32 4294901760, %v5897_v42 }
 0x5a3   :  { %5859 = vmatprep.subr.mxu1 %v14802_v44  ;;  %5721 = vmatpush2.msra.mxu0 %v14872_v20 }
 0x5a4   :  { %5861 = vmatpush2.msra.mxu1 %v12244_v61  ;;  %5722 = vmatprep.subr.mxu0 %v14802_v44 }
 0x5a5   :  { %5862 = vmatprep.subr.mxu1 %v14802_v44  ;;  %5726 = vmatpush2.msra.mxu0 %v14873_v48 }
 0x5a6   :  { %5864 = vmatpush2.msra.mxu1 %v12257_v37  ;;  %5727 = vmatprep.subr.mxu0 %v14802_v44 }
 0x5a7   :  { %5865 = vmatprep.subr.mxu1 %v14802_v44  ;;  %5731 = vmatpush2.msra.mxu0 %v14874_v11 }
 0x5a8   :  { %5867 = vmatpush2.msra.mxu1 %v12263_v13  ;;  %5732 = vmatprep.subr.mxu0 %v14802_v44 }
 0x5a9   :  { %5868 = vmatprep.subr.mxu1 %v14802_v44  ;;  %5736 = vmatpush2.msra.mxu0 %v14875_v12  ;;  %v5917_v12 = vld [vmem:[#allocation2 + $0x100] sm:$0xff] }
 0x5aa   :  { %5870 = vmatpush2.msra.mxu1 %v12277_v21  ;;  %5737 = vmatprep.subr.mxu0 %v14802_v44 }
 0x5ab   :  { %5871 = vmatprep.subr.mxu1 %v14802_v44  ;;  %5741 = vmatpush2.msra.mxu0 %v14876_v4 }
 0x5ac   :  { %5873 = vmatpush2.msra.mxu1 %v12294_v30  ;;  %5742 = vmatprep.subr.mxu0 %v14802_v44 }
 0x5ad   :  { %5874 = vmatprep.subr.mxu1 %v14802_v44  ;;  %5746 = vmatpush2.msra.mxu0 %v14877_v56 }
 0x5ae   :  { %5876 = vmatpush2.msra.mxu1 %v12307_v47  ;;  %5747 = vmatprep.subr.mxu0 %v14802_v44 }
 0x5af   :  { %5877 = vmatprep.subr.mxu1 %v14802_v44  ;;  %5751 = vmatpush2.msra.mxu0 %v14878_v53 }
 0x5b0   :  { %5879 = vmatpush2.msra.mxu1 %v12323_v40  ;;  %5752 = vmatprep.subr.mxu0 %v14802_v44 }
 0x5b1   :  { %5880 = vmatprep.subr.mxu1 %v14802_v44  ;;  %5756 = vmatpush2.msra.mxu0 %v14879_v51 }
 0x5b2   :  { %5882 = vmatpush2.msra.mxu1 %v12338_v10  ;;  %5757 = vmatprep.subr.mxu0 %v14802_v44 }
 0x5b3   :  { %5883 = vmatprep.subr.mxu1 %v14802_v44  ;;  %5761 = vmatpush2.msra.mxu0 %v14880_v38  ;;  %v5919_v38 = vld [vmem:[#allocation2 + $0x110] sm:$0xff] }
 0x5b4   :  { %5885 = vmatpush2.msra.mxu1 %v12358_v36  ;;  %5762 = vmatprep.subr.mxu0 %v14802_v44  ;;  %v10040_v55 = vpop.f32.mrf.mxu1  ;;  %v12905_v53 = vand.u32 4294901760, %v5919_v38 }
 0x5b5   :  { %5886 = vmatprep.subr.mxu1 %v14802_v44  ;;  %5766 = vmatpush2.msra.mxu0 %v14881_v5  ;;  %v5918_v5 = vld [vmem:[#allocation2 + $0x108] sm:$0xff] }
 0x5b6   :  { %5888 = vmatpush2.msra.mxu1 %v12385_v58  ;;  %5767 = vmatprep.subr.mxu0 %v14802_v44  ;;  %v4669_v2 = vpop.f32.mrf.mxu1  ;;  %v12938_v8 = vsub.f32 %v5919_v38, %v12905_v53 }
 0x5b7   :  { %5890 = vmatprep.mubr.f32.mxu1 %v12438_v19  ;;  %6037 = vmatprep.subr.mxu1 %v14802_v44 }
 0x5b8   :  { %5771 = vmatpush2.msra.mxu0 %v14882_v52  ;;  %5892 = vmatmul.mubr.f32.vlgmr.msra.gmra.mxu1 %v12442_v62  ;;  %v10054_v17 = vpop.f32.mrf.mxu1  ;;  %14907 = vst [vmem:[#allocation21_spill] sm:$0xff] %v12938_v8 }
 0x5b9   :  { %6043 = vmatpush1.msra.mxu1 %v14883_v41  ;;  %5772 = vmatprep.subr.mxu0 %v14802_v44  ;;  %v14890_v41 = vld [vmem:[#allocation29_spill] sm:$0xff] }
 0x5ba   :  { %6044 = vmatprep.subr.mxu1 %v14802_v44  ;;  %5776 = vmatpush2.msra.mxu0 %v14884_v63  ;;  %v4833_v26 = vpop.f32.mrf.mxu1 }
 0x5bb   :  { %6050 = vmatpush1.msra.mxu1 %v14885_v59  ;;  %5777 = vmatprep.subr.mxu0 %v14802_v44  ;;  %v12802_v59 = vsub.f32 %v5899_v31, %v12786_v45 }
 0x5bc   :  { %6051 = vmatprep.subr.mxu1 %v14802_v44  ;;  %5781 = vmatpush2.msra.mxu0 %v12424_v46  ;;  %v10033_v16 = vpop.f32.mrf.mxu0 }
 0x5bd   :  { %6057 = vmatpush1.msra.mxu1 %v14886_v54  ;;  %5782 = vmatprep.subr.mxu0 %v14802_v44  ;;  %v4676_v43 = vadd.f32 %v10040_v55, %v10033_v16  ;;  %v12797_v55 = vand.u32 4294901760, %v5898_v32 }
 0x5be   :  { %6058 = vmatprep.subr.mxu1 %v14802_v44  ;;  %5786 = vmatpush2.msra.mxu0 %v12436_v28  ;;  %v4578_v49 = vpop.f32.mrf.mxu0 }
 0x5bf   :  { %5788 = vmatprep.mubr.f32.mxu0 %v12438_v19  ;;  %6064 = vmatpush1.msra.mxu1 %v14887_v7  ;;  %v4670_v57 = vadd.f32 %v4669_v2, %v4578_v49  ;;  %v10068_v2 = vpop.f32.mrf.mxu1  ;;  %v5926_v49 = vld [vmem:[#allocation2 + $0x148] sm:$0xff] }
 0x5c0   :  { %5790 = vmatmul.mubr.f32.vlgmr.msra.gmra.mxu0 %v12442_v62  ;;  %5927 = vmatprep.subr.mxu0 %v14802_v44  ;;  %v14891_v7 = vld [vmem:[#allocation30_spill] sm:$0xff] }
 0x5c1   :  { %6065 = vmatprep.subr.mxu1 %v14802_v44  ;;  %5929 = vmatpush1.msra.mxu0 %v12229_v27 }
 0x5c2   :  { %6071 = vmatpush1.msra.mxu1 %v14888_v15  ;;  %5930 = vmatprep.subr.mxu0 %v14802_v44  ;;  %v10047_v24 = vpop.f32.mrf.mxu0  ;;  %v5925_v15 = vld [vmem:[#allocation2 + $0x140] sm:$0xff] }
 0x5c3   :  { %6072 = vmatprep.subr.mxu1 %v14802_v44  ;;  %5932 = vmatpush1.msra.mxu0 %v12240_v22  ;;  %v4759_v1 = vadd.f32 %v10047_v24, %v4676_v43  ;;  %v14625_v43 = vand.u32 4294901760, %v12793_v14  ;;  %v12814_v24 = vsub.f32 %v5898_v32, %v12797_v55  ;;  %v12828_v32 = vand.u32 4294901760, %v5925_v15 }
 0x5c4   :  { %6078 = vmatpush1.msra.mxu1 %v14889_v6  ;;  %5933 = vmatprep.subr.mxu0 %v14802_v44  ;;  %v4751_v23 = vpop.f32.mrf.mxu0  ;;  %v14626_v6 = vand.u32 4294901760, %v12802_v59 }
 0x5c5   :  { %6079 = vmatprep.subr.mxu1 %v14802_v44  ;;  %5935 = vmatpush1.msra.mxu0 %v12244_v61  ;;  %v4752_v20 = vadd.f32 %v4751_v23, %v4670_v57  ;;  %v4842_v48 = vadd.f32 %v10054_v17, %v4759_v1  ;;  %v12821_v23 = vand.u32 4294901760, %v5926_v49  ;;  %v14896_v28 = vand.u32 4294901760, %v12814_v24 }
 0x5c6   :  { %6085 = vmatpush1.msra.mxu1 %v14890_v41  ;;  %5936 = vmatprep.subr.mxu0 %v14802_v44  ;;  %v5924_v41 = vld [vmem:[#allocation2 + $0x138] sm:$0xff] }
 0x5c7   :  { %6086 = vmatprep.subr.mxu1 %v14802_v44  ;;  %5938 = vmatpush1.msra.mxu0 %v12257_v37  ;;  %v10061_v16 = vpop.f32.mrf.mxu0  ;;  %v4834_v54 = vadd.f32 %v4833_v26, %v4752_v20  ;;  %v14892_v26 = vld [vmem:[#allocation32_spill] sm:$0xff]  ;;  %v4997_v20 = vpop.f32.mrf.mxu1  ;;  %v6139_v46 = vsub.f32 %v12814_v24, %v14896_v28 }
 0x5c8   :  { %6092 = vmatpush1.msra.mxu1 %v14891_v7  ;;  %5939 = vmatprep.subr.mxu0 %v14802_v44  ;;  %v4925_v17 = vadd.f32 %v10061_v16, %v4842_v48  ;;  %v12826_v48 = vsub.f32 %v5897_v42, %v12806_v3  ;;  %v14893_v16 = vld [vmem:[#allocation34_spill] sm:$0xff]  ;;  %v5923_v7 = vld [vmem:[#allocation2 + $0x130] sm:$0xff] }
 0x5c9   :  { %6093 = vmatprep.subr.mxu1 %v14802_v44  ;;  %5941 = vmatpush1.msra.mxu0 %v12263_v13  ;;  %v4918_v31 = vpop.f32.mrf.mxu0  ;;  %v12862_v42 = vand.u32 4294901760, %v5923_v7 }
 0x5ca   :  { %6099 = vmatpush1.msra.mxu1 %v14892_v26  ;;  %5942 = vmatprep.subr.mxu0 %v14802_v44  ;;  %v12818_v57 = vadd.f32 %v10068_v2, %v4925_v17  ;;  %v4919_v1 = vadd.f32 %v4918_v31, %v4834_v54  ;;  %v6125_v54 = vsub.f32 %v12793_v14, %v14625_v43  ;;  %v14894_v17 = vld [vmem:[#allocation37_spill] sm:$0xff]  ;;  %v14895_v43 = vld [vmem:[#allocation38_spill] sm:$0xff]  ;;  %v14898_v52 = vand.u32 4294901760, %v12826_v48 }
 0x5cb   :  { %6100 = vmatprep.subr.mxu1 %v14802_v44  ;;  %5944 = vmatpush1.msra.mxu0 %v12277_v21  ;;  %v6132_v31 = vsub.f32 %v12802_v59, %v14626_v6  ;;  %v12850_v26 = vsub.f32 %v5926_v49, %v12821_v23  ;;  %v5921_v49 = vld [vmem:[#allocation2 + $0x120] sm:$0xff] }
 0x5cc   :  { %6106 = vmatpush1.msra.mxu1 %v14893_v16  ;;  %5945 = vmatprep.subr.mxu0 %v14802_v44  ;;  %5008 = vst.msk [vmem:[#allocation2 + $0x188] sm:$0xf] %vm1323_vm3, %v12818_v57  ;;  %v12834_v2 = vadd.f32 %v4997_v20, %v4919_v1  ;;  %v12852_v1 = vand.u32 4294901760, %v5924_v41  ;;  %v5922_v20 = vld [vmem:[#allocation2 + $0x128] sm:$0xff]  ;;  %v6126_v6 = vand.u32 4294901760, %v6125_v54  ;;  %v6146_v28 = vsub.f32 %v12826_v48, %v14898_v52 }
 0x5cd   :  { %6107 = vmatprep.subr.mxu1 %v14802_v44  ;;  %5947 = vmatpush1.msra.mxu0 %v12294_v30  ;;  %v12869_v16 = vand.u32 4294901760, %v5922_v20  ;;  %v6140_v54 = vand.u32 4294901760, %v6139_v46 }
 0x5ce   :  { %6113 = vmatpush1.msra.mxu1 %v14894_v17  ;;  %5948 = vmatprep.subr.mxu0 %v14802_v44  ;;  %5007 = vst.msk [vmem:[#allocation2 + $0x180] sm:$0xff] %vm32_vm2, %v12834_v2  ;;  %v12858_v17 = vsub.f32 %v5925_v15, %v12828_v32  ;;  %v5920_v15 = vld [vmem:[#allocation2 + $0x118] sm:$0xff]  ;;  %v12875_v63 = vsub.f32 %v5924_v41, %v12852_v1  ;;  %v6147_v46 = vand.u32 4294901760, %v6146_v28 }
 0x5cf   :  { %6114 = vmatprep.subr.mxu1 %v14802_v44  ;;  %5950 = vmatpush1.msra.mxu0 %v12307_v47  ;;  %v12889_v41 = vand.u32 4294901760, %v5920_v15  ;;  %v12895_v52 = vsub.f32 %v5922_v20, %v12869_v16 }
 0x5d0   :  { %6120 = vmatpush1.msra.mxu1 %v14895_v43  ;;  %5951 = vmatprep.subr.mxu0 %v14802_v44  ;;  %v6133_v43 = vand.u32 4294901760, %v6132_v31  ;;  %14897 = vst [vmem:[#allocation13_spill] sm:$0xff] %v12875_v63  ;;  %v12887_v31 = vsub.f32 %v5923_v7, %v12862_v42  ;;  %v12903_v51 = vand.u32 4294901760, %v12875_v63  ;;  %v14903_v20 = vand.u32 4294901760, %v12858_v17 }
 0x5d1   :  { %6121 = vmatprep.subr.mxu1 %v14802_v44  ;;  %5953 = vmatpush1.msra.mxu0 %v12323_v40  ;;  %14900 = vst [vmem:[#allocation3_spill] sm:$0xff] %v12895_v52  ;;  %v12930_v28 = vand.u32 4294901760, %v12895_v52 }
 0x5d2   :  { %6127 = vmatpush1.msra.mxu1 %v6126_v6  ;;  %5021 = vrot.lane.b32.xlu0 %v12818_v57, %s10082_s26  ;;  %v12883_v6 = vand.u32 4294901760, %v5921_v49  ;;  %14899 = vst [vmem:[#allocation14_spill] sm:$0xff] %v12887_v31  ;;  %14902 = vst [vmem:[#allocation18_spill] sm:$0xff] %v12903_v51  ;;  %v6164_v56 = vsub.f32 %v12858_v17, %v14903_v20  ;;  %v5916_v20 = vld [vmem:[#allocation2 + $0xf8] sm:$0xff]  ;;  %v6171_v11 = vsub.f32 %v12875_v63, %v12903_v51  ;;  %v5913_v63 = vld [vmem:[#allocation2 + $0xe0] sm:$0xff] }
 0x5d3   :  { %5954 = vmatprep.subr.mxu0 %v14802_v44  ;;  %6128 = vmatprep.subr.mxu1 %v14802_v44  ;;  %14906 = vst [vmem:[#allocation19_spill] sm:$0xff] %v12930_v28  ;;  %v12955_v34 = vand.u32 4294901760, %v5916_v20 }
 0x5d4   :  { %5956 = vmatpush1.msra.mxu0 %v12338_v10  ;;  %6134 = vmatpush1.msra.mxu1 %v6133_v43  ;;  %v14901_v43 = vand.u32 4294901760, %v12850_v26  ;;  %v12913_v4 = vsub.f32 %v5921_v49, %v12883_v6  ;;  %v31_v49 = vld [vmem:[%s14501_s5] sm:$0xff]  ;;  %v6165_v35 = vand.u32 4294901760, %v6164_v56  ;;  %v6185_v56 = vsub.f32 %v12895_v52, %v12930_v28  ;;  %s10083_s5 = smov 8  }
 0x5d5   :  { %5019 = vrot.lane.b32.xlu1 %v12834_v2, %s10082_s26  ;;  %5957 = vmatprep.subr.mxu0 %v14802_v44  ;;  %v12986_v52 = vsub.f32 %v5916_v20, %v12955_v34 }
 0x5d6   :  { %6135 = vmatprep.subr.mxu1 %v14802_v44  ;;  %5959 = vmatpush1.msra.mxu0 %v12358_v36  ;;  %v6157_v7 = vsub.f32 %v12850_v26, %v14901_v43  ;;  %v12918_v43 = vand.u32 4294901760, %v12887_v31  ;;  %v12945_v18 = vand.u32 4294901760, %v12913_v4 }
 0x5d7   :  { %6141 = vmatpush1.msra.mxu1 %v6140_v54  ;;  %5013 = vrot.lane.b32.xlu0 %v12818_v57, %s10081_s19  ;;  %v12921_v54 = vsub.f32 %v5920_v15, %v12889_v41  ;;  %v12923_v57 = vand.u32 4294901760, %v5918_v5 }
 0x5d8   :  { %5960 = vmatprep.subr.mxu0 %v14802_v44  ;;  %6142 = vmatprep.subr.mxu1 %v14802_v44  ;;  %14904 = vst [vmem:[#allocation23_spill] sm:$0xff] %v12918_v43  ;;  %v6158_v15 = vand.u32 4294901760, %v6157_v7  ;;  %14908 = vst [vmem:[#allocation24_spill] sm:$0xff] %v12945_v18  ;;  %v6178_v7 = vsub.f32 %v12887_v31, %v12918_v43  ;;  %v5914_v31 = vld [vmem:[#allocation2 + $0xe8] sm:$0xff]  ;;  %v6192_v28 = vsub.f32 %v12913_v4, %v12945_v18 }
 0x5d9   :  { %14905 = vst [vmem:[#allocation16_spill] sm:$0xff] %v12921_v54  ;;  %5962 = vmatpush1.msra.mxu0 %v12385_v58  ;;  %6148 = vmatpush1.msra.mxu1 %v6147_v46  ;;  %v12940_v46 = vand.u32 4294901760, %v5917_v12  ;;  %v12950_v51 = vand.u32 4294901760, %v12921_v54  ;;  %v12953_v38 = vsub.f32 %v5918_v5, %v12923_v57  ;;  %v12990_v18 = vand.u32 4294901760, %v5914_v31 }
 0x5da   :  { %5011 = vrot.lane.b32.xlu1 %v12834_v2, %s10081_s19  ;;  %5963 = vmatprep.subr.mxu0 %v14802_v44  ;;  %v5915_v2 = vld [vmem:[#allocation2 + $0xf0] sm:$0xff]  ;;  %s10084_s19 = smov 16  }
 0x5db   :  { %6153 = vmatprep.subr.mxu1 %v14802_v44  ;;  %5965 = vmatpush1.msra.mxu0 %v12780_v25  ;;  %14909 = vst [vmem:[#allocation25_spill] sm:$0xff] %v12950_v51  ;;  %v12968_v5 = vsub.f32 %v5917_v12, %v12940_v46  ;;  %v12970_v43 = vand.u32 4294901760, %v5915_v2  ;;  %v12983_v12 = vand.u32 4294901760, %v12953_v38 }
 0x5dc   :  { %6159 = vmatpush2.msra.mxu1 %v6158_v15  ;;  %8514 = vperm.xlu0 %10076, %v31_v49   ;;  %v12962_v49 = vand.u32 4294901760, %v6171_v11  ;;  %v12965_v15 = vand.u32 4294901760, %v12938_v8  ;;  %v6199_v11 = vsub.f32 %v12921_v54, %v12950_v51  ;;  %v13006_v54 = vand.u32 4294901760, %v5913_v63 }
 0x5dd   :  { %5966 = vmatprep.subr.mxu0 %v14802_v44  ;;  %6160 = vmatprep.subr.mxu1 %v14802_v44  ;;  %14913 = vst [vmem:[#allocation32_spill] sm:$0xff] %v12983_v12  ;;  %v12999_v51 = vand.u32 4294901760, %v12968_v5  ;;  %v13002_v20 = vsub.f32 %v5915_v2, %v12970_v43  ;;  %v13017_v2 = vand.u32 4294901760, %v12986_v52 }
 0x5de   :  { %5968 = vmatpush1.msra.mxu0 %v12786_v45  ;;  %6166 = vmatpush2.msra.mxu1 %v6165_v35  ;;  %14910 = vst [vmem:[#allocation27_spill] sm:$0xff] %v12962_v49  ;;  %14911 = vst [vmem:[#allocation29_spill] sm:$0xff] %v12965_v15  ;;  %v12978_v35 = vand.u32 4294901760, %v6178_v7  ;;  %v12994_v7 = vand.u32 4294901760, %v6185_v56  ;;  %v13010_v56 = vand.u32 4294901760, %v6192_v28 }
 0x5df   :  { %5969 = vmatprep.subr.mxu0 %v14802_v44  ;;  %6167 = vmatprep.subr.mxu1 %v14802_v44  ;;  %14915 = vst [vmem:[#allocation37_spill] sm:$0xff] %v12999_v51  ;;  %14918 = vst [vmem:[#allocation44_spill] sm:$0xff] %v13017_v2  ;;  %v6220_v28 = vsub.f32 %v12968_v5, %v12999_v51  ;;  %v13042_v51 = vsub.f32 %v5913_v63, %v13006_v54 }
 0x5e0   :  { %5971 = vmatpush1.msra.mxu0 %v12797_v55  ;;  %6173 = vmatpush2.msra.mxu1 %v12962_v49  ;;  %14912 = vst [vmem:[#allocation30_spill] sm:$0xff] %v12978_v35  ;;  %14914 = vst [vmem:[#allocation34_spill] sm:$0xff] %v12994_v7  ;;  %v6206_v49 = vsub.f32 %v12938_v8, %v12965_v15  ;;  %v6213_v15 = vsub.f32 %v12953_v38, %v12983_v12 }
 0x5e1   :  { %5972 = vmatprep.subr.mxu0 %v14802_v44  ;;  %6174 = vmatprep.subr.mxu1 %v14802_v44  ;;  %14916 = vst [vmem:[#allocation38_spill] sm:$0xff] %v13010_v56 }
 0x5e2   :  { %5974 = vmatpush1.msra.mxu0 %v12806_v3  ;;  %6180 = vmatpush2.msra.mxu1 %v12978_v35  ;;  %v13012_v35 = vand.u32 4294901760, %v6199_v11  ;;  %v13023_v8 = vand.u32 4294901760, %v6206_v49  ;;  %v13028_v11 = vand.u32 4294901760, %v13002_v20  ;;  %v6227_v49 = vsub.f32 %v12986_v52, %v13017_v2 }
 0x5e3   :  { %5979 = vmatprep.subr.mxu0 %v14802_v44  ;;  %6181 = vmatprep.subr.mxu1 %v14802_v44 }
 0x5e4   :  { %5981 = vmatpush2.msra.mxu0 %v12821_v23  ;;  %6187 = vmatpush2.msra.mxu1 %v12994_v7  ;;  %14917 = vst [vmem:[#allocation43_spill] sm:$0xff] %v13012_v35  ;;  %14919 = vst [vmem:[#allocation45_spill] sm:$0xff] %v13023_v8  ;;  %v13031_v7 = vsub.f32 %v5914_v31, %v12990_v18  ;;  %v13048_v31 = vand.u32 4294901760, %v6220_v28  ;;  %v13059_v63 = vand.u32 4294901760, %v6227_v49 }
 0x5e5   :  { %5982 = vmatprep.subr.mxu0 %v14802_v44  ;;  %6188 = vmatprep.subr.mxu1 %v14802_v44  ;;  %14920 = vst [vmem:[#allocation46_spill] sm:$0xff] %v13028_v11 }
 0x5e6   :  { %5984 = vmatpush2.msra.mxu0 %v12828_v32  ;;  %6194 = vmatpush2.msra.mxu1 %v13010_v56  ;;  %v13037_v56 = vand.u32 4294901760, %v6213_v15  ;;  %14921 = vst [vmem:[#allocation47_spill] sm:$0xff] %v13048_v31  ;;  %v6234_v15 = vsub.f32 %v13002_v20, %v13028_v11  ;;  %14923 = vst [vmem:[#allocation49_spill] sm:$0xff] %v13059_v63 }
 0x5e7   :  { %5985 = vmatprep.subr.mxu0 %v14802_v44  ;;  %6195 = vmatprep.subr.mxu1 %v14802_v44 }
 0x5e8   :  { %5987 = vmatpush2.msra.mxu0 %v12852_v1  ;;  %6201 = vmatpush2.msra.mxu1 %v13012_v35  ;;  %v13053_v35 = vand.u32 4294901760, %v13031_v7  ;;  %v13068_v28 = vand.u32 4294901760, %v6234_v15 }
 0x5e9   :  { %5988 = vmatprep.subr.mxu0 %v14802_v44  ;;  %6202 = vmatprep.subr.mxu1 %v14802_v44 }
 0x5ea   :  { %5990 = vmatpush2.msra.mxu0 %v12862_v42  ;;  %6208 = vmatpush2.msra.mxu1 %v13023_v8  ;;  %14922 = vst [vmem:[#allocation48_spill] sm:$0xff] %v13053_v35  ;;  %v13062_v8 = vand.u32 4294901760, %v13042_v51  ;;  %14925 = vst [vmem:[#allocation51_spill] sm:$0xff] %v13068_v28  ;;  %v6241_v11 = vsub.f32 %v13031_v7, %v13053_v35 }
 0x5eb   :  { %5991 = vmatprep.subr.mxu0 %v14802_v44  ;;  %6209 = vmatprep.subr.mxu1 %v14802_v44 }
 0x5ec   :  { %5993 = vmatpush2.msra.mxu0 %v12869_v16  ;;  %6215 = vmatpush2.msra.mxu1 %v13037_v56  ;;  %14924 = vst [vmem:[#allocation50_spill] sm:$0xff] %v13062_v8  ;;  %v6248_v49 = vsub.f32 %v13042_v51, %v13062_v8  ;;  %v13082_v15 = vand.u32 4294901760, %v6241_v11 }
 0x5ed   :  { %5994 = vmatprep.subr.mxu0 %v14802_v44  ;;  %6216 = vmatprep.subr.mxu1 %v14802_v44 }
 0x5ee   :  { %5996 = vmatpush2.msra.mxu0 %v12883_v6  ;;  %6222 = vmatpush2.msra.mxu1 %v13048_v31  ;;  %14926 = vst [vmem:[#allocation52_spill] sm:$0xff] %v13082_v15  ;;  %v14932_v31 = vld [vmem:[#allocation5_spill] sm:$0xff] }
 0x5ef   :  { %5997 = vmatprep.subr.mxu0 %v14802_v44  ;;  %6223 = vmatprep.subr.mxu1 %v14802_v44 }
 0x5f0   :  { %5999 = vmatpush2.msra.mxu0 %v12889_v41  ;;  %6229 = vmatpush2.msra.mxu1 %v13059_v63  ;;  %v13088_v63 = vand.u32 4294901760, %v6248_v49 }
 0x5f1   :  { %6000 = vmatprep.subr.mxu0 %v14802_v44  ;;  %6230 = vmatprep.subr.mxu1 %v14802_v44 }
 0x5f2   :  { %6002 = vmatpush2.msra.mxu0 %v12905_v53  ;;  %6236 = vmatpush2.msra.mxu1 %v13068_v28  ;;  %14927 = vst [vmem:[#allocation53_spill] sm:$0xff] %v13088_v63  ;;  %v14930_v28 = vld [vmem:[#allocation15_spill] sm:$0xff] }
 0x5f3   :  { %6003 = vmatprep.subr.mxu0 %v14802_v44  ;;  %6237 = vmatprep.subr.mxu1 %v14802_v44 }
 0x5f4   :  { %6005 = vmatpush2.msra.mxu0 %v12923_v57  ;;  %6243 = vmatpush2.msra.mxu1 %v13082_v15  ;;  %v14929_v15 = vld [vmem:[#allocation42_spill] sm:$0xff] }
 0x5f5   :  { %6006 = vmatprep.subr.mxu0 %v14802_v44  ;;  %6244 = vmatprep.subr.mxu1 %v14802_v44 }
 0x5f6   :  { %6008 = vmatpush2.msra.mxu0 %v12940_v46  ;;  %6250 = vmatpush2.msra.mxu1 %v13088_v63  ;;  %v14928_v63 = vld [vmem:[#allocation41_spill] sm:$0xff] }
 0x5f7   :  { %6009 = vmatprep.subr.mxu0 %v14802_v44  ;;  %6252 = vmatprep.mubr.f32.mxu1 %v12438_v19 }
 0x5f8   :  { %6393 = vmatprep.subr.mxu1 %v14802_v44  ;;  %6011 = vmatpush2.msra.mxu0 %v12955_v34 }
 0x5f9   :  { %6254 = vmatmul.mubr.f32.vlgmr.msra.gmra.mxu1 %v12442_v62  ;;  %6012 = vmatprep.subr.mxu0 %v14802_v44 }
 0x5fa   :  { %6395 = vmatpush1.msra.mxu1 %v12229_v27  ;;  %6014 = vmatpush2.msra.mxu0 %v12970_v43 }
 0x5fb   :  { %6396 = vmatprep.subr.mxu1 %v14802_v44  ;;  %6015 = vmatprep.subr.mxu0 %v14802_v44 }
 0x5fc   :  { %6398 = vmatpush1.msra.mxu1 %v12240_v22  ;;  %6017 = vmatpush2.msra.mxu0 %v12990_v18  ;;  %v5389_v11 = vpop.f32.mrf.mxu1 }
 0x5fd   :  { %6399 = vmatprep.subr.mxu1 %v14802_v44  ;;  %6018 = vmatprep.subr.mxu0 %v14802_v44 }
 0x5fe   :  { %6401 = vmatpush1.msra.mxu1 %v12244_v61  ;;  %6020 = vmatpush2.msra.mxu0 %v13006_v54  ;;  %v5391_v49 = vpop.f32.mrf.mxu1 }
 0x5ff   :  { %6402 = vmatprep.subr.mxu1 %v14802_v44  ;;  %6026 = vmatprep.mubr.f32.mxu0 %v14928_v63  ;;  %v14931_v49 = vld [vmem:[#allocation9_spill] sm:$0xff] }
 0x600   :  { %6404 = vmatpush1.msra.mxu1 %v12257_v37  ;;  %6032 = vmatmul.mubr.f32.vlgmr.msra.gmra.mxu0 %v14929_v15 }
 0x601   :  { %6259 = vmatprep.subr.mxu0 %v14802_v44  ;;  %6405 = vmatprep.subr.mxu1 %v14802_v44 }
 0x602   :  { %6262 = vmatpush1.msra.mxu0 %v14930_v28  ;;  %6407 = vmatpush1.msra.mxu1 %v12263_v13 }
 0x603   :  { %6263 = vmatprep.subr.mxu0 %v14802_v44  ;;  %6408 = vmatprep.subr.mxu1 %v14802_v44 }
 0x604   :  { %6266 = vmatpush1.msra.mxu0 %v14931_v49  ;;  %6410 = vmatpush1.msra.mxu1 %v12277_v21  ;;  %v5167_v63 = vpop.f32.mrf.mxu0  ;;  %v14933_v49 = vld [vmem:[#allocation12_spill] sm:$0xff] }
 0x605   :  { %6267 = vmatprep.subr.mxu0 %v14802_v44  ;;  %6411 = vmatprep.subr.mxu1 %v14802_v44  ;;  %v13124_v15 = vadd.f32 %v5389_v11, %v5167_v63  ;;  %v14942_v11 = vld [vmem:[#allocation35_spill] sm:$0xff] }
 0x606   :  { %6270 = vmatpush1.msra.mxu0 %v14850_v0  ;;  %6413 = vmatpush1.msra.mxu1 %v12294_v30  ;;  %v5169_v28 = vpop.f32.mrf.mxu0  ;;  %v14934_v0 = vld [vmem:[#allocation8_spill] sm:$0xff] }
 0x607   :  { %6271 = vmatprep.subr.mxu0 %v14802_v44  ;;  %6414 = vmatprep.subr.mxu1 %v14802_v44  ;;  %v14943_v28 = vld [vmem:[#allocation36_spill] sm:$0xff] }
 0x608   :  { %6274 = vmatpush1.msra.mxu0 %v14932_v31  ;;  %6416 = vmatpush1.msra.mxu1 %v12307_v47  ;;  %v14941_v31 = vld [vmem:[#allocation40_spill] sm:$0xff] }
 0x609   :  { %6275 = vmatprep.subr.mxu0 %v14802_v44  ;;  %6417 = vmatprep.subr.mxu1 %v14802_v44 }
 0x60a   :  { %6278 = vmatpush1.msra.mxu0 %v14933_v49  ;;  %6419 = vmatpush1.msra.mxu1 %v12323_v40 }
 0x60b   :  { %6279 = vmatprep.subr.mxu0 %v14802_v44  ;;  %6420 = vmatprep.subr.mxu1 %v14802_v44 }
 0x60c   :  { %6282 = vmatpush1.msra.mxu0 %v12305_v39  ;;  %6422 = vmatpush1.msra.mxu1 %v12338_v10  ;;  %v14937_v39 = vld [vmem:[#allocation3_spill] sm:$0xff] }
 0x60d   :  { %6283 = vmatprep.subr.mxu0 %v14802_v44  ;;  %6423 = vmatprep.subr.mxu1 %v14802_v44 }
 0x60e   :  { %6286 = vmatpush1.msra.mxu0 %v14934_v0  ;;  %6425 = vmatpush1.msra.mxu1 %v12358_v36  ;;  %v14946_v0 = vld [vmem:[#allocation11_spill] sm:$0xff] }
 0x60f   :  { %6287 = vmatprep.subr.mxu0 %v14802_v44  ;;  %6426 = vmatprep.subr.mxu1 %v14802_v44 }
 0x610   :  { %6290 = vmatpush1.msra.mxu0 %v14854_v33  ;;  %6428 = vmatpush1.msra.mxu1 %v12385_v58  ;;  %v14940_v33 = vld [vmem:[#allocation39_spill] sm:$0xff] }
 0x611   :  { %6291 = vmatprep.subr.mxu0 %v14802_v44  ;;  %6429 = vmatprep.subr.mxu1 %v14802_v44 }
 0x612   :  { %6294 = vmatpush1.msra.mxu0 %v12354_v29  ;;  %6431 = vmatpush1.msra.mxu1 %v12780_v25  ;;  %v14936_v29 = vld [vmem:[#allocation14_spill] sm:$0xff] }
 0x613   :  { %6295 = vmatprep.subr.mxu0 %v14802_v44  ;;  %6432 = vmatprep.subr.mxu1 %v14802_v44 }
 0x614   :  { %6298 = vmatpush1.msra.mxu0 %v14855_v9  ;;  %6434 = vmatpush1.msra.mxu1 %v12786_v45  ;;  %v14938_v9 = vld [vmem:[#allocation16_spill] sm:$0xff] }
 0x615   :  { %6299 = vmatprep.subr.mxu0 %v14802_v44  ;;  %6435 = vmatprep.subr.mxu1 %v14802_v44 }
 0x616   :  { %6302 = vmatpush1.msra.mxu0 %v12390_v60  ;;  %6437 = vmatpush1.msra.mxu1 %v12797_v55  ;;  %v14939_v60 = vld [vmem:[#allocation21_spill] sm:$0xff] }
 0x617   :  { %6303 = vmatprep.subr.mxu0 %v14802_v44  ;;  %6438 = vmatprep.subr.mxu1 %v14802_v44 }
 0x618   :  { %6306 = vmatpush1.msra.mxu0 %v12413_v50  ;;  %6440 = vmatpush1.msra.mxu1 %v12806_v3  ;;  %v14935_v50 = vld [vmem:[#allocation13_spill] sm:$0xff] }
 0x619   :  { %6307 = vmatprep.subr.mxu0 %v14802_v44  ;;  %6445 = vmatprep.subr.mxu1 %v14802_v44 }
 0x61a   :  { %6310 = vmatpush1.msra.mxu0 %v12793_v14  ;;  %6447 = vmatpush2.msra.mxu1 %v12821_v23 }
 0x61b   :  { %6311 = vmatprep.subr.mxu0 %v14802_v44  ;;  %6448 = vmatprep.subr.mxu1 %v14802_v44 }
 0x61c   :  { %6314 = vmatpush1.msra.mxu0 %v12802_v59  ;;  %6450 = vmatpush2.msra.mxu1 %v12828_v32 }
 0x61d   :  { %6315 = vmatprep.subr.mxu0 %v14802_v44  ;;  %6451 = vmatprep.subr.mxu1 %v14802_v44 }
 0x61e   :  { %6318 = vmatpush1.msra.mxu0 %v12814_v24  ;;  %6453 = vmatpush2.msra.mxu1 %v12852_v1 }
 0x61f   :  { %6319 = vmatprep.subr.mxu0 %v14802_v44  ;;  %6454 = vmatprep.subr.mxu1 %v14802_v44 }
 0x620   :  { %6322 = vmatpush1.msra.mxu0 %v12826_v48  ;;  %6456 = vmatpush2.msra.mxu1 %v12862_v42 }
 0x621   :  { %6327 = vmatprep.subr.mxu0 %v14802_v44  ;;  %6457 = vmatprep.subr.mxu1 %v14802_v44 }
 0x622   :  { %6330 = vmatpush2.msra.mxu0 %v12850_v26  ;;  %6459 = vmatpush2.msra.mxu1 %v12869_v16 }
 0x623   :  { %6331 = vmatprep.subr.mxu0 %v14802_v44  ;;  %6460 = vmatprep.subr.mxu1 %v14802_v44 }
 0x624   :  { %6334 = vmatpush2.msra.mxu0 %v12858_v17  ;;  %6462 = vmatpush2.msra.mxu1 %v12883_v6 }
 0x625   :  { %6335 = vmatprep.subr.mxu0 %v14802_v44  ;;  %6463 = vmatprep.subr.mxu1 %v14802_v44 }
 0x626   :  { %6338 = vmatpush2.msra.mxu0 %v14935_v50  ;;  %6465 = vmatpush2.msra.mxu1 %v12889_v41 }
 0x627   :  { %6339 = vmatprep.subr.mxu0 %v14802_v44  ;;  %6466 = vmatprep.subr.mxu1 %v14802_v44 }
 0x628   :  { %6342 = vmatpush2.msra.mxu0 %v14936_v29  ;;  %6468 = vmatpush2.msra.mxu1 %v12905_v53 }
 0x629   :  { %6343 = vmatprep.subr.mxu0 %v14802_v44  ;;  %6469 = vmatprep.subr.mxu1 %v14802_v44 }
 0x62a   :  { %6346 = vmatpush2.msra.mxu0 %v14937_v39  ;;  %6471 = vmatpush2.msra.mxu1 %v12923_v57 }
 0x62b   :  { %6347 = vmatprep.subr.mxu0 %v14802_v44  ;;  %6472 = vmatprep.subr.mxu1 %v14802_v44 }
 0x62c   :  { %6350 = vmatpush2.msra.mxu0 %v12913_v4  ;;  %6474 = vmatpush2.msra.mxu1 %v12940_v46 }
 0x62d   :  { %6351 = vmatprep.subr.mxu0 %v14802_v44  ;;  %6475 = vmatprep.subr.mxu1 %v14802_v44 }
 0x62e   :  { %6354 = vmatpush2.msra.mxu0 %v14938_v9  ;;  %6477 = vmatpush2.msra.mxu1 %v12955_v34 }
 0x62f   :  { %6355 = vmatprep.subr.mxu0 %v14802_v44  ;;  %6478 = vmatprep.subr.mxu1 %v14802_v44 }
 0x630   :  { %6358 = vmatpush2.msra.mxu0 %v14939_v60  ;;  %6480 = vmatpush2.msra.mxu1 %v12970_v43 }
 0x631   :  { %6359 = vmatprep.subr.mxu0 %v14802_v44  ;;  %6481 = vmatprep.subr.mxu1 %v14802_v44 }
 0x632   :  { %6362 = vmatpush2.msra.mxu0 %v12953_v38  ;;  %6483 = vmatpush2.msra.mxu1 %v12990_v18 }
 0x633   :  { %6363 = vmatprep.subr.mxu0 %v14802_v44  ;;  %6484 = vmatprep.subr.mxu1 %v14802_v44 }
 0x634   :  { %6366 = vmatpush2.msra.mxu0 %v12968_v5  ;;  %6486 = vmatpush2.msra.mxu1 %v13006_v54 }
 0x635   :  { %6367 = vmatprep.subr.mxu0 %v14802_v44  ;;  %6490 = vmatprep.mubr.f32.mxu1 %v14940_v33 }
 0x636   :  { %6661 = vmatprep.subr.mxu1 %v14802_v44  ;;  %6370 = vmatpush2.msra.mxu0 %v12986_v52 }
 0x637   :  { %6494 = vmatmul.mubr.f32.vlgmr.msra.gmra.mxu1 %v14941_v31  ;;  %6371 = vmatprep.subr.mxu0 %v14802_v44 }
 0x638   :  { %6663 = vmatpush1.msra.mxu1 %v12229_v27  ;;  %6374 = vmatpush2.msra.mxu0 %v13002_v20 }
 0x639   :  { %6664 = vmatprep.subr.mxu1 %v14802_v44  ;;  %6375 = vmatprep.subr.mxu0 %v14802_v44 }
 0x63a   :  { %6666 = vmatpush1.msra.mxu1 %v12240_v22  ;;  %6378 = vmatpush2.msra.mxu0 %v13031_v7  ;;  %v5629_v63 = vpop.f32.mrf.mxu1  ;;  %v14944_v22 = vld [vmem:[#allocation10_spill] sm:$0xff] }
 0x63b   :  { %6667 = vmatprep.subr.mxu1 %v14802_v44  ;;  %6379 = vmatprep.subr.mxu0 %v14802_v44 }
 0x63c   :  { %6669 = vmatpush1.msra.mxu1 %v12244_v61  ;;  %6382 = vmatpush2.msra.mxu0 %v13042_v51  ;;  %v5631_v27 = vpop.f32.mrf.mxu1  ;;  %v14945_v61 = vld [vmem:[#allocation4_spill] sm:$0xff] }
 0x63d   :  { %6670 = vmatprep.subr.mxu1 %v14802_v44  ;;  %6385 = vmatprep.mubr.f32.mxu0 %v14942_v11 }
 0x63e   :  { %6672 = vmatpush1.msra.mxu1 %v12257_v37  ;;  %6388 = vmatmul.mubr.f32.vlgmr.msra.gmra.mxu0 %v14943_v28 }
 0x63f   :  { %6499 = vmatprep.subr.mxu0 %v14802_v44  ;;  %6673 = vmatprep.subr.mxu1 %v14802_v44 }
 0x640   :  { %6503 = vmatpush1.msra.mxu0 %v14944_v22  ;;  %6675 = vmatpush1.msra.mxu1 %v12263_v13  ;;  %v14947_v22 = vld [vmem:[#allocation7_spill] sm:$0xff] }
 0x641   :  { %6504 = vmatprep.subr.mxu0 %v14802_v44  ;;  %6676 = vmatprep.subr.mxu1 %v14802_v44 }
 0x642   :  { %6508 = vmatpush1.msra.mxu0 %v14945_v61  ;;  %6678 = vmatpush1.msra.mxu1 %v12277_v21  ;;  %v5523_v49 = vpop.f32.mrf.mxu0  ;;  %v14949_v61 = vld [vmem:[#allocation17_spill] sm:$0xff] }
 0x643   :  { %6509 = vmatprep.subr.mxu0 %v14802_v44  ;;  %6679 = vmatprep.subr.mxu1 %v14802_v44  ;;  %v5524_v37 = vadd.f32 %v5523_v49, %v13124_v15  ;;  %v14951_v49 = vld [vmem:[#allocation22_spill] sm:$0xff] }
 0x644   :  { %6513 = vmatpush1.msra.mxu0 %v14946_v0  ;;  %6681 = vmatpush1.msra.mxu1 %v12294_v30  ;;  %v5022_v13 = vpop.permute.xlu0 %5021  ;;  %v5525_v27 = vpop.f32.mrf.mxu0  ;;  %v14948_v30 = vld [vmem:[#allocation6_spill] sm:$0xff]  ;;  %v14968_v0 = vld [vmem:[#allocation37_spill] sm:$0xff] }
 0x645   :  { %6514 = vmatprep.subr.mxu0 %v14802_v44  ;;  %6682 = vmatprep.subr.mxu1 %v14802_v44  ;;  %5026 = vst.msk [vmem:[#allocation2 + $0x1a8] sm:$0xf] %vm1323_vm3, %v5022_v13  ;;  %v13256_v21 = vadd.f32 %v5629_v63, %v5524_v37  ;;  %v14967_v37 = vld [vmem:[#allocation29_spill] sm:$0xff]  ;;  %v14969_v13 = vld [vmem:[#allocation27_spill] sm:$0xff]  ;;  %v14970_v27 = vld [vmem:[#allocation46_spill] sm:$0xff] }
 0x646   :  { %6518 = vmatpush1.msra.mxu0 %v14947_v22  ;;  %6684 = vmatpush1.msra.mxu1 %v12307_v47  ;;  %v14950_v47 = vld [vmem:[#allocation20_spill] sm:$0xff]  ;;  %v14971_v22 = vld [vmem:[#allocation30_spill] sm:$0xff] }
 0x647   :  { %6519 = vmatprep.subr.mxu0 %v14802_v44  ;;  %6685 = vmatprep.subr.mxu1 %v14802_v44  ;;  %v5020_v15 = vpop.permute.xlu1 %5019 }
 0x648   :  { %6523 = vmatpush1.msra.mxu0 %v14948_v30  ;;  %6687 = vmatpush1.msra.mxu1 %v12323_v40  ;;  %5025 = vst.msk [vmem:[#allocation2 + $0x1a0] sm:$0xff] %vm32_vm2, %v5020_v15  ;;  %v6766_v30 = vld [vmem:[#allocation2 + $0xd8] sm:$0xff] }
 0x649   :  { %6524 = vmatprep.subr.mxu0 %v14802_v44  ;;  %6688 = vmatprep.subr.mxu1 %v14802_v44  ;;  %v5014_v63 = vpop.permute.xlu0 %5013 }
 0x64a   :  { %6528 = vmatpush1.msra.mxu0 %v14949_v61  ;;  %6690 = vmatpush1.msra.mxu1 %v12338_v10  ;;  %5018 = vst.msk [vmem:[#allocation2 + $0x198] sm:$0xf] %vm1323_vm3, %v5014_v63  ;;  %v14952_v10 = vld [vmem:[#allocation26_spill] sm:$0xff] }
 0x64b   :  { %6529 = vmatprep.subr.mxu0 %v14802_v44  ;;  %6691 = vmatprep.subr.mxu1 %v14802_v44  ;;  %v14972_v63 = vld [vmem:[#allocation34_spill] sm:$0xff] }
 0x64c   :  { %6533 = vmatpush1.msra.mxu0 %v14950_v47  ;;  %6693 = vmatpush1.msra.mxu1 %v12358_v36  ;;  %v5012_v40 = vpop.permute.xlu1 %5011  ;;  %v14953_v36 = vld [vmem:[#allocation28_spill] sm:$0xff]  ;;  %v6765_v47 = vld [vmem:[#allocation2 + $0xd0] sm:$0xff] }
 0x64d   :  { %6534 = vmatprep.subr.mxu0 %v14802_v44  ;;  %6694 = vmatprep.subr.mxu1 %v14802_v44  ;;  %5017 = vst.msk [vmem:[#allocation2 + $0x190] sm:$0xff] %vm32_vm2, %v5012_v40  ;;  %v14973_v40 = vld [vmem:[#allocation38_spill] sm:$0xff] }
 0x64e   :  { %6538 = vmatpush1.msra.mxu0 %v14951_v49  ;;  %6696 = vmatpush1.msra.mxu1 %v12385_v58  ;;  %v14954_v58 = vld [vmem:[#allocation31_spill] sm:$0xff]  ;;  %v13377_v49 = vand.u32 4294901760, %v6766_v30 }
 0x64f   :  { %6539 = vmatprep.subr.mxu0 %v14802_v44  ;;  %6697 = vmatprep.subr.mxu1 %v14802_v44 }
 0x650   :  { %6543 = vmatpush1.msra.mxu0 %v14952_v10  ;;  %6699 = vmatpush1.msra.mxu1 %v12780_v25  ;;  %v14955_v25 = vld [vmem:[#allocation33_spill] sm:$0xff]  ;;  %v6764_v10 = vld [vmem:[#allocation2 + $0xc8] sm:$0xff] }
 0x651   :  { %6544 = vmatprep.subr.mxu0 %v14802_v44  ;;  %6700 = vmatprep.subr.mxu1 %v14802_v44 }
 0x652   :  { %6548 = vmatpush1.msra.mxu0 %v14953_v36  ;;  %6702 = vmatpush1.msra.mxu1 %v12786_v45  ;;  %v14956_v45 = vand.u32 4294901760, %v12793_v14  ;;  %v14959_v14 = vand.u32 4294901760, %v12826_v48  ;;  %v14963_v48 = vld [vmem:[#allocation23_spill] sm:$0xff] }
 0x653   :  { %6549 = vmatprep.subr.mxu0 %v14802_v44  ;;  %6703 = vmatprep.subr.mxu1 %v14802_v44  ;;  %v14974_v36 = vld [vmem:[#allocation43_spill] sm:$0xff] }
 0x654   :  { %6553 = vmatpush1.msra.mxu0 %v14954_v58  ;;  %6705 = vmatpush1.msra.mxu1 %v12797_v55  ;;  %v14957_v55 = vand.u32 4294901760, %v12802_v59  ;;  %v14960_v59 = vand.u32 4294901760, %v12850_v26  ;;  %v14965_v26 = vld [vmem:[#allocation24_spill] sm:$0xff]  ;;  %v13383_v58 = vand.u32 4294901760, %v6765_v47 }
 0x655   :  { %6554 = vmatprep.subr.mxu0 %v14802_v44  ;;  %6706 = vmatprep.subr.mxu1 %v14802_v44 }
 0x656   :  { %6558 = vmatpush1.msra.mxu0 %v14955_v25  ;;  %6708 = vmatpush1.msra.mxu1 %v12806_v3  ;;  %v14958_v3 = vand.u32 4294901760, %v12814_v24  ;;  %v14961_v24 = vand.u32 4294901760, %v12858_v17  ;;  %v14966_v17 = vld [vmem:[#allocation25_spill] sm:$0xff] }
 0x657   :  { %6559 = vmatprep.subr.mxu0 %v14802_v44  ;;  %6713 = vmatprep.subr.mxu1 %v14802_v44  ;;  %v6763_v25 = vld [vmem:[#allocation2 + $0xc0] sm:$0xff] }
 0x658   :  { %6563 = vmatpush1.msra.mxu0 %v14956_v45  ;;  %6715 = vmatpush2.msra.mxu1 %v12821_v23  ;;  %v14962_v23 = vld [vmem:[#allocation18_spill] sm:$0xff]  ;;  %v14975_v45 = vld [vmem:[#allocation45_spill] sm:$0xff] }
 0x659   :  { %6564 = vmatprep.subr.mxu0 %v14802_v44  ;;  %6716 = vmatprep.subr.mxu1 %v14802_v44 }
 0x65a   :  { %6568 = vmatpush1.msra.mxu0 %v14957_v55  ;;  %6718 = vmatpush2.msra.mxu1 %v12828_v32  ;;  %v14964_v32 = vld [vmem:[#allocation19_spill] sm:$0xff] }
 0x65b   :  { %6569 = vmatprep.subr.mxu0 %v14802_v44  ;;  %6719 = vmatprep.subr.mxu1 %v14802_v44 }
 0x65c   :  { %6573 = vmatpush1.msra.mxu0 %v14958_v3  ;;  %6721 = vmatpush2.msra.mxu1 %v12852_v1  ;;  %v13390_v3 = vsub.f32 %v6766_v30, %v13377_v49 }
 0x65d   :  { %6574 = vmatprep.subr.mxu0 %v14802_v44  ;;  %6722 = vmatprep.subr.mxu1 %v14802_v44 }
 0x65e   :  { %6578 = vmatpush1.msra.mxu0 %v14959_v14  ;;  %6724 = vmatpush2.msra.mxu1 %v12862_v42  ;;  %v13392_v14 = vand.u32 4294901760, %v6764_v10 }
 0x65f   :  { %6583 = vmatprep.subr.mxu0 %v14802_v44  ;;  %6725 = vmatprep.subr.mxu1 %v14802_v44 }
 0x660   :  { %6587 = vmatpush2.msra.mxu0 %v14960_v59  ;;  %6727 = vmatpush2.msra.mxu1 %v12869_v16 }
 0x661   :  { %6588 = vmatprep.subr.mxu0 %v14802_v44  ;;  %6728 = vmatprep.subr.mxu1 %v14802_v44 }
 0x662   :  { %6592 = vmatpush2.msra.mxu0 %v14961_v24  ;;  %6730 = vmatpush2.msra.mxu1 %v12883_v6  ;;  %v6792_v24 = vld [vmem:[#allocation2 + $0x1a8] sm:$0xff] }
 0x663   :  { %6593 = vmatprep.subr.mxu0 %v14802_v44  ;;  %6731 = vmatprep.subr.mxu1 %v14802_v44 }
 0x664   :  { %6597 = vmatpush2.msra.mxu0 %v14962_v23  ;;  %6733 = vmatpush2.msra.mxu1 %v12889_v41  ;;  %v6784_v23 = vld [vmem:[#allocation2 + $0x168] sm:$0xff] }
 0x665   :  { %6598 = vmatprep.subr.mxu0 %v14802_v44  ;;  %6734 = vmatprep.subr.mxu1 %v14802_v44  ;;  %v13508_v33 = vand.u32 4294901760, %v6784_v23 }
 0x666   :  { %6602 = vmatpush2.msra.mxu0 %v14963_v48  ;;  %6736 = vmatpush2.msra.mxu1 %v12905_v53 }
 0x667   :  { %6603 = vmatprep.subr.mxu0 %v14802_v44  ;;  %6737 = vmatprep.subr.mxu1 %v14802_v44 }
 0x668   :  { %6607 = vmatpush2.msra.mxu0 %v14964_v32  ;;  %6739 = vmatpush2.msra.mxu1 %v12923_v57  ;;  %v6785_v32 = vld [vmem:[#allocation2 + $0x170] sm:$0xff] }
 0x669   :  { %6608 = vmatprep.subr.mxu0 %v14802_v44  ;;  %6740 = vmatprep.subr.mxu1 %v14802_v44 }
 0x66a   :  { %6612 = vmatpush2.msra.mxu0 %v14965_v26  ;;  %6742 = vmatpush2.msra.mxu1 %v12940_v46 }
 0x66b   :  { %6613 = vmatprep.subr.mxu0 %v14802_v44  ;;  %6743 = vmatprep.subr.mxu1 %v14802_v44 }
 0x66c   :  { %6617 = vmatpush2.msra.mxu0 %v14966_v17  ;;  %6745 = vmatpush2.msra.mxu1 %v12955_v34 }
 0x66d   :  { %6618 = vmatprep.subr.mxu0 %v14802_v44  ;;  %6746 = vmatprep.subr.mxu1 %v14802_v44 }
 0x66e   :  { %6622 = vmatpush2.msra.mxu0 %v14967_v37  ;;  %6748 = vmatpush2.msra.mxu1 %v12970_v43 }
 0x66f   :  { %6623 = vmatprep.subr.mxu0 %v14802_v44  ;;  %6749 = vmatprep.subr.mxu1 %v14802_v44 }
 0x670   :  { %6627 = vmatpush2.msra.mxu0 %v12983_v12  ;;  %6751 = vmatpush2.msra.mxu1 %v12990_v18 }
 0x671   :  { %6628 = vmatprep.subr.mxu0 %v14802_v44  ;;  %6752 = vmatprep.subr.mxu1 %v14802_v44 }
 0x672   :  { %6632 = vmatpush2.msra.mxu0 %v14968_v0  ;;  %6754 = vmatpush2.msra.mxu1 %v13006_v54 }
 0x673   :  { %6633 = vmatprep.subr.mxu0 %v14802_v44  ;;  %6756 = vmatprep.mubr.f32.mxu1 %v12438_v19 }
 0x674   :  { %6903 = vmatprep.subr.mxu1 %v14802_v44  ;;  %6637 = vmatpush2.msra.mxu0 %v13017_v2  ;;  %v6786_v2 = vld [vmem:[#allocation2 + $0x178] sm:$0xff] }
 0x675   :  { %6758 = vmatmul.mubr.f32.vlgmr.msra.gmra.mxu1 %v12442_v62  ;;  %6638 = vmatprep.subr.mxu0 %v14802_v44  ;;  %v13469_v26 = vand.u32 4294901760, %v6786_v2 }
 0x676   :  { %6909 = vmatpush1.msra.mxu1 %v14969_v13  ;;  %6642 = vmatpush2.msra.mxu0 %v14970_v27  ;;  %v6787_v27 = vld [vmem:[#allocation2 + $0x180] sm:$0xff] }
 0x677   :  { %6910 = vmatprep.subr.mxu1 %v14802_v44  ;;  %6643 = vmatprep.subr.mxu0 %v14802_v44  ;;  %v13467_v17 = vand.u32 4294901760, %v6787_v27  ;;  %v13499_v28 = vsub.f32 %v6786_v2, %v13469_v26 }
 0x678   :  { %6916 = vmatpush1.msra.mxu1 %v14971_v22  ;;  %6647 = vmatpush2.msra.mxu0 %v13053_v35  ;;  %v5893_v15 = vpop.f32.mrf.mxu1  ;;  %v13400_v22 = vsub.f32 %v6765_v47, %v13383_v58  ;;  %v13414_v47 = vand.u32 4294901760, %v6792_v24 }
 0x679   :  { %6917 = vmatprep.subr.mxu1 %v14802_v44  ;;  %6648 = vmatprep.subr.mxu0 %v14802_v44  ;;  %14995 = vst [vmem:[#allocation10_spill] sm:$0xff] %v13499_v28 }
 0x67a   :  { %6923 = vmatpush1.msra.mxu1 %v14972_v63  ;;  %6652 = vmatpush2.msra.mxu0 %v13062_v8  ;;  %v5895_v61 = vpop.f32.mrf.mxu1  ;;  %14976 = vst [vmem:[#allocation15_spill] sm:$0xff] %v13400_v22  ;;  %v13402_v63 = vand.u32 4294901760, %v6763_v25  ;;  %v14984_v8 = vld [vmem:[#allocation52_spill] sm:$0xff] }
 0x67b   :  { %6924 = vmatprep.subr.mxu1 %v14802_v44  ;;  %6654 = vmatprep.mubr.f32.mxu0 %v12438_v19  ;;  %v6791_v61 = vld [vmem:[#allocation2 + $0x1a0] sm:$0xff] }
 0x67c   :  { %6930 = vmatpush1.msra.mxu1 %v14973_v40  ;;  %6656 = vmatmul.mubr.f32.vlgmr.msra.gmra.mxu0 %v12442_v62  ;;  %v14675_v40 = vand.u32 4294901760, %v13390_v3 }
 0x67d   :  { %6793 = vmatprep.subr.mxu0 %v14802_v44  ;;  %6931 = vmatprep.subr.mxu1 %v14802_v44 }
 0x67e   :  { %6795 = vmatpush1.msra.mxu0 %v12852_v1  ;;  %6937 = vmatpush1.msra.mxu1 %v14974_v36  ;;  %v6790_v36 = vld [vmem:[#allocation2 + $0x198] sm:$0xff] }
 0x67f   :  { %6796 = vmatprep.subr.mxu0 %v14802_v44  ;;  %6938 = vmatprep.subr.mxu1 %v14802_v44 }
 0x680   :  { %6798 = vmatpush1.msra.mxu0 %v12862_v42  ;;  %6944 = vmatpush1.msra.mxu1 %v14975_v45  ;;  %v5791_v55 = vpop.f32.mrf.mxu0  ;;  %v13437_v45 = vand.u32 4294901760, %v6790_v36 }
 0x681   :  { %6799 = vmatprep.subr.mxu0 %v14802_v44  ;;  %6945 = vmatprep.subr.mxu1 %v14802_v44  ;;  %v5792_v59 = vadd.f32 %v5791_v55, %v13256_v21  ;;  %v14978_v21 = vld [vmem:[#allocation47_spill] sm:$0xff]  ;;  %v13422_v55 = vsub.f32 %v6763_v25, %v13402_v63  ;;  %v13435_v25 = vsub.f32 %v6792_v24, %v13414_v47 }
 0x682   :  { %6801 = vmatpush1.msra.mxu0 %v12869_v16  ;;  %6951 = vmatpush1.msra.mxu1 %v13037_v56  ;;  %v5793_v13 = vpop.f32.mrf.mxu0  ;;  %v13412_v56 = vsub.f32 %v6764_v10, %v13392_v14  ;;  %v6789_v10 = vld [vmem:[#allocation2 + $0x190] sm:$0xff]  ;;  %v13463_v37 = vsub.f32 %v6790_v36, %v13437_v45 }
 0x683   :  { %6802 = vmatprep.subr.mxu0 %v14802_v44  ;;  %6952 = vmatprep.subr.mxu1 %v14802_v44  ;;  %v13406_v30 = vadd.f32 %v5893_v15, %v5792_v59  ;;  %v14980_v15 = vld [vmem:[#allocation49_spill] sm:$0xff]  ;;  %14981 = vst [vmem:[#allocation12_spill] sm:$0xff] %v13422_v55  ;;  %v13424_v59 = vand.u32 4294901760, %v6791_v61  ;;  %v14982_v13 = vld [vmem:[#allocation51_spill] sm:$0xff]  ;;  %14983 = vst [vmem:[#allocation8_spill] sm:$0xff] %v13435_v25  ;;  %v13450_v35 = vand.u32 4294901760, %v6789_v10 }
 0x684   :  { %6804 = vmatpush1.msra.mxu0 %v12883_v6  ;;  %6958 = vmatpush1.msra.mxu1 %v14978_v21  ;;  %14979 = vst [vmem:[#allocation5_spill] sm:$0xff] %v13412_v56  ;;  %v6991_v21 = vsub.f32 %v13390_v3, %v14675_v40  ;;  %14989 = vst [vmem:[#allocation14_spill] sm:$0xff] %v13463_v37  ;;  %v13489_v36 = vand.u32 4294901760, %v13463_v37 }
 0x685   :  { %14977 = vst [vmem:[#allocation9_spill] sm:$0xff] %v13406_v30  ;;  %6805 = vmatprep.subr.mxu0 %v14802_v44  ;;  %6959 = vmatprep.subr.mxu1 %v14802_v44  ;;  %v6788_v30 = vld [vmem:[#allocation2 + $0x188] sm:$0xff]  ;;  %v13448_v24 = vsub.f32 %v6791_v61, %v13424_v59  ;;  %v13477_v12 = vsub.f32 %v6789_v10, %v13450_v35  ;;  %v13491_v10 = vand.u32 4294901760, %v6785_v32 }
 0x686   :  { %6807 = vmatpush1.msra.mxu0 %v12889_v41  ;;  %6965 = vmatpush1.msra.mxu1 %v14980_v15  ;;  %v13454_v0 = vand.u32 4294901760, %v6788_v30  ;;  %v14988_v15 = vand.u32 4294901760, %v13412_v56  ;;  %14994 = vst [vmem:[#allocation21_spill] sm:$0xff] %v13489_v36 }
 0x687   :  { %6808 = vmatprep.subr.mxu0 %v14802_v44  ;;  %6966 = vmatprep.subr.mxu1 %v14802_v44  ;;  %14986 = vst [vmem:[#allocation13_spill] sm:$0xff] %v13448_v24  ;;  %14991 = vst [vmem:[#allocation3_spill] sm:$0xff] %v13477_v12  ;;  %v13506_v31 = vand.u32 4294901760, %v13477_v12 }
 0x688   :  { %6810 = vmatpush1.msra.mxu0 %v12905_v53  ;;  %6972 = vmatpush1.msra.mxu1 %v14982_v13  ;;  %v14985_v13 = vand.u32 4294901760, %v13400_v22  ;;  %v7005_v61 = vsub.f32 %v13412_v56, %v14988_v15  ;;  %v14990_v15 = vand.u32 4294901760, %v13422_v55  ;;  %v13482_v48 = vsub.f32 %v6788_v30, %v13454_v0 }
 0x689   :  { %6811 = vmatprep.subr.mxu0 %v14802_v44  ;;  %6973 = vmatprep.subr.mxu1 %v14802_v44  ;;  %v13496_v30 = vsub.f32 %v6787_v27, %v13467_v17  ;;  %14997 = vst [vmem:[#allocation4_spill] sm:$0xff] %v13506_v31  ;;  %v6782_v27 = vld [vmem:[#allocation2 + $0x158] sm:$0xff] }
 0x68a   :  { %6813 = vmatpush1.msra.mxu0 %v12923_v57  ;;  %6979 = vmatpush1.msra.mxu1 %v14984_v8  ;;  %v6998_v40 = vsub.f32 %v13400_v22, %v14985_v13  ;;  %v14987_v8 = vld [vmem:[#allocation53_spill] sm:$0xff]  ;;  %v6992_v13 = vand.u32 4294901760, %v6991_v21  ;;  %14992 = vst [vmem:[#allocation16_spill] sm:$0xff] %v13482_v48  ;;  %v13513_v2 = vand.u32 4294901760, %v13482_v48 }
 0x68b   :  { %6814 = vmatprep.subr.mxu0 %v14802_v44  ;;  %6980 = vmatprep.subr.mxu1 %v14802_v44  ;;  %v6779_v22 = vld [vmem:[#allocation2 + $0x140] sm:$0xff] }
 0x68c   :  { %6816 = vmatpush1.msra.mxu0 %v12940_v46  ;;  %6986 = vmatpush1.msra.mxu1 %v14987_v8  ;;  %v6999_v21 = vand.u32 4294901760, %v6998_v40  ;;  %v7012_v8 = vsub.f32 %v13422_v55, %v14990_v15  ;;  %v7006_v40 = vand.u32 4294901760, %v7005_v61  ;;  %v6783_v61 = vld [vmem:[#allocation2 + $0x160] sm:$0xff]  ;;  %14998 = vst [vmem:[#allocation11_spill] sm:$0xff] %v13513_v2  ;;  %v13529_v55 = vand.u32 4294901760, %v13499_v28 }
 0x68d   :  { %6817 = vmatprep.subr.mxu0 %v14802_v44  ;;  %6987 = vmatprep.subr.mxu1 %v14802_v44  ;;  %v7051_v56 = vsub.f32 %v13482_v48, %v13513_v2 }
 0x68e   :  { %6819 = vmatpush1.msra.mxu0 %v12955_v34  ;;  %6993 = vmatpush1.msra.mxu1 %v6992_v13  ;;  %v14993_v13 = vand.u32 4294901760, %v13435_v25  ;;  %15001 = vst [vmem:[#allocation17_spill] sm:$0xff] %v13529_v55 }
 0x68f   :  { %6820 = vmatprep.subr.mxu0 %v14802_v44  ;;  %6994 = vmatprep.subr.mxu1 %v14802_v44 }
 0x690   :  { %6822 = vmatpush1.msra.mxu0 %v12970_v43  ;;  %7000 = vmatpush1.msra.mxu1 %v6999_v21  ;;  %v7023_v15 = vsub.f32 %v13435_v25, %v14993_v13  ;;  %v7013_v21 = vand.u32 4294901760, %v7012_v8  ;;  %v14996_v13 = vand.u32 4294901760, %v13448_v24  ;;  %v13526_v25 = vand.u32 4294901760, %v13496_v30 }
 0x691   :  { %6823 = vmatprep.subr.mxu0 %v14802_v44  ;;  %7001 = vmatprep.subr.mxu1 %v14802_v44 }
 0x692   :  { %6825 = vmatpush1.msra.mxu0 %v12990_v18  ;;  %7007 = vmatpush1.msra.mxu1 %v7006_v40  ;;  %v7030_v11 = vsub.f32 %v13448_v24, %v14996_v13  ;;  %v7024_v8 = vand.u32 4294901760, %v7023_v15  ;;  %v7037_v40 = vsub.f32 %v13463_v37, %v13489_v36  ;;  %v13519_v13 = vsub.f32 %v6785_v32, %v13491_v10 }
 0x693   :  { %6826 = vmatprep.subr.mxu0 %v14802_v44  ;;  %7008 = vmatprep.subr.mxu1 %v14802_v44  ;;  %v13521_v24 = vand.u32 4294901760, %v6783_v61  ;;  %15000 = vst [vmem:[#allocation6_spill] sm:$0xff] %v13526_v25  ;;  %v7044_v32 = vsub.f32 %v13477_v12, %v13506_v31  ;;  %v13535_v36 = vsub.f32 %v6784_v23, %v13508_v33  ;;  %v13537_v37 = vand.u32 4294901760, %v6782_v27  ;;  %v6780_v12 = vld [vmem:[#allocation2 + $0x148] sm:$0xff] }
 0x694   :  { %6828 = vmatpush1.msra.mxu0 %v13006_v54  ;;  %7014 = vmatpush1.msra.mxu1 %v7013_v21  ;;  %14999 = vst [vmem:[#allocation7_spill] sm:$0xff] %v13519_v13  ;;  %v6781_v21 = vld [vmem:[#allocation2 + $0x150] sm:$0xff]  ;;  %v7031_v15 = vand.u32 4294901760, %v7030_v11  ;;  %v13547_v11 = vand.u32 4294901760, %v13519_v13  ;;  %v7058_v2 = vsub.f32 %v13496_v30, %v13526_v25  ;;  %v13572_v25 = vand.u32 4294901760, %v6780_v12 }
 0x695   :  { %6829 = vmatprep.subr.mxu0 %v14802_v44  ;;  %7019 = vmatprep.subr.mxu1 %v14802_v44  ;;  %v13550_v23 = vsub.f32 %v6783_v61, %v13521_v24  ;;  %v13552_v31 = vand.u32 4294901760, %v6781_v21  ;;  %v7065_v61 = vsub.f32 %v13499_v28, %v13529_v55  ;;  %v13568_v48 = vsub.f32 %v6782_v27, %v13537_v37 }
 0x696   :  { %6831 = vmatpush1.msra.mxu0 %v13377_v49  ;;  %7025 = vmatpush2.msra.mxu1 %v7024_v8  ;;  %v13544_v8 = vand.u32 4294901760, %v7037_v40  ;;  %15003 = vst [vmem:[#allocation22_spill] sm:$0xff] %v13547_v11  ;;  %v13560_v40 = vand.u32 4294901760, %v7044_v32  ;;  %v13576_v32 = vand.u32 4294901760, %v7051_v56  ;;  %v13588_v28 = vand.u32 4294901760, %v6779_v22 }
 0x697   :  { %6832 = vmatprep.subr.mxu0 %v14802_v44  ;;  %7026 = vmatprep.subr.mxu1 %v14802_v44  ;;  %v13581_v55 = vand.u32 4294901760, %v13550_v23  ;;  %v13584_v27 = vsub.f32 %v6781_v21, %v13552_v31  ;;  %v13592_v56 = vand.u32 4294901760, %v7058_v2  ;;  %v13599_v21 = vand.u32 4294901760, %v13568_v48 }
 0x698   :  { %6834 = vmatpush1.msra.mxu0 %v13383_v58  ;;  %7032 = vmatpush2.msra.mxu1 %v7031_v15  ;;  %15002 = vst [vmem:[#allocation20_spill] sm:$0xff] %v13544_v8  ;;  %15004 = vst [vmem:[#allocation26_spill] sm:$0xff] %v13560_v40  ;;  %v13565_v15 = vand.u32 4294901760, %v13535_v36 }
 0x699   :  { %6835 = vmatprep.subr.mxu0 %v14802_v44  ;;  %7033 = vmatprep.subr.mxu1 %v14802_v44  ;;  %15006 = vst [vmem:[#allocation31_spill] sm:$0xff] %v13576_v32  ;;  %15007 = vst [vmem:[#allocation33_spill] sm:$0xff] %v13581_v55  ;;  %v7086_v2 = vsub.f32 %v13550_v23, %v13581_v55  ;;  %v13624_v55 = vsub.f32 %v6779_v22, %v13588_v28 }
 0x69a   :  { %6837 = vmatpush1.msra.mxu0 %v13392_v14  ;;  %7039 = vmatpush2.msra.mxu1 %v13544_v8  ;;  %15005 = vst [vmem:[#allocation28_spill] sm:$0xff] %v13565_v15  ;;  %v7072_v8 = vsub.f32 %v13519_v13, %v13547_v11  ;;  %15008 = vst [vmem:[#allocation27_spill] sm:$0xff] %v13592_v56  ;;  %v7079_v11 = vsub.f32 %v13535_v36, %v13565_v15 }
 0x69b   :  { %6838 = vmatprep.subr.mxu0 %v14802_v44  ;;  %7040 = vmatprep.subr.mxu1 %v14802_v44  ;;  %15010 = vst [vmem:[#allocation34_spill] sm:$0xff] %v13599_v21 }
 0x69c   :  { %6840 = vmatpush1.msra.mxu0 %v13402_v63  ;;  %7046 = vmatpush2.msra.mxu1 %v13560_v40  ;;  %v13594_v40 = vand.u32 4294901760, %v7065_v61  ;;  %v13605_v13 = vand.u32 4294901760, %v7072_v8  ;;  %v13610_v61 = vand.u32 4294901760, %v13584_v27  ;;  %v7093_v8 = vsub.f32 %v13568_v48, %v13599_v21 }
 0x69d   :  { %6845 = vmatprep.subr.mxu0 %v14802_v44  ;;  %7047 = vmatprep.subr.mxu1 %v14802_v44 }
 0x69e   :  { %6847 = vmatpush2.msra.mxu0 %v13414_v47  ;;  %7053 = vmatpush2.msra.mxu1 %v13576_v32  ;;  %15009 = vst [vmem:[#allocation30_spill] sm:$0xff] %v13594_v40  ;;  %15011 = vst [vmem:[#allocation38_spill] sm:$0xff] %v13605_v13  ;;  %v13613_v32 = vsub.f32 %v6780_v12, %v13572_v25  ;;  %v13630_v12 = vand.u32 4294901760, %v7086_v2  ;;  %v13641_v22 = vand.u32 4294901760, %v7093_v8 }
 0x69f   :  { %6848 = vmatprep.subr.mxu0 %v14802_v44  ;;  %7054 = vmatprep.subr.mxu1 %v14802_v44  ;;  %15012 = vst [vmem:[#allocation43_spill] sm:$0xff] %v13610_v61 }
 0x6a0   :  { %6850 = vmatpush2.msra.mxu0 %v13424_v59  ;;  %7060 = vmatpush2.msra.mxu1 %v13592_v56  ;;  %v13619_v56 = vand.u32 4294901760, %v7079_v11  ;;  %v7100_v11 = vsub.f32 %v13584_v27, %v13610_v61  ;;  %15014 = vst [vmem:[#allocation47_spill] sm:$0xff] %v13641_v22 }
 0x6a1   :  { %6851 = vmatprep.subr.mxu0 %v14802_v44  ;;  %7061 = vmatprep.subr.mxu1 %v14802_v44 }
 0x6a2   :  { %6853 = vmatpush2.msra.mxu0 %v13437_v45  ;;  %7067 = vmatpush2.msra.mxu1 %v13594_v40  ;;  %v13635_v40 = vand.u32 4294901760, %v13613_v32  ;;  %v13650_v2 = vand.u32 4294901760, %v7100_v11 }
 0x6a3   :  { %6854 = vmatprep.subr.mxu0 %v14802_v44  ;;  %7068 = vmatprep.subr.mxu1 %v14802_v44 }
 0x6a4   :  { %6856 = vmatpush2.msra.mxu0 %v13450_v35  ;;  %7074 = vmatpush2.msra.mxu1 %v13605_v13  ;;  %15013 = vst [vmem:[#allocation45_spill] sm:$0xff] %v13635_v40  ;;  %v13644_v13 = vand.u32 4294901760, %v13624_v55  ;;  %v7107_v61 = vsub.f32 %v13613_v32, %v13635_v40 }
 0x6a5   :  { %6857 = vmatprep.subr.mxu0 %v14802_v44  ;;  %7075 = vmatprep.subr.mxu1 %v14802_v44 }
 0x6a6   :  { %6859 = vmatpush2.msra.mxu0 %v13454_v0  ;;  %7081 = vmatpush2.msra.mxu1 %v13619_v56  ;;  %15015 = vst [vmem:[#allocation49_spill] sm:$0xff] %v13644_v13  ;;  %v7114_v8 = vsub.f32 %v13624_v55, %v13644_v13  ;;  %v13664_v11 = vand.u32 4294901760, %v7107_v61  ;;  %v15018_v61 = vld [vmem:[#allocation41_spill] sm:$0xff] }
 0x6a7   :  { %6860 = vmatprep.subr.mxu0 %v14802_v44  ;;  %7082 = vmatprep.subr.mxu1 %v14802_v44 }
 0x6a8   :  { %6862 = vmatpush2.msra.mxu0 %v13467_v17  ;;  %7088 = vmatpush2.msra.mxu1 %v13630_v12  ;;  %15016 = vst [vmem:[#allocation51_spill] sm:$0xff] %v13664_v11 }
 0x6a9   :  { %6863 = vmatprep.subr.mxu0 %v14802_v44  ;;  %7089 = vmatprep.subr.mxu1 %v14802_v44 }
 0x6aa   :  { %6865 = vmatpush2.msra.mxu0 %v13469_v26  ;;  %7095 = vmatpush2.msra.mxu1 %v13641_v22  ;;  %v13670_v22 = vand.u32 4294901760, %v7114_v8 }
 0x6ab   :  { %6866 = vmatprep.subr.mxu0 %v14802_v44  ;;  %7096 = vmatprep.subr.mxu1 %v14802_v44 }
 0x6ac   :  { %6868 = vmatpush2.msra.mxu0 %v13491_v10  ;;  %7102 = vmatpush2.msra.mxu1 %v13650_v2  ;;  %15017 = vst [vmem:[#allocation52_spill] sm:$0xff] %v13670_v22 }
 0x6ad   :  { %6869 = vmatprep.subr.mxu0 %v14802_v44  ;;  %7103 = vmatprep.subr.mxu1 %v14802_v44 }
 0x6ae   :  { %6871 = vmatpush2.msra.mxu0 %v13508_v33  ;;  %7109 = vmatpush2.msra.mxu1 %v13664_v11 }
 0x6af   :  { %6872 = vmatprep.subr.mxu0 %v14802_v44  ;;  %7110 = vmatprep.subr.mxu1 %v14802_v44 }
 0x6b0   :  { %6874 = vmatpush2.msra.mxu0 %v13521_v24  ;;  %7116 = vmatpush2.msra.mxu1 %v13670_v22  ;;  %v15019_v22 = vld [vmem:[#allocation42_spill] sm:$0xff] }
 0x6b1   :  { %6875 = vmatprep.subr.mxu0 %v14802_v44  ;;  %7118 = vmatprep.mubr.f32.mxu1 %v12438_v19 }
 0x6b2   :  { %7259 = vmatprep.subr.mxu1 %v14802_v44  ;;  %6877 = vmatpush2.msra.mxu0 %v13537_v37 }
 0x6b3   :  { %7120 = vmatmul.mubr.f32.vlgmr.msra.gmra.mxu1 %v12442_v62  ;;  %6878 = vmatprep.subr.mxu0 %v14802_v44 }
 0x6b4   :  { %7261 = vmatpush1.msra.mxu1 %v12852_v1  ;;  %6880 = vmatpush2.msra.mxu0 %v13552_v31 }
 0x6b5   :  { %7262 = vmatprep.subr.mxu1 %v14802_v44  ;;  %6881 = vmatprep.subr.mxu0 %v14802_v44 }
 0x6b6   :  { %7264 = vmatpush1.msra.mxu1 %v12862_v42  ;;  %6883 = vmatpush2.msra.mxu0 %v13572_v25 }
 0x6b7   :  { %7265 = vmatprep.subr.mxu1 %v14802_v44  ;;  %6884 = vmatprep.subr.mxu0 %v14802_v44 }
 0x6b8   :  { %7267 = vmatpush1.msra.mxu1 %v12869_v16  ;;  %6886 = vmatpush2.msra.mxu0 %v13588_v28 }
 0x6b9   :  { %7268 = vmatprep.subr.mxu1 %v14802_v44  ;;  %6892 = vmatprep.mubr.f32.mxu0 %v15018_v61  ;;  %v6255_v8 = vpop.f32.mrf.mxu1 }
 0x6ba   :  { %7270 = vmatpush1.msra.mxu1 %v12883_v6  ;;  %6898 = vmatmul.mubr.f32.vlgmr.msra.gmra.mxu0 %v15019_v22 }
 0x6bb   :  { %7125 = vmatprep.subr.mxu0 %v14802_v44  ;;  %7271 = vmatprep.subr.mxu1 %v14802_v44  ;;  %v6257_v11 = vpop.f32.mrf.mxu1 }
 0x6bc   :  { %7128 = vmatpush1.msra.mxu0 %v14935_v50  ;;  %7273 = vmatpush1.msra.mxu1 %v12889_v41 }
 0x6bd   :  { %7129 = vmatprep.subr.mxu0 %v14802_v44  ;;  %7274 = vmatprep.subr.mxu1 %v14802_v44 }
 0x6be   :  { %7132 = vmatpush1.msra.mxu0 %v14936_v29  ;;  %7276 = vmatpush1.msra.mxu1 %v12905_v53 }
 0x6bf   :  { %7133 = vmatprep.subr.mxu0 %v14802_v44  ;;  %7277 = vmatprep.subr.mxu1 %v14802_v44 }
 0x6c0   :  { %7136 = vmatpush1.msra.mxu0 %v14937_v39  ;;  %7279 = vmatpush1.msra.mxu1 %v12923_v57  ;;  %v6033_v11 = vpop.f32.mrf.mxu0  ;;  %v15027_v39 = vld [vmem:[#allocation16_spill] sm:$0xff] }
 0x6c1   :  { %7137 = vmatprep.subr.mxu0 %v14802_v44  ;;  %7280 = vmatprep.subr.mxu1 %v14802_v44  ;;  %v13710_v50 = vadd.f32 %v6255_v8, %v6033_v11  ;;  %v15030_v8 = vld [vmem:[#allocation39_spill] sm:$0xff]  ;;  %v15031_v11 = vld [vmem:[#allocation40_spill] sm:$0xff] }
 0x6c2   :  { %7140 = vmatpush1.msra.mxu0 %v12913_v4  ;;  %7282 = vmatpush1.msra.mxu1 %v12940_v46  ;;  %v6035_v29 = vpop.f32.mrf.mxu0  ;;  %v15020_v4 = vld [vmem:[#allocation15_spill] sm:$0xff] }
 0x6c3   :  { %7141 = vmatprep.subr.mxu0 %v14802_v44  ;;  %7283 = vmatprep.subr.mxu1 %v14802_v44 }
 0x6c4   :  { %7144 = vmatpush1.msra.mxu0 %v14938_v9  ;;  %7285 = vmatpush1.msra.mxu1 %v12955_v34  ;;  %v15028_v9 = vld [vmem:[#allocation10_spill] sm:$0xff] }
 0x6c5   :  { %7145 = vmatprep.subr.mxu0 %v14802_v44  ;;  %7286 = vmatprep.subr.mxu1 %v14802_v44 }
 0x6c6   :  { %7148 = vmatpush1.msra.mxu0 %v14939_v60  ;;  %7288 = vmatpush1.msra.mxu1 %v12970_v43  ;;  %v15029_v60 = vld [vmem:[#allocation7_spill] sm:$0xff] }
 0x6c7   :  { %7149 = vmatprep.subr.mxu0 %v14802_v44  ;;  %7289 = vmatprep.subr.mxu1 %v14802_v44 }
 0x6c8   :  { %7152 = vmatpush1.msra.mxu0 %v12953_v38  ;;  %7291 = vmatpush1.msra.mxu1 %v12990_v18  ;;  %v15023_v38 = vld [vmem:[#allocation8_spill] sm:$0xff] }
 0x6c9   :  { %7153 = vmatprep.subr.mxu0 %v14802_v44  ;;  %7292 = vmatprep.subr.mxu1 %v14802_v44 }
 0x6ca   :  { %7156 = vmatpush1.msra.mxu0 %v12968_v5  ;;  %7294 = vmatpush1.msra.mxu1 %v13006_v54  ;;  %v15024_v5 = vld [vmem:[#allocation13_spill] sm:$0xff] }
 0x6cb   :  { %7157 = vmatprep.subr.mxu0 %v14802_v44  ;;  %7295 = vmatprep.subr.mxu1 %v14802_v44 }
 0x6cc   :  { %7160 = vmatpush1.msra.mxu0 %v12986_v52  ;;  %7297 = vmatpush1.msra.mxu1 %v13377_v49  ;;  %v15022_v52 = vld [vmem:[#allocation12_spill] sm:$0xff] }
 0x6cd   :  { %7161 = vmatprep.subr.mxu0 %v14802_v44  ;;  %7298 = vmatprep.subr.mxu1 %v14802_v44 }
 0x6ce   :  { %7164 = vmatpush1.msra.mxu0 %v13002_v20  ;;  %7300 = vmatpush1.msra.mxu1 %v13383_v58  ;;  %v15026_v20 = vld [vmem:[#allocation3_spill] sm:$0xff] }
 0x6cf   :  { %7165 = vmatprep.subr.mxu0 %v14802_v44  ;;  %7301 = vmatprep.subr.mxu1 %v14802_v44 }
 0x6d0   :  { %7168 = vmatpush1.msra.mxu0 %v13031_v7  ;;  %7303 = vmatpush1.msra.mxu1 %v13392_v14  ;;  %v15025_v7 = vld [vmem:[#allocation14_spill] sm:$0xff] }
 0x6d1   :  { %7169 = vmatprep.subr.mxu0 %v14802_v44  ;;  %7304 = vmatprep.subr.mxu1 %v14802_v44 }
 0x6d2   :  { %7172 = vmatpush1.msra.mxu0 %v13042_v51  ;;  %7306 = vmatpush1.msra.mxu1 %v13402_v63  ;;  %v15021_v51 = vld [vmem:[#allocation5_spill] sm:$0xff] }
 0x6d3   :  { %7173 = vmatprep.subr.mxu0 %v14802_v44  ;;  %7311 = vmatprep.subr.mxu1 %v14802_v44 }
 0x6d4   :  { %7176 = vmatpush1.msra.mxu0 %v13390_v3  ;;  %7313 = vmatpush2.msra.mxu1 %v13414_v47 }
 0x6d5   :  { %7177 = vmatprep.subr.mxu0 %v14802_v44  ;;  %7314 = vmatprep.subr.mxu1 %v14802_v44 }
 0x6d6   :  { %7180 = vmatpush1.msra.mxu0 %v15020_v4  ;;  %7316 = vmatpush2.msra.mxu1 %v13424_v59 }
 0x6d7   :  { %7181 = vmatprep.subr.mxu0 %v14802_v44  ;;  %7317 = vmatprep.subr.mxu1 %v14802_v44 }
 0x6d8   :  { %7184 = vmatpush1.msra.mxu0 %v15021_v51  ;;  %7319 = vmatpush2.msra.mxu1 %v13437_v45 }
 0x6d9   :  { %7185 = vmatprep.subr.mxu0 %v14802_v44  ;;  %7320 = vmatprep.subr.mxu1 %v14802_v44 }
 0x6da   :  { %7188 = vmatpush1.msra.mxu0 %v15022_v52  ;;  %7322 = vmatpush2.msra.mxu1 %v13450_v35 }
 0x6db   :  { %7193 = vmatprep.subr.mxu0 %v14802_v44  ;;  %7323 = vmatprep.subr.mxu1 %v14802_v44 }
 0x6dc   :  { %7196 = vmatpush2.msra.mxu0 %v15023_v38  ;;  %7325 = vmatpush2.msra.mxu1 %v13454_v0 }
 0x6dd   :  { %7197 = vmatprep.subr.mxu0 %v14802_v44  ;;  %7326 = vmatprep.subr.mxu1 %v14802_v44 }
 0x6de   :  { %7200 = vmatpush2.msra.mxu0 %v15024_v5  ;;  %7328 = vmatpush2.msra.mxu1 %v13467_v17 }
 0x6df   :  { %7201 = vmatprep.subr.mxu0 %v14802_v44  ;;  %7329 = vmatprep.subr.mxu1 %v14802_v44 }
 0x6e0   :  { %7204 = vmatpush2.msra.mxu0 %v15025_v7  ;;  %7331 = vmatpush2.msra.mxu1 %v13469_v26 }
 0x6e1   :  { %7205 = vmatprep.subr.mxu0 %v14802_v44  ;;  %7332 = vmatprep.subr.mxu1 %v14802_v44 }
 0x6e2   :  { %7208 = vmatpush2.msra.mxu0 %v15026_v20  ;;  %7334 = vmatpush2.msra.mxu1 %v13491_v10 }
 0x6e3   :  { %7209 = vmatprep.subr.mxu0 %v14802_v44  ;;  %7335 = vmatprep.subr.mxu1 %v14802_v44 }
 0x6e4   :  { %7212 = vmatpush2.msra.mxu0 %v15027_v39  ;;  %7337 = vmatpush2.msra.mxu1 %v13508_v33 }
 0x6e5   :  { %7213 = vmatprep.subr.mxu0 %v14802_v44  ;;  %7338 = vmatprep.subr.mxu1 %v14802_v44 }
 0x6e6   :  { %7216 = vmatpush2.msra.mxu0 %v13496_v30  ;;  %7340 = vmatpush2.msra.mxu1 %v13521_v24 }
 0x6e7   :  { %7217 = vmatprep.subr.mxu0 %v14802_v44  ;;  %7341 = vmatprep.subr.mxu1 %v14802_v44 }
 0x6e8   :  { %7220 = vmatpush2.msra.mxu0 %v15028_v9  ;;  %7343 = vmatpush2.msra.mxu1 %v13537_v37 }
 0x6e9   :  { %7221 = vmatprep.subr.mxu0 %v14802_v44  ;;  %7344 = vmatprep.subr.mxu1 %v14802_v44 }
 0x6ea   :  { %7224 = vmatpush2.msra.mxu0 %v15029_v60  ;;  %7346 = vmatpush2.msra.mxu1 %v13552_v31 }
 0x6eb   :  { %7225 = vmatprep.subr.mxu0 %v14802_v44  ;;  %7347 = vmatprep.subr.mxu1 %v14802_v44 }
 0x6ec   :  { %7228 = vmatpush2.msra.mxu0 %v13535_v36  ;;  %7349 = vmatpush2.msra.mxu1 %v13572_v25 }
 0x6ed   :  { %7229 = vmatprep.subr.mxu0 %v14802_v44  ;;  %7350 = vmatprep.subr.mxu1 %v14802_v44 }
 0x6ee   :  { %7232 = vmatpush2.msra.mxu0 %v13550_v23  ;;  %7352 = vmatpush2.msra.mxu1 %v13588_v28 }
 0x6ef   :  { %7233 = vmatprep.subr.mxu0 %v14802_v44  ;;  %7356 = vmatprep.mubr.f32.mxu1 %v15030_v8  ;;  %v15034_v8 = vld [vmem:[#allocation18_spill] sm:$0xff] }
 0x6f0   :  { %7527 = vmatprep.subr.mxu1 %v14802_v44  ;;  %7236 = vmatpush2.msra.mxu0 %v13568_v48 }
 0x6f1   :  { %7360 = vmatmul.mubr.f32.vlgmr.msra.gmra.mxu1 %v15031_v11  ;;  %7237 = vmatprep.subr.mxu0 %v14802_v44  ;;  %v15033_v11 = vld [vmem:[#allocation36_spill] sm:$0xff] }
 0x6f2   :  { %7529 = vmatpush1.msra.mxu1 %v12852_v1  ;;  %7240 = vmatpush2.msra.mxu0 %v13584_v27  ;;  %v15032_v1 = vld [vmem:[#allocation35_spill] sm:$0xff] }
 0x6f3   :  { %7530 = vmatprep.subr.mxu1 %v14802_v44  ;;  %7241 = vmatprep.subr.mxu0 %v14802_v44 }
 0x6f4   :  { %7532 = vmatpush1.msra.mxu1 %v12862_v42  ;;  %7244 = vmatpush2.msra.mxu0 %v13613_v32 }
 0x6f5   :  { %7533 = vmatprep.subr.mxu1 %v14802_v44  ;;  %7245 = vmatprep.subr.mxu0 %v14802_v44 }
 0x6f6   :  { %7535 = vmatpush1.msra.mxu1 %v12869_v16  ;;  %7248 = vmatpush2.msra.mxu0 %v13624_v55  ;;  %v15035_v16 = vld [vmem:[#allocation23_spill] sm:$0xff] }
 0x6f7   :  { %7536 = vmatprep.subr.mxu1 %v14802_v44  ;;  %7251 = vmatprep.mubr.f32.mxu0 %v15032_v1  ;;  %v6495_v29 = vpop.f32.mrf.mxu1 }
 0x6f8   :  { %7538 = vmatpush1.msra.mxu1 %v12883_v6  ;;  %7254 = vmatmul.mubr.f32.vlgmr.msra.gmra.mxu0 %v15033_v11  ;;  %v15036_v6 = vld [vmem:[#allocation19_spill] sm:$0xff] }
 0x6f9   :  { %7365 = vmatprep.subr.mxu0 %v14802_v44  ;;  %7539 = vmatprep.subr.mxu1 %v14802_v44  ;;  %v6497_v42 = vpop.f32.mrf.mxu1 }
 0x6fa   :  { %7369 = vmatpush1.msra.mxu0 %v15034_v8  ;;  %7541 = vmatpush1.msra.mxu1 %v12889_v41  ;;  %v15037_v8 = vld [vmem:[#allocation24_spill] sm:$0xff] }
 0x6fb   :  { %7370 = vmatprep.subr.mxu0 %v14802_v44  ;;  %7542 = vmatprep.subr.mxu1 %v14802_v44 }
 0x6fc   :  { %7374 = vmatpush1.msra.mxu0 %v15035_v16  ;;  %7544 = vmatpush1.msra.mxu1 %v12905_v53 }
 0x6fd   :  { %7375 = vmatprep.subr.mxu0 %v14802_v44  ;;  %7545 = vmatprep.subr.mxu1 %v14802_v44 }
 0x6fe   :  { %7379 = vmatpush1.msra.mxu0 %v15036_v6  ;;  %7547 = vmatpush1.msra.mxu1 %v12923_v57  ;;  %v6389_v42 = vpop.f32.mrf.mxu0  ;;  %v15038_v6 = vld [vmem:[#allocation25_spill] sm:$0xff] }
 0x6ff   :  { %7380 = vmatprep.subr.mxu0 %v14802_v44  ;;  %7548 = vmatprep.subr.mxu1 %v14802_v44  ;;  %v6390_v41 = vadd.f32 %v6389_v42, %v13710_v50  ;;  %v15039_v57 = vld [vmem:[#allocation29_spill] sm:$0xff]  ;;  %v15059_v42 = vld [vmem:[#allocation20_spill] sm:$0xff] }
 0x700   :  { %7384 = vmatpush1.msra.mxu0 %v15037_v8  ;;  %7550 = vmatpush1.msra.mxu1 %v12940_v46  ;;  %v6391_v53 = vpop.f32.mrf.mxu0  ;;  %v15040_v46 = vld [vmem:[#allocation32_spill] sm:$0xff]  ;;  %v15052_v50 = vld [vmem:[#allocation21_spill] sm:$0xff]  ;;  %v15061_v8 = vld [vmem:[#allocation26_spill] sm:$0xff] }
 0x701   :  { %7385 = vmatprep.subr.mxu0 %v14802_v44  ;;  %7551 = vmatprep.subr.mxu1 %v14802_v44  ;;  %v13841_v16 = vadd.f32 %v6495_v29, %v6390_v41  ;;  %v15058_v29 = vld [vmem:[#allocation33_spill] sm:$0xff]  ;;  %v15060_v41 = vld [vmem:[#allocation43_spill] sm:$0xff]  ;;  %v7632_v53 = vld [vmem:[#allocation2 + $0x138] sm:$0xff] }
 0x702   :  { %7389 = vmatpush1.msra.mxu0 %v15038_v6  ;;  %7553 = vmatpush1.msra.mxu1 %v12955_v34  ;;  %v15041_v34 = vld [vmem:[#allocation37_spill] sm:$0xff]  ;;  %v15062_v6 = vld [vmem:[#allocation31_spill] sm:$0xff] }
 0x703   :  { %7390 = vmatprep.subr.mxu0 %v14802_v44  ;;  %7554 = vmatprep.subr.mxu1 %v14802_v44 }
 0x704   :  { %7394 = vmatpush1.msra.mxu0 %v15039_v57  ;;  %7556 = vmatpush1.msra.mxu1 %v12970_v43  ;;  %v15042_v43 = vld [vmem:[#allocation44_spill] sm:$0xff] }
 0x705   :  { %7395 = vmatprep.subr.mxu0 %v14802_v44  ;;  %7557 = vmatprep.subr.mxu1 %v14802_v44 }
 0x706   :  { %7399 = vmatpush1.msra.mxu0 %v15040_v46  ;;  %7559 = vmatpush1.msra.mxu1 %v12990_v18  ;;  %v15043_v18 = vld [vmem:[#allocation46_spill] sm:$0xff]  ;;  %v15063_v46 = vld [vmem:[#allocation27_spill] sm:$0xff] }
 0x707   :  { %7400 = vmatprep.subr.mxu0 %v14802_v44  ;;  %7560 = vmatprep.subr.mxu1 %v14802_v44 }
 0x708   :  { %7404 = vmatpush1.msra.mxu0 %v15041_v34  ;;  %7562 = vmatpush1.msra.mxu1 %v13006_v54  ;;  %v15044_v54 = vld [vmem:[#allocation48_spill] sm:$0xff]  ;;  %v13957_v34 = vand.u32 4294901760, %v7632_v53 }
 0x709   :  { %7405 = vmatprep.subr.mxu0 %v14802_v44  ;;  %7563 = vmatprep.subr.mxu1 %v14802_v44 }
 0x70a   :  { %7409 = vmatpush1.msra.mxu0 %v15042_v43  ;;  %7565 = vmatpush1.msra.mxu1 %v13377_v49  ;;  %v15045_v49 = vld [vmem:[#allocation50_spill] sm:$0xff]  ;;  %v7631_v43 = vld [vmem:[#allocation2 + $0x130] sm:$0xff] }
 0x70b   :  { %7410 = vmatprep.subr.mxu0 %v14802_v44  ;;  %7566 = vmatprep.subr.mxu1 %v14802_v44 }
 0x70c   :  { %7414 = vmatpush1.msra.mxu0 %v15043_v18  ;;  %7568 = vmatpush1.msra.mxu1 %v13383_v58  ;;  %v15046_v58 = vand.u32 4294901760, %v13390_v3  ;;  %v15049_v3 = vand.u32 4294901760, %v15022_v52  ;;  %v15055_v52 = vld [vmem:[#allocation6_spill] sm:$0xff] }
 0x70d   :  { %7415 = vmatprep.subr.mxu0 %v14802_v44  ;;  %7569 = vmatprep.subr.mxu1 %v14802_v44 }
 0x70e   :  { %7419 = vmatpush1.msra.mxu0 %v15044_v54  ;;  %7571 = vmatpush1.msra.mxu1 %v13392_v14  ;;  %v15047_v14 = vand.u32 4294901760, %v15020_v4  ;;  %v15053_v4 = vld [vmem:[#allocation4_spill] sm:$0xff]  ;;  %v15064_v54 = vld [vmem:[#allocation30_spill] sm:$0xff] }
 0x70f   :  { %7420 = vmatprep.subr.mxu0 %v14802_v44  ;;  %7572 = vmatprep.subr.mxu1 %v14802_v44 }
 0x710   :  { %7424 = vmatpush1.msra.mxu0 %v15045_v49  ;;  %7574 = vmatpush1.msra.mxu1 %v13402_v63  ;;  %v15048_v63 = vand.u32 4294901760, %v15021_v51  ;;  %v15054_v51 = vld [vmem:[#allocation11_spill] sm:$0xff]  ;;  %v7630_v49 = vld [vmem:[#allocation2 + $0x128] sm:$0xff] }
 0x711   :  { %7425 = vmatprep.subr.mxu0 %v14802_v44  ;;  %7579 = vmatprep.subr.mxu1 %v14802_v44 }
 0x712   :  { %7429 = vmatpush1.msra.mxu0 %v15046_v58  ;;  %7581 = vmatpush2.msra.mxu1 %v13414_v47  ;;  %v15050_v47 = vand.u32 4294901760, %v15023_v38  ;;  %v15056_v38 = vld [vmem:[#allocation17_spill] sm:$0xff]  ;;  %v13965_v58 = vand.u32 4294901760, %v7631_v43 }
 0x713   :  { %7430 = vmatprep.subr.mxu0 %v14802_v44  ;;  %7582 = vmatprep.subr.mxu1 %v14802_v44 }
 0x714   :  { %7434 = vmatpush1.msra.mxu0 %v15047_v14  ;;  %7584 = vmatpush2.msra.mxu1 %v13424_v59  ;;  %v15051_v59 = vand.u32 4294901760, %v15024_v5  ;;  %v15057_v5 = vld [vmem:[#allocation22_spill] sm:$0xff]  ;;  %v7629_v14 = vld [vmem:[#allocation2 + $0x120] sm:$0xff] }
 0x715   :  { %7435 = vmatprep.subr.mxu0 %v14802_v44  ;;  %7585 = vmatprep.subr.mxu1 %v14802_v44 }
 0x716   :  { %7439 = vmatpush1.msra.mxu0 %v15048_v63  ;;  %7587 = vmatpush2.msra.mxu1 %v13437_v45  ;;  %v15065_v63 = vld [vmem:[#allocation38_spill] sm:$0xff] }
 0x717   :  { %7440 = vmatprep.subr.mxu0 %v14802_v44  ;;  %7588 = vmatprep.subr.mxu1 %v14802_v44 }
 0x718   :  { %7444 = vmatpush1.msra.mxu0 %v15049_v3  ;;  %7590 = vmatpush2.msra.mxu1 %v13450_v35  ;;  %v13970_v3 = vsub.f32 %v7632_v53, %v13957_v34  ;;  %v13983_v53 = vsub.f32 %v7631_v43, %v13965_v58  ;;  %v7655_v43 = vld [vmem:[#allocation2 + $0x1f0] sm:$0xff] }
 0x719   :  { %7449 = vmatprep.subr.mxu0 %v14802_v44  ;;  %7591 = vmatprep.subr.mxu1 %v14802_v44 }
 0x71a   :  { %7453 = vmatpush2.msra.mxu0 %v15050_v47  ;;  %7593 = vmatpush2.msra.mxu1 %v13454_v0  ;;  %15066 = vst [vmem:[#allocation53_spill] sm:$0xff] %v13970_v3  ;;  %v7658_v47 = vld [vmem:[#allocation2 + $0x208] sm:$0xff]  ;;  %15067 = vst [vmem:[#allocation41_spill] sm:$0xff] %v13983_v53 }
 0x71b   :  { %7454 = vmatprep.subr.mxu0 %v14802_v44  ;;  %7594 = vmatprep.subr.mxu1 %v14802_v44 }
 0x71c   :  { %7458 = vmatpush2.msra.mxu0 %v15051_v59  ;;  %7596 = vmatpush2.msra.mxu1 %v13467_v17  ;;  %v13974_v59 = vand.u32 4294901760, %v7630_v49 }
 0x71d   :  { %7459 = vmatprep.subr.mxu0 %v14802_v44  ;;  %7597 = vmatprep.subr.mxu1 %v14802_v44 }
 0x71e   :  { %7463 = vmatpush2.msra.mxu0 %v15052_v50  ;;  %7599 = vmatpush2.msra.mxu1 %v13469_v26 }
 0x71f   :  { %7464 = vmatprep.subr.mxu0 %v14802_v44  ;;  %7600 = vmatprep.subr.mxu1 %v14802_v44 }
 0x720   :  { %7468 = vmatpush2.msra.mxu0 %v15053_v4  ;;  %7602 = vmatpush2.msra.mxu1 %v13491_v10 }
 0x721   :  { %7469 = vmatprep.subr.mxu0 %v14802_v44  ;;  %7603 = vmatprep.subr.mxu1 %v14802_v44 }
 0x722   :  { %7473 = vmatpush2.msra.mxu0 %v15054_v51  ;;  %7605 = vmatpush2.msra.mxu1 %v13508_v33  ;;  %v7651_v51 = vld [vmem:[#allocation2 + $0x1d0] sm:$0xff] }
 0x723   :  { %7474 = vmatprep.subr.mxu0 %v14802_v44  ;;  %7606 = vmatprep.subr.mxu1 %v14802_v44  ;;  %v14076_v11 = vand.u32 4294901760, %v7651_v51 }
 0x724   :  { %7478 = vmatpush2.msra.mxu0 %v15055_v52  ;;  %7608 = vmatpush2.msra.mxu1 %v13521_v24 }
 0x725   :  { %7479 = vmatprep.subr.mxu0 %v14802_v44  ;;  %7609 = vmatprep.subr.mxu1 %v14802_v44 }
 0x726   :  { %7483 = vmatpush2.msra.mxu0 %v15056_v38  ;;  %7611 = vmatpush2.msra.mxu1 %v13537_v37 }
 0x727   :  { %7484 = vmatprep.subr.mxu0 %v14802_v44  ;;  %7612 = vmatprep.subr.mxu1 %v14802_v44 }
 0x728   :  { %7488 = vmatpush2.msra.mxu0 %v15057_v5  ;;  %7614 = vmatpush2.msra.mxu1 %v13552_v31 }
 0x729   :  { %7489 = vmatprep.subr.mxu0 %v14802_v44  ;;  %7615 = vmatprep.subr.mxu1 %v14802_v44 }
 0x72a   :  { %7493 = vmatpush2.msra.mxu0 %v13565_v15  ;;  %7617 = vmatpush2.msra.mxu1 %v13572_v25 }
 0x72b   :  { %7494 = vmatprep.subr.mxu0 %v14802_v44  ;;  %7618 = vmatprep.subr.mxu1 %v14802_v44 }
 0x72c   :  { %7498 = vmatpush2.msra.mxu0 %v15058_v29  ;;  %7620 = vmatpush2.msra.mxu1 %v13588_v28  ;;  %v7654_v29 = vld [vmem:[#allocation2 + $0x1e8] sm:$0xff] }
 0x72d   :  { %7499 = vmatprep.subr.mxu0 %v14802_v44  ;;  %7622 = vmatprep.mubr.f32.mxu1 %v12438_v19  ;;  %v14037_v38 = vand.u32 4294901760, %v7654_v29 }
 0x72e   :  { %7769 = vmatprep.subr.mxu1 %v14802_v44  ;;  %7503 = vmatpush2.msra.mxu0 %v13599_v21  ;;  %v14016_v21 = vand.u32 4294901760, %v7655_v43 }
 0x72f   :  { %7624 = vmatmul.mubr.f32.vlgmr.msra.gmra.mxu1 %v12442_v62  ;;  %7504 = vmatprep.subr.mxu0 %v14802_v44  ;;  %v14062_v50 = vsub.f32 %v7654_v29, %v14037_v38 }
 0x730   :  { %7775 = vmatpush1.msra.mxu1 %v15059_v42  ;;  %7508 = vmatpush2.msra.mxu0 %v15060_v41 }
 0x731   :  { %7776 = vmatprep.subr.mxu1 %v14802_v44  ;;  %7509 = vmatprep.subr.mxu0 %v14802_v44  ;;  %15082 = vst [vmem:[#allocation14_spill] sm:$0xff] %v14062_v50 }
 0x732   :  { %7782 = vmatpush1.msra.mxu1 %v15061_v8  ;;  %7513 = vmatpush2.msra.mxu0 %v13635_v40  ;;  %v13978_v8 = vand.u32 4294901760, %v7629_v14  ;;  %v15069_v40 = vld [vmem:[#allocation47_spill] sm:$0xff] }
 0x733   :  { %7783 = vmatprep.subr.mxu1 %v14802_v44  ;;  %7514 = vmatprep.subr.mxu0 %v14802_v44 }
 0x734   :  { %7789 = vmatpush1.msra.mxu1 %v15062_v6  ;;  %7518 = vmatpush2.msra.mxu0 %v13644_v13  ;;  %v7657_v6 = vld [vmem:[#allocation2 + $0x200] sm:$0xff]  ;;  %v14000_v41 = vsub.f32 %v7629_v14, %v13978_v8 }
 0x735   :  { %7790 = vmatprep.subr.mxu1 %v14802_v44  ;;  %7520 = vmatprep.mubr.f32.mxu0 %v12438_v19  ;;  %v13953_v57 = vpop.f32.mrf.mxu1  ;;  %v13995_v13 = vand.u32 4294901760, %v7657_v6 }
 0x736   :  { %7796 = vmatpush1.msra.mxu1 %v15063_v46  ;;  %7522 = vmatmul.mubr.f32.vlgmr.msra.gmra.mxu0 %v12442_v62  ;;  %v13985_v46 = vand.u32 4294901760, %v7658_v47  ;;  %15070 = vst [vmem:[#allocation15_spill] sm:$0xff] %v14000_v41 }
 0x737   :  { %7659 = vmatprep.subr.mxu0 %v14802_v44  ;;  %7797 = vmatprep.subr.mxu1 %v14802_v44  ;;  %v6761_v18 = vpop.f32.mrf.mxu1 }
 0x738   :  { %7661 = vmatpush1.msra.mxu0 %v13437_v45  ;;  %7803 = vmatpush1.msra.mxu1 %v15064_v54  ;;  %v7656_v18 = vld [vmem:[#allocation2 + $0x1f8] sm:$0xff] }
 0x739   :  { %7662 = vmatprep.subr.mxu0 %v14802_v44  ;;  %7804 = vmatprep.subr.mxu1 %v14802_v44 }
 0x73a   :  { %7664 = vmatpush1.msra.mxu0 %v13450_v35  ;;  %7810 = vmatpush1.msra.mxu1 %v15065_v63  ;;  %v13993_v63 = vsub.f32 %v7630_v49, %v13974_v59  ;;  %v7653_v49 = vld [vmem:[#allocation2 + $0x1e0] sm:$0xff] }
 0x73b   :  { %7665 = vmatprep.subr.mxu0 %v14802_v44  ;;  %7811 = vmatprep.subr.mxu1 %v14802_v44  ;;  %v14050_v52 = vand.u32 4294901760, %v7653_v49 }
 0x73c   :  { %7667 = vmatpush1.msra.mxu0 %v13454_v0  ;;  %7817 = vmatpush1.msra.mxu1 %v13619_v56  ;;  %v6657_v42 = vpop.f32.mrf.mxu0  ;;  %15068 = vst [vmem:[#allocation42_spill] sm:$0xff] %v13993_v63  ;;  %v14009_v56 = vsub.f32 %v7658_v47, %v13985_v46  ;;  %v14022_v47 = vsub.f32 %v7657_v6, %v13995_v13 }
 0x73d   :  { %7668 = vmatprep.subr.mxu0 %v14802_v44  ;;  %7818 = vmatprep.subr.mxu1 %v14802_v44  ;;  %v14074_v29 = vsub.f32 %v7653_v49, %v14050_v52 }
 0x73e   :  { %7670 = vmatpush1.msra.mxu0 %v13467_v17  ;;  %7824 = vmatpush1.msra.mxu1 %v13630_v12  ;;  %v6659_v54 = vpop.f32.mrf.mxu0  ;;  %v14002_v12 = vand.u32 4294901760, %v7656_v18  ;;  %15071 = vst [vmem:[#allocation5_spill] sm:$0xff] %v14009_v56  ;;  %15073 = vst [vmem:[#allocation12_spill] sm:$0xff] %v14022_v47 }
 0x73f   :  { %7671 = vmatprep.subr.mxu0 %v14802_v44  ;;  %7825 = vmatprep.subr.mxu1 %v14802_v44  ;;  %v6658_v54 = vadd.f32 %v6657_v42, %v13841_v16  ;;  %v15074_v42 = vld [vmem:[#allocation51_spill] sm:$0xff]  ;;  %v15076_v16 = vand.u32 4294901760, %v13983_v53  ;;  %15084 = vst [vmem:[#allocation3_spill] sm:$0xff] %v14074_v29 }
 0x740   :  { %7673 = vmatpush1.msra.mxu0 %v13469_v26  ;;  %7831 = vmatpush1.msra.mxu1 %v15069_v40  ;;  %v15072_v40 = vand.u32 4294901760, %v13970_v3 }
 0x741   :  { %7674 = vmatprep.subr.mxu0 %v14802_v44  ;;  %7832 = vmatprep.subr.mxu1 %v14802_v44  ;;  %v6760_v15 = vadd.f32 %v13953_v57, %v6658_v54  ;;  %v7864_v6 = vsub.f32 %v13983_v53, %v15076_v16  ;;  %v7652_v57 = vld [vmem:[#allocation2 + $0x1d8] sm:$0xff]  ;;  %v15079_v54 = vand.u32 4294901760, %v13993_v63  ;;  %v7645_v53 = vld [vmem:[#allocation2 + $0x1a0] sm:$0xff] }
 0x742   :  { %7676 = vmatpush1.msra.mxu0 %v13491_v10  ;;  %7838 = vmatpush1.msra.mxu1 %v13650_v2  ;;  %v7857_v14 = vsub.f32 %v13970_v3, %v15072_v40  ;;  %v14028_v40 = vsub.f32 %v7656_v18, %v14002_v12  ;;  %v14042_v2 = vsub.f32 %v7655_v43, %v14016_v21 }
 0x743   :  { %7677 = vmatprep.subr.mxu0 %v14802_v44  ;;  %7839 = vmatprep.subr.mxu1 %v14802_v44  ;;  %v7871_v16 = vsub.f32 %v13993_v63, %v15079_v54  ;;  %v7865_v4 = vand.u32 4294901760, %v7864_v6  ;;  %v15081_v54 = vand.u32 4294901760, %v14009_v56  ;;  %v15083_v6 = vand.u32 4294901760, %v14022_v47  ;;  %v7647_v63 = vld [vmem:[#allocation2 + $0x1b0] sm:$0xff] }
 0x744   :  { %7679 = vmatpush1.msra.mxu0 %v13508_v33  ;;  %7845 = vmatpush1.msra.mxu1 %v15074_v42  ;;  %15075 = vst [vmem:[#allocation8_spill] sm:$0xff] %v14028_v40  ;;  %v15077_v42 = vld [vmem:[#allocation52_spill] sm:$0xff]  ;;  %v7858_v18 = vand.u32 4294901760, %v7857_v14  ;;  %15078 = vst [vmem:[#allocation13_spill] sm:$0xff] %v14042_v2  ;;  %v15080_v14 = vand.u32 4294901760, %v14000_v41 }
 0x745   :  { %7680 = vmatprep.subr.mxu0 %v14802_v44  ;;  %7846 = vmatprep.subr.mxu1 %v14802_v44  ;;  %v7889_v5 = vsub.f32 %v14009_v56, %v15081_v54  ;;  %v7896_v54 = vsub.f32 %v14022_v47, %v15083_v6  ;;  %v7649_v56 = vld [vmem:[#allocation2 + $0x1c0] sm:$0xff] }
 0x746   :  { %7682 = vmatpush1.msra.mxu0 %v13521_v24  ;;  %7852 = vmatpush1.msra.mxu1 %v15077_v42  ;;  %v7878_v43 = vsub.f32 %v14000_v41, %v15080_v14  ;;  %v7650_v42 = vld [vmem:[#allocation2 + $0x1c8] sm:$0xff]  ;;  %v15085_v14 = vand.u32 4294901760, %v14028_v40  ;;  %v14100_v6 = vand.u32 4294901760, %v7649_v56 }
 0x747   :  { %7683 = vmatprep.subr.mxu0 %v14802_v44  ;;  %7853 = vmatprep.subr.mxu1 %v14802_v44  ;;  %v14088_v47 = vand.u32 4294901760, %v7650_v42 }
 0x748   :  { %7685 = vmatpush1.msra.mxu0 %v13537_v37  ;;  %7859 = vmatpush1.msra.mxu1 %v7858_v18  ;;  %v14064_v18 = vand.u32 4294901760, %v7652_v57  ;;  %v7879_v1 = vand.u32 4294901760, %v7878_v43  ;;  %v15087_v43 = vand.u32 4294901760, %v14042_v2 }
 0x749   :  { %8496 = vrot.lane.b32.xlu1 %v6760_v15, %s10083_s5  ;;  %7686 = vmatprep.subr.mxu0 %v14802_v44  ;;  %v7872_v15 = vand.u32 4294901760, %v7871_v16  ;;  %v7890_v16 = vand.u32 4294901760, %v7889_v5  ;;  %v7897_v5 = vand.u32 4294901760, %v7896_v54 }
 0x74a   :  { %7860 = vmatprep.subr.mxu1 %v14802_v44  ;;  %7688 = vmatpush1.msra.mxu0 %v13552_v31  ;;  %v14086_v49 = vsub.f32 %v7652_v57, %v14064_v18  ;;  %v14098_v57 = vsub.f32 %v7651_v51, %v14076_v11  ;;  %v14110_v51 = vsub.f32 %v7650_v42, %v14088_v47  ;;  %v14124_v42 = vand.u32 4294901760, %v7647_v63 }
 0x74b   :  { %7866 = vmatpush1.msra.mxu1 %v7865_v4  ;;  %7689 = vmatprep.subr.mxu0 %v14802_v44  ;;  %v7903_v4 = vsub.f32 %v14028_v40, %v15085_v14  ;;  %v7910_v14 = vsub.f32 %v14042_v2, %v15087_v43  ;;  %v7648_v40 = vld [vmem:[#allocation2 + $0x1b8] sm:$0xff]  ;;  %v14122_v43 = vsub.f32 %v7649_v56, %v14100_v6 }
 0x74c   :  { %7867 = vmatprep.subr.mxu1 %v14802_v44  ;;  %7691 = vmatpush1.msra.mxu0 %v13572_v25  ;;  %15086 = vst [vmem:[#allocation16_spill] sm:$0xff] %v14086_v49  ;;  %15089 = vst [vmem:[#allocation10_spill] sm:$0xff] %v14110_v51 }
 0x74d   :  { %7873 = vmatpush1.msra.mxu1 %v7872_v15  ;;  %7692 = vmatprep.subr.mxu0 %v14802_v44  ;;  %v7904_v41 = vand.u32 4294901760, %v7903_v4  ;;  %v14112_v15 = vand.u32 4294901760, %v7648_v40  ;;  %v7911_v4 = vand.u32 4294901760, %v7910_v14 }
 0x74e   :  { %7874 = vmatprep.subr.mxu1 %v14802_v44  ;;  %7694 = vmatpush1.msra.mxu0 %v13588_v28 }
 0x74f   :  { %7880 = vmatpush1.msra.mxu1 %v7879_v1  ;;  %7695 = vmatprep.subr.mxu0 %v14802_v44  ;;  %v15088_v1 = vand.u32 4294901760, %v14062_v50  ;;  %v14134_v56 = vsub.f32 %v7648_v40, %v14112_v15  ;;  %v14146_v40 = vsub.f32 %v7647_v63, %v14124_v42 }
 0x750   :  { %7885 = vmatprep.subr.mxu1 %v14802_v44  ;;  %7697 = vmatpush1.msra.mxu0 %v13957_v34 }
 0x751   :  { %7891 = vmatpush2.msra.mxu1 %v7890_v16  ;;  %7698 = vmatprep.subr.mxu0 %v14802_v44  ;;  %v7917_v54 = vsub.f32 %v14062_v50, %v15088_v1  ;;  %v15090_v16 = vand.u32 4294901760, %v14074_v29  ;;  %v7646_v50 = vld [vmem:[#allocation2 + $0x1a8] sm:$0xff]  ;;  %v7951_v1 = vand.u32 4294901760, %v14122_v43  ;;  %v14752_v3 = vand.u32 4294901760, %v14134_v56 }
 0x752   :  { %7892 = vmatprep.subr.mxu1 %v14802_v44  ;;  %7700 = vmatpush1.msra.mxu0 %v13965_v58 }
 0x753   :  { %7898 = vmatpush2.msra.mxu1 %v7897_v5  ;;  %7701 = vmatprep.subr.mxu0 %v14802_v44  ;;  %v7924_v2 = vsub.f32 %v14074_v29, %v15090_v16  ;;  %v7918_v14 = vand.u32 4294901760, %v7917_v54  ;;  %v15091_v5 = vand.u32 4294901760, %v14086_v49  ;;  %v14138_v29 = vand.u32 4294901760, %v7646_v50 }
 0x754   :  { %7899 = vmatprep.subr.mxu1 %v14802_v44  ;;  %7703 = vmatpush1.msra.mxu0 %v13974_v59  ;;  %v15092_v54 = vand.u32 4294901760, %v14098_v57 }
 0x755   :  { %7905 = vmatpush2.msra.mxu1 %v7904_v41  ;;  %7704 = vmatprep.subr.mxu0 %v14802_v44  ;;  %v7931_v16 = vsub.f32 %v14086_v49, %v15091_v5  ;;  %v7925_v41 = vand.u32 4294901760, %v7924_v2  ;;  %v15093_v49 = vand.u32 4294901760, %v14110_v51 }
 0x756   :  { %7906 = vmatprep.subr.mxu1 %v14802_v44  ;;  %7706 = vmatpush1.msra.mxu0 %v13978_v8  ;;  %v7938_v5 = vsub.f32 %v14098_v57, %v15092_v54  ;;  %v14155_v54 = vand.u32 4294901760, %v7645_v53 }
 0x757   :  { %7912 = vmatpush2.msra.mxu1 %v7911_v4  ;;  %7711 = vmatprep.subr.mxu0 %v14802_v44  ;;  %v7932_v4 = vand.u32 4294901760, %v7931_v16  ;;  %v7945_v2 = vsub.f32 %v14110_v51, %v15093_v49  ;;  %v7965_v16 = vand.u32 4294901760, %v14146_v40  ;;  %v14165_v49 = vsub.f32 %v7646_v50, %v14138_v29 }
 0x758   :  { %7913 = vmatprep.subr.mxu1 %v14802_v44  ;;  %7713 = vmatpush2.msra.mxu0 %v13985_v46  ;;  %v7939_v63 = vand.u32 4294901760, %v7938_v5  ;;  %v7959_v5 = vsub.f32 %v14134_v56, %v14752_v3  ;;  %v14174_v51 = vsub.f32 %v7645_v53, %v14155_v54 }
 0x759   :  { %7919 = vmatpush2.msra.mxu1 %v7918_v14  ;;  %7714 = vmatprep.subr.mxu0 %v14802_v44  ;;  %v7952_v14 = vsub.f32 %v14122_v43, %v7951_v1 }
 0x75a   :  { %7920 = vmatprep.subr.mxu1 %v14802_v44  ;;  %7716 = vmatpush2.msra.mxu0 %v13995_v13  ;;  %v7960_v53 = vand.u32 4294901760, %v7959_v5  ;;  %v7979_v3 = vand.u32 4294901760, %v14174_v51 }
 0x75b   :  { %7926 = vmatpush2.msra.mxu1 %v7925_v41  ;;  %7717 = vmatprep.subr.mxu0 %v14802_v44  ;;  %v7946_v41 = vand.u32 4294901760, %v7945_v2  ;;  %v7953_v50 = vand.u32 4294901760, %v7952_v14  ;;  %v7972_v2 = vand.u32 4294901760, %v14165_v49 }
 0x75c   :  { %7927 = vmatprep.subr.mxu1 %v14802_v44  ;;  %7719 = vmatpush2.msra.mxu0 %v14002_v12 }
 0x75d   :  { %7933 = vmatpush2.msra.mxu1 %v7932_v4  ;;  %7720 = vmatprep.subr.mxu0 %v14802_v44  ;;  %v7966_v4 = vsub.f32 %v14146_v40, %v7965_v16  ;;  %v7973_v14 = vsub.f32 %v14165_v49, %v7972_v2 }
 0x75e   :  { %7934 = vmatprep.subr.mxu1 %v14802_v44  ;;  %7722 = vmatpush2.msra.mxu0 %v14016_v21 }
 0x75f   :  { %7940 = vmatpush2.msra.mxu1 %v7939_v63  ;;  %7723 = vmatprep.subr.mxu0 %v14802_v44  ;;  %v7967_v63 = vand.u32 4294901760, %v7966_v4  ;;  %v7974_v5 = vand.u32 4294901760, %v7973_v14  ;;  %v15106_v14 = vld [vmem:[#allocation39_spill] sm:$0xff] }
 0x760   :  { %7941 = vmatprep.subr.mxu1 %v14802_v44  ;;  %7725 = vmatpush2.msra.mxu0 %v14037_v38 }
 0x761   :  { %7947 = vmatpush2.msra.mxu1 %v7946_v41  ;;  %7726 = vmatprep.subr.mxu0 %v14802_v44  ;;  %v7980_v41 = vsub.f32 %v14174_v51, %v7979_v3 }
 0x762   :  { %7948 = vmatprep.subr.mxu1 %v14802_v44  ;;  %7728 = vmatpush2.msra.mxu0 %v14050_v52 }
 0x763   :  { %7954 = vmatpush2.msra.mxu1 %v7953_v50  ;;  %7729 = vmatprep.subr.mxu0 %v14802_v44  ;;  %v7981_v50 = vand.u32 4294901760, %v7980_v41  ;;  %v15107_v41 = vld [vmem:[#allocation40_spill] sm:$0xff] }
 0x764   :  { %7955 = vmatprep.subr.mxu1 %v14802_v44  ;;  %7731 = vmatpush2.msra.mxu0 %v14064_v18 }
 0x765   :  { %7961 = vmatpush2.msra.mxu1 %v7960_v53  ;;  %7732 = vmatprep.subr.mxu0 %v14802_v44 }
 0x766   :  { %7962 = vmatprep.subr.mxu1 %v14802_v44  ;;  %7734 = vmatpush2.msra.mxu0 %v14076_v11 }
 0x767   :  { %7968 = vmatpush2.msra.mxu1 %v7967_v63  ;;  %7735 = vmatprep.subr.mxu0 %v14802_v44  ;;  %v15105_v63 = vld [vmem:[#allocation10_spill] sm:$0xff] }
 0x768   :  { %7969 = vmatprep.subr.mxu1 %v14802_v44  ;;  %7737 = vmatpush2.msra.mxu0 %v14088_v47 }
 0x769   :  { %7975 = vmatpush2.msra.mxu1 %v7974_v5  ;;  %7738 = vmatprep.subr.mxu0 %v14802_v44  ;;  %v15108_v5 = vld [vmem:[#allocation35_spill] sm:$0xff] }
 0x76a   :  { %7976 = vmatprep.subr.mxu1 %v14802_v44  ;;  %7740 = vmatpush2.msra.mxu0 %v14100_v6 }
 0x76b   :  { %7982 = vmatpush2.msra.mxu1 %v7981_v50  ;;  %7741 = vmatprep.subr.mxu0 %v14802_v44 }
 0x76c   :  { %7984 = vmatprep.mubr.f32.mxu1 %v12438_v19  ;;  %8125 = vmatprep.subr.mxu1 %v14802_v44 }
 0x76d   :  { %7743 = vmatpush2.msra.mxu0 %v14112_v15  ;;  %7986 = vmatmul.mubr.f32.vlgmr.msra.gmra.mxu1 %v12442_v62 }
 0x76e   :  { %8127 = vmatpush1.msra.mxu1 %v13437_v45  ;;  %7744 = vmatprep.subr.mxu0 %v14802_v44 }
 0x76f   :  { %8128 = vmatprep.subr.mxu1 %v14802_v44  ;;  %7746 = vmatpush2.msra.mxu0 %v14124_v42 }
 0x770   :  { %8130 = vmatpush1.msra.mxu1 %v13450_v35  ;;  %7747 = vmatprep.subr.mxu0 %v14802_v44 }
 0x771   :  { %8131 = vmatprep.subr.mxu1 %v14802_v44  ;;  %7749 = vmatpush2.msra.mxu0 %v14138_v29 }
 0x772   :  { %8133 = vmatpush1.msra.mxu1 %v13454_v0  ;;  %7750 = vmatprep.subr.mxu0 %v14802_v44 }
 0x773   :  { %8134 = vmatprep.subr.mxu1 %v14802_v44  ;;  %7752 = vmatpush2.msra.mxu0 %v14155_v54  ;;  %v7121_v4 = vpop.f32.mrf.mxu1 }
 0x774   :  { %7758 = vmatprep.mubr.f32.mxu0 %v15018_v61  ;;  %8136 = vmatpush1.msra.mxu1 %v13467_v17 }
 0x775   :  { %7764 = vmatmul.mubr.f32.vlgmr.msra.gmra.mxu0 %v15019_v22  ;;  %7991 = vmatprep.subr.mxu0 %v14802_v44  ;;  %v7123_v53 = vpop.f32.mrf.mxu1 }
 0x776   :  { %8137 = vmatprep.subr.mxu1 %v14802_v44  ;;  %7994 = vmatpush1.msra.mxu0 %v15025_v7 }
 0x777   :  { %8139 = vmatpush1.msra.mxu1 %v13469_v26  ;;  %7995 = vmatprep.subr.mxu0 %v14802_v44 }
 0x778   :  { %8140 = vmatprep.subr.mxu1 %v14802_v44  ;;  %7998 = vmatpush1.msra.mxu0 %v15026_v20  ;;  %v15101_v20 = vld [vmem:[#allocation13_spill] sm:$0xff] }
 0x779   :  { %8142 = vmatpush1.msra.mxu1 %v13491_v10  ;;  %7999 = vmatprep.subr.mxu0 %v14802_v44 }
 0x77a   :  { %8143 = vmatprep.subr.mxu1 %v14802_v44  ;;  %8002 = vmatpush1.msra.mxu0 %v15027_v39  ;;  %v6899_v22 = vpop.f32.mrf.mxu0  ;;  %v15102_v39 = vld [vmem:[#allocation14_spill] sm:$0xff] }
 0x77b   :  { %8145 = vmatpush1.msra.mxu1 %v13508_v33  ;;  %8003 = vmatprep.subr.mxu0 %v14802_v44  ;;  %v14240_v61 = vadd.f32 %v7121_v4, %v6899_v22  ;;  %v15110_v4 = vld [vmem:[#allocation21_spill] sm:$0xff]  ;;  %v15113_v22 = vld [vmem:[#allocation6_spill] sm:$0xff] }
 0x77c   :  { %8146 = vmatprep.subr.mxu1 %v14802_v44  ;;  %8006 = vmatpush1.msra.mxu0 %v13496_v30  ;;  %v6901_v7 = vpop.f32.mrf.mxu0  ;;  %v15097_v30 = vld [vmem:[#allocation15_spill] sm:$0xff] }
 0x77d   :  { %8148 = vmatpush1.msra.mxu1 %v13521_v24  ;;  %8007 = vmatprep.subr.mxu0 %v14802_v44 }
 0x77e   :  { %8149 = vmatprep.subr.mxu1 %v14802_v44  ;;  %8010 = vmatpush1.msra.mxu0 %v15028_v9  ;;  %v15103_v9 = vld [vmem:[#allocation3_spill] sm:$0xff] }
 0x77f   :  { %8151 = vmatpush1.msra.mxu1 %v13537_v37  ;;  %8011 = vmatprep.subr.mxu0 %v14802_v44 }
 0x780   :  { %8152 = vmatprep.subr.mxu1 %v14802_v44  ;;  %8014 = vmatpush1.msra.mxu0 %v15029_v60  ;;  %v15104_v60 = vld [vmem:[#allocation16_spill] sm:$0xff] }
 0x781   :  { %8154 = vmatpush1.msra.mxu1 %v13552_v31  ;;  %8015 = vmatprep.subr.mxu0 %v14802_v44 }
 0x782   :  { %8155 = vmatprep.subr.mxu1 %v14802_v44  ;;  %8018 = vmatpush1.msra.mxu0 %v13535_v36  ;;  %v15095_v36 = vld [vmem:[#allocation41_spill] sm:$0xff] }
 0x783   :  { %8157 = vmatpush1.msra.mxu1 %v13572_v25  ;;  %8019 = vmatprep.subr.mxu0 %v14802_v44 }
 0x784   :  { %8158 = vmatprep.subr.mxu1 %v14802_v44  ;;  %8022 = vmatpush1.msra.mxu0 %v13550_v23  ;;  %v15098_v23 = vld [vmem:[#allocation5_spill] sm:$0xff] }
 0x785   :  { %8160 = vmatpush1.msra.mxu1 %v13588_v28  ;;  %8023 = vmatprep.subr.mxu0 %v14802_v44 }
 0x786   :  { %8161 = vmatprep.subr.mxu1 %v14802_v44  ;;  %8026 = vmatpush1.msra.mxu0 %v13568_v48  ;;  %v15094_v48 = vld [vmem:[#allocation53_spill] sm:$0xff] }
 0x787   :  { %8163 = vmatpush1.msra.mxu1 %v13957_v34  ;;  %8027 = vmatprep.subr.mxu0 %v14802_v44 }
 0x788   :  { %8164 = vmatprep.subr.mxu1 %v14802_v44  ;;  %8030 = vmatpush1.msra.mxu0 %v13584_v27  ;;  %v15100_v27 = vld [vmem:[#allocation8_spill] sm:$0xff] }
 0x789   :  { %8166 = vmatpush1.msra.mxu1 %v13965_v58  ;;  %8031 = vmatprep.subr.mxu0 %v14802_v44 }
 0x78a   :  { %8167 = vmatprep.subr.mxu1 %v14802_v44  ;;  %8034 = vmatpush1.msra.mxu0 %v13613_v32  ;;  %v15099_v32 = vld [vmem:[#allocation12_spill] sm:$0xff] }
 0x78b   :  { %8169 = vmatpush1.msra.mxu1 %v13974_v59  ;;  %8035 = vmatprep.subr.mxu0 %v14802_v44 }
 0x78c   :  { %8170 = vmatprep.subr.mxu1 %v14802_v44  ;;  %8038 = vmatpush1.msra.mxu0 %v13624_v55  ;;  %v15096_v55 = vld [vmem:[#allocation42_spill] sm:$0xff] }
 0x78d   :  { %8172 = vmatpush1.msra.mxu1 %v13978_v8  ;;  %8039 = vmatprep.subr.mxu0 %v14802_v44 }
 0x78e   :  { %8177 = vmatprep.subr.mxu1 %v14802_v44  ;;  %8042 = vmatpush1.msra.mxu0 %v15094_v48 }
 0x78f   :  { %8179 = vmatpush2.msra.mxu1 %v13985_v46  ;;  %8043 = vmatprep.subr.mxu0 %v14802_v44 }
 0x790   :  { %8180 = vmatprep.subr.mxu1 %v14802_v44  ;;  %8046 = vmatpush1.msra.mxu0 %v15095_v36 }
 0x791   :  { %8182 = vmatpush2.msra.mxu1 %v13995_v13  ;;  %8047 = vmatprep.subr.mxu0 %v14802_v44 }
 0x792   :  { %8183 = vmatprep.subr.mxu1 %v14802_v44  ;;  %8050 = vmatpush1.msra.mxu0 %v15096_v55 }
 0x793   :  { %8185 = vmatpush2.msra.mxu1 %v14002_v12  ;;  %8051 = vmatprep.subr.mxu0 %v14802_v44 }
 0x794   :  { %8186 = vmatprep.subr.mxu1 %v14802_v44  ;;  %8054 = vmatpush1.msra.mxu0 %v15097_v30 }
 0x795   :  { %8188 = vmatpush2.msra.mxu1 %v14016_v21  ;;  %8059 = vmatprep.subr.mxu0 %v14802_v44 }
 0x796   :  { %8189 = vmatprep.subr.mxu1 %v14802_v44  ;;  %8062 = vmatpush2.msra.mxu0 %v15098_v23 }
 0x797   :  { %8191 = vmatpush2.msra.mxu1 %v14037_v38  ;;  %8063 = vmatprep.subr.mxu0 %v14802_v44 }
 0x798   :  { %8192 = vmatprep.subr.mxu1 %v14802_v44  ;;  %8066 = vmatpush2.msra.mxu0 %v15099_v32 }
 0x799   :  { %8194 = vmatpush2.msra.mxu1 %v14050_v52  ;;  %8067 = vmatprep.subr.mxu0 %v14802_v44 }
 0x79a   :  { %8195 = vmatprep.subr.mxu1 %v14802_v44  ;;  %8070 = vmatpush2.msra.mxu0 %v15100_v27 }
 0x79b   :  { %8197 = vmatpush2.msra.mxu1 %v14064_v18  ;;  %8071 = vmatprep.subr.mxu0 %v14802_v44 }
 0x79c   :  { %8198 = vmatprep.subr.mxu1 %v14802_v44  ;;  %8074 = vmatpush2.msra.mxu0 %v15101_v20 }
 0x79d   :  { %8200 = vmatpush2.msra.mxu1 %v14076_v11  ;;  %8075 = vmatprep.subr.mxu0 %v14802_v44 }
 0x79e   :  { %8201 = vmatprep.subr.mxu1 %v14802_v44  ;;  %8078 = vmatpush2.msra.mxu0 %v15102_v39 }
 0x79f   :  { %8203 = vmatpush2.msra.mxu1 %v14088_v47  ;;  %8079 = vmatprep.subr.mxu0 %v14802_v44 }
 0x7a0   :  { %8204 = vmatprep.subr.mxu1 %v14802_v44  ;;  %8082 = vmatpush2.msra.mxu0 %v15103_v9 }
 0x7a1   :  { %8206 = vmatpush2.msra.mxu1 %v14100_v6  ;;  %8083 = vmatprep.subr.mxu0 %v14802_v44 }
 0x7a2   :  { %8207 = vmatprep.subr.mxu1 %v14802_v44  ;;  %8086 = vmatpush2.msra.mxu0 %v15104_v60 }
 0x7a3   :  { %8209 = vmatpush2.msra.mxu1 %v14112_v15  ;;  %8087 = vmatprep.subr.mxu0 %v14802_v44 }
 0x7a4   :  { %8210 = vmatprep.subr.mxu1 %v14802_v44  ;;  %8090 = vmatpush2.msra.mxu0 %v14098_v57 }
 0x7a5   :  { %8212 = vmatpush2.msra.mxu1 %v14124_v42  ;;  %8091 = vmatprep.subr.mxu0 %v14802_v44 }
 0x7a6   :  { %8213 = vmatprep.subr.mxu1 %v14802_v44  ;;  %8094 = vmatpush2.msra.mxu0 %v15105_v63 }
 0x7a7   :  { %8215 = vmatpush2.msra.mxu1 %v14138_v29  ;;  %8095 = vmatprep.subr.mxu0 %v14802_v44 }
 0x7a8   :  { %8216 = vmatprep.subr.mxu1 %v14802_v44  ;;  %8098 = vmatpush2.msra.mxu0 %v14122_v43 }
 0x7a9   :  { %8218 = vmatpush2.msra.mxu1 %v14155_v54  ;;  %8099 = vmatprep.subr.mxu0 %v14802_v44 }
 0x7aa   :  { %8222 = vmatprep.mubr.f32.mxu1 %v15106_v14  ;;  %8393 = vmatprep.subr.mxu1 %v14802_v44  ;;  %v15114_v14 = vld [vmem:[#allocation17_spill] sm:$0xff] }
 0x7ab   :  { %8102 = vmatpush2.msra.mxu0 %v14134_v56  ;;  %8226 = vmatmul.mubr.f32.vlgmr.msra.gmra.mxu1 %v15107_v41 }
 0x7ac   :  { %8395 = vmatpush1.msra.mxu1 %v13437_v45  ;;  %8103 = vmatprep.subr.mxu0 %v14802_v44 }
 0x7ad   :  { %8396 = vmatprep.subr.mxu1 %v14802_v44  ;;  %8106 = vmatpush2.msra.mxu0 %v14146_v40 }
 0x7ae   :  { %8398 = vmatpush1.msra.mxu1 %v13450_v35  ;;  %8107 = vmatprep.subr.mxu0 %v14802_v44  ;;  %v15109_v35 = vld [vmem:[#allocation36_spill] sm:$0xff] }
 0x7af   :  { %8399 = vmatprep.subr.mxu1 %v14802_v44  ;;  %8110 = vmatpush2.msra.mxu0 %v14165_v49 }
 0x7b0   :  { %8401 = vmatpush1.msra.mxu1 %v13454_v0  ;;  %8111 = vmatprep.subr.mxu0 %v14802_v44  ;;  %v15111_v0 = vld [vmem:[#allocation4_spill] sm:$0xff] }
 0x7b1   :  { %8402 = vmatprep.subr.mxu1 %v14802_v44  ;;  %8114 = vmatpush2.msra.mxu0 %v14174_v51  ;;  %v7361_v45 = vpop.f32.mrf.mxu1 }
 0x7b2   :  { %8117 = vmatprep.mubr.f32.mxu0 %v15108_v5  ;;  %8404 = vmatpush1.msra.mxu1 %v13467_v17  ;;  %v15112_v17 = vld [vmem:[#allocation11_spill] sm:$0xff] }
 0x7b3   :  { %8120 = vmatmul.mubr.f32.vlgmr.msra.gmra.mxu0 %v15109_v35  ;;  %8231 = vmatprep.subr.mxu0 %v14802_v44  ;;  %v7363_v50 = vpop.f32.mrf.mxu1 }
 0x7b4   :  { %8405 = vmatprep.subr.mxu1 %v14802_v44  ;;  %8235 = vmatpush1.msra.mxu0 %v15110_v4 }
 0x7b5   :  { %8407 = vmatpush1.msra.mxu1 %v13469_v26  ;;  %8236 = vmatprep.subr.mxu0 %v14802_v44 }
 0x7b6   :  { %8408 = vmatprep.subr.mxu1 %v14802_v44  ;;  %8240 = vmatpush1.msra.mxu0 %v15111_v0 }
 0x7b7   :  { %8410 = vmatpush1.msra.mxu1 %v13491_v10  ;;  %8241 = vmatprep.subr.mxu0 %v14802_v44 }
 0x7b8   :  { %8411 = vmatprep.subr.mxu1 %v14802_v44  ;;  %8245 = vmatpush1.msra.mxu0 %v15112_v17  ;;  %v7255_v53 = vpop.f32.mrf.mxu0 }
 0x7b9   :  { %8413 = vmatpush1.msra.mxu1 %v13508_v33  ;;  %8246 = vmatprep.subr.mxu0 %v14802_v44  ;;  %v7256_v26 = vadd.f32 %v7255_v53, %v14240_v61  ;;  %v15115_v33 = vld [vmem:[#allocation22_spill] sm:$0xff] }
 0x7ba   :  { %8414 = vmatprep.subr.mxu1 %v14802_v44  ;;  %8250 = vmatpush1.msra.mxu0 %v15113_v22  ;;  %v7257_v7 = vpop.f32.mrf.mxu0 }
 0x7bb   :  { %8416 = vmatpush1.msra.mxu1 %v13521_v24  ;;  %8251 = vmatprep.subr.mxu0 %v14802_v44  ;;  %v14371_v10 = vadd.f32 %v7361_v45, %v7256_v26  ;;  %v15116_v24 = vld [vmem:[#allocation28_spill] sm:$0xff] }
 0x7bc   :  { %8417 = vmatprep.subr.mxu1 %v14802_v44  ;;  %8255 = vmatpush1.msra.mxu0 %v15114_v14 }
 0x7bd   :  { %8419 = vmatpush1.msra.mxu1 %v13537_v37  ;;  %8256 = vmatprep.subr.mxu0 %v14802_v44  ;;  %v15117_v37 = vld [vmem:[#allocation33_spill] sm:$0xff] }
 0x7be   :  { %8420 = vmatprep.subr.mxu1 %v14802_v44  ;;  %8260 = vmatpush1.msra.mxu0 %v15115_v33 }
 0x7bf   :  { %8422 = vmatpush1.msra.mxu1 %v13552_v31  ;;  %8261 = vmatprep.subr.mxu0 %v14802_v44  ;;  %v15118_v31 = vld [vmem:[#allocation34_spill] sm:$0xff] }
 0x7c0   :  { %8423 = vmatprep.subr.mxu1 %v14802_v44  ;;  %8265 = vmatpush1.msra.mxu0 %v15116_v24 }
 0x7c1   :  { %8425 = vmatpush1.msra.mxu1 %v13572_v25  ;;  %8266 = vmatprep.subr.mxu0 %v14802_v44  ;;  %v15119_v25 = vld [vmem:[#allocation43_spill] sm:$0xff] }
 0x7c2   :  { %8426 = vmatprep.subr.mxu1 %v14802_v44  ;;  %8270 = vmatpush1.msra.mxu0 %v15117_v37 }
 0x7c3   :  { %8428 = vmatpush1.msra.mxu1 %v13588_v28  ;;  %8271 = vmatprep.subr.mxu0 %v14802_v44  ;;  %v15120_v28 = vld [vmem:[#allocation45_spill] sm:$0xff] }
 0x7c4   :  { %8429 = vmatprep.subr.mxu1 %v14802_v44  ;;  %8275 = vmatpush1.msra.mxu0 %v15118_v31 }
 0x7c5   :  { %8431 = vmatpush1.msra.mxu1 %v13957_v34  ;;  %8276 = vmatprep.subr.mxu0 %v14802_v44  ;;  %v15121_v34 = vld [vmem:[#allocation49_spill] sm:$0xff] }
 0x7c6   :  { %8432 = vmatprep.subr.mxu1 %v14802_v44  ;;  %8280 = vmatpush1.msra.mxu0 %v15119_v25 }
 0x7c7   :  { %8434 = vmatpush1.msra.mxu1 %v13965_v58  ;;  %8281 = vmatprep.subr.mxu0 %v14802_v44  ;;  %v15122_v58 = vand.u32 4294901760, %v15094_v48 }
 0x7c8   :  { %8435 = vmatprep.subr.mxu1 %v14802_v44  ;;  %8285 = vmatpush1.msra.mxu0 %v15120_v28 }
 0x7c9   :  { %8437 = vmatpush1.msra.mxu1 %v13974_v59  ;;  %8286 = vmatprep.subr.mxu0 %v14802_v44  ;;  %v15123_v59 = vand.u32 4294901760, %v15095_v36 }
 0x7ca   :  { %8438 = vmatprep.subr.mxu1 %v14802_v44  ;;  %8290 = vmatpush1.msra.mxu0 %v15121_v34 }
 0x7cb   :  { %8440 = vmatpush1.msra.mxu1 %v13978_v8  ;;  %8291 = vmatprep.subr.mxu0 %v14802_v44  ;;  %v15124_v8 = vand.u32 4294901760, %v15096_v55 }
 0x7cc   :  { %8445 = vmatprep.subr.mxu1 %v14802_v44  ;;  %8295 = vmatpush1.msra.mxu0 %v15122_v58 }
 0x7cd   :  { %8447 = vmatpush2.msra.mxu1 %v13985_v46  ;;  %8296 = vmatprep.subr.mxu0 %v14802_v44  ;;  %v15125_v46 = vand.u32 4294901760, %v15097_v30 }
 0x7ce   :  { %8448 = vmatprep.subr.mxu1 %v14802_v44  ;;  %8300 = vmatpush1.msra.mxu0 %v15123_v59 }
 0x7cf   :  { %8450 = vmatpush2.msra.mxu1 %v13995_v13  ;;  %8301 = vmatprep.subr.mxu0 %v14802_v44  ;;  %v15126_v13 = vand.u32 4294901760, %v15098_v23 }
 0x7d0   :  { %8451 = vmatprep.subr.mxu1 %v14802_v44  ;;  %8305 = vmatpush1.msra.mxu0 %v15124_v8 }
 0x7d1   :  { %8453 = vmatpush2.msra.mxu1 %v14002_v12  ;;  %8306 = vmatprep.subr.mxu0 %v14802_v44  ;;  %v15127_v12 = vand.u32 4294901760, %v15099_v32 }
 0x7d2   :  { %8454 = vmatprep.subr.mxu1 %v14802_v44  ;;  %8310 = vmatpush1.msra.mxu0 %v15125_v46 }
 0x7d3   :  { %8456 = vmatpush2.msra.mxu1 %v14016_v21  ;;  %8315 = vmatprep.subr.mxu0 %v14802_v44  ;;  %v15128_v21 = vand.u32 4294901760, %v15100_v27  ;;  %v8515_v27 = vpop.permute.xlu0 %8514 }
 0x7d4   :  { %8457 = vmatprep.subr.mxu1 %v14802_v44  ;;  %8319 = vmatpush2.msra.mxu0 %v15126_v13 }
 0x7d5   :  { %8459 = vmatpush2.msra.mxu1 %v14037_v38  ;;  %8320 = vmatprep.subr.mxu0 %v14802_v44  ;;  %v15129_v38 = vand.u32 4294901760, %v15101_v20  ;;  %v8497_v20 = vpop.permute.xlu1 %8496 }
 0x7d6   :  { %8460 = vmatprep.subr.mxu1 %v14802_v44  ;;  %8324 = vmatpush2.msra.mxu0 %v15127_v12 }
 0x7d7   :  { %8462 = vmatpush2.msra.mxu1 %v14050_v52  ;;  %8325 = vmatprep.subr.mxu0 %v14802_v44  ;;  %v15130_v52 = vand.u32 4294901760, %v15102_v39 }
 0x7d8   :  { %8463 = vmatprep.subr.mxu1 %v14802_v44  ;;  %8329 = vmatpush2.msra.mxu0 %v15128_v21 }
 0x7d9   :  { %8465 = vmatpush2.msra.mxu1 %v14064_v18  ;;  %8330 = vmatprep.subr.mxu0 %v14802_v44  ;;  %v15131_v18 = vand.u32 4294901760, %v15103_v9  ;;  %v15136_v9 = vld [vmem:[#allocation9_spill] sm:$0xff] }
 0x7da   :  { %8466 = vmatprep.subr.mxu1 %v14802_v44  ;;  %8334 = vmatpush2.msra.mxu0 %v15129_v38 }
 0x7db   :  { %8468 = vmatpush2.msra.mxu1 %v14076_v11  ;;  %8335 = vmatprep.subr.mxu0 %v14802_v44  ;;  %v15132_v11 = vand.u32 4294901760, %v15104_v60  ;;  %v8507_v60 = vsel %vm32_vm2, %v15136_v9, %v8497_v20 }
 0x7dc   :  { %8469 = vmatprep.subr.mxu1 %v14802_v44  ;;  %8339 = vmatpush2.msra.mxu0 %v15130_v52 }
 0x7dd   :  { %8471 = vmatpush2.msra.mxu1 %v14088_v47  ;;  %8340 = vmatprep.subr.mxu0 %v14802_v44  ;;  %v15133_v47 = vand.u32 4294901760, %v14098_v57 }
 0x7de   :  { %8472 = vmatprep.subr.mxu1 %v14802_v44  ;;  %8344 = vmatpush2.msra.mxu0 %v15131_v18 }
 0x7df   :  { %8474 = vmatpush2.msra.mxu1 %v14100_v6  ;;  %8345 = vmatprep.subr.mxu0 %v14802_v44  ;;  %v15134_v6 = vand.u32 4294901760, %v15105_v63 }
 0x7e0   :  { %8475 = vmatprep.subr.mxu1 %v14802_v44  ;;  %8349 = vmatpush2.msra.mxu0 %v15132_v11 }
 0x7e1   :  { %8477 = vmatpush2.msra.mxu1 %v14112_v15  ;;  %8350 = vmatprep.subr.mxu0 %v14802_v44  ;;  %v15135_v15 = vand.u32 4294901760, %v14134_v56 }
 0x7e2   :  { %8478 = vmatprep.subr.mxu1 %v14802_v44  ;;  %8354 = vmatpush2.msra.mxu0 %v15133_v47 }
 0x7e3   :  { %8480 = vmatpush2.msra.mxu1 %v14124_v42  ;;  %8355 = vmatprep.subr.mxu0 %v14802_v44 }
 0x7e4   :  { %8481 = vmatprep.subr.mxu1 %v14802_v44  ;;  %8359 = vmatpush2.msra.mxu0 %v15134_v6 }
 0x7e5   :  { %8483 = vmatpush2.msra.mxu1 %v14138_v29  ;;  %8360 = vmatprep.subr.mxu0 %v14802_v44 }
 0x7e6   :  { %8484 = vmatprep.subr.mxu1 %v14802_v44  ;;  %8364 = vmatpush2.msra.mxu0 %v7951_v1 }
 0x7e7   :  { %8486 = vmatpush2.msra.mxu1 %v14155_v54  ;;  %8365 = vmatprep.subr.mxu0 %v14802_v44 }
 0x7e8   :  { %8369 = vmatpush2.msra.mxu0 %v15135_v15  ;;  %8386 = vmatprep.mubr.f32.mxu0 %v12438_v19 }
 0x7e9   :  { %8370 = vmatprep.subr.mxu0 %v14802_v44  ;;  %8488 = vmatprep.mubr.f32.mxu1 %v12438_v19 }
 0x7ea   :  { %8374 = vmatpush2.msra.mxu0 %v7965_v16  ;;  %8490 = vmatmul.mubr.f32.vlgmr.msra.gmra.mxu1 %v12442_v62 }
 0x7eb   :  { %8375 = vmatprep.subr.mxu0 %v14802_v44 }
 0x7ec   :  { %8379 = vmatpush2.msra.mxu0 %v7972_v2 }
 0x7ed   :  { %8380 = vmatprep.subr.mxu0 %v14802_v44 }
 0x7ee   :  { %8384 = vmatpush2.msra.mxu0 %v7979_v3 }
 0x7ef   :  { %8388 = vmatmul.mubr.f32.vlgmr.msra.gmra.mxu0 %v12442_v62  ;;  %v7625_v29 = vpop.f32.mrf.mxu1 }
 0x7f1   :  { %v7627_v57 = vpop.f32.mrf.mxu1 }
 0x7f6   :  { %v7523_v19 = vpop.f32.mrf.mxu0 }
 0x7f7   :  { %v7524_v43 = vadd.f32 %v7523_v19, %v14371_v10 }
 0x7f8   :  { %v7525_v1 = vpop.f32.mrf.mxu0 }
 0x7f9   :  { %v7626_v42 = vadd.f32 %v7625_v29, %v7524_v43 }
 0x7fb   :  { %8500 = vrot.lane.b32.xlu0 %v7626_v42, %s10084_s19 }
 0x82d   :  { %v7987_v56 = vpop.f32.mrf.mxu1 }
 0x82f   :  { %v7989_v40 = vpop.f32.mrf.mxu1 }
 0x835   :  { %v7765_v54 = vpop.f32.mrf.mxu0 }
 0x836   :  { %v7988_v16 = vadd.f32 %v7987_v56, %v7765_v54 }
 0x837   :  { %v7767_v49 = vpop.f32.mrf.mxu0 }
 0x86b   :  { %v8227_v44 = vpop.f32.mrf.mxu1 }
 0x86d   :  { %v8229_v2 = vpop.f32.mrf.mxu1  ;;  %v8501_v39 = vpop.permute.xlu0 %8500 }
 0x86e   :  { %v8509_v63 = vsel %vm8508_vm5, %v8507_v60, %v8501_v39 }
 0x873   :  { %v8121_v51 = vpop.f32.mrf.mxu0 }
 0x874   :  { %v8122_v3 = vadd.f32 %v8121_v51, %v7988_v16 }
 0x875   :  { %v8123_v61 = vpop.f32.mrf.mxu0 }
 0x876   :  { %v8228_v62 = vadd.f32 %v8227_v44, %v8122_v3 }
 0x8aa   :  { %v8491_v48 = vpop.f32.mrf.mxu1 }
 0x8ac   :  { %v8493_v36 = vpop.f32.mrf.mxu1 }
 0x8af   :  { %v8389_v55 = vpop.f32.mrf.mxu0 }
 0x8b0   :  { %v8390_v30 = vadd.f32 %v8389_v55, %v8228_v62 }
 0x8b1   :  { %v8391_v23 = vpop.f32.mrf.mxu0 }
 0x8b2   :  { %v8492_v32 = vadd.f32 %v8491_v48, %v8390_v30 }
 0x8b4   :  { %8504 = vrot.lane.b32.xlu1 %v8492_v32, %s10085_s2 }
 0x926   :  { %v8505_v41 = vpop.permute.xlu1 %8504 }
 0x927   :  { %v8511_v45 = vsel %vm8510_vm6, %v8509_v63, %v8505_v41 }
 0x928   :  { %v8517_v5 = vadd.f32 %v8515_v27, %v8511_v45 }
 0x92a   :  { %v8519_v35 = vmul.f32 %v8517_v5, %v8517_v5  ;;  %v8518_v26 = vmul.f32 0.5, %v8517_v5 }
 0x92c   :  { %v8520_v50 = vmul.f32 %v8519_v35, %v8517_v5 }
 0x92e   :  { %v8521_v4 = vmul.f32 0.044715, %v8520_v50 }
 0x930   :  { %v8522_v0 = vadd.f32 %v8521_v4, %v8517_v5 }
 0x932   :  { %v8523_v17 = vmul.f32 0.7978846, %v8522_v0 }
 0x934   :  { %10077 = vtanh.f32 %v8523_v17 }
 0x941   :  { %v10078_v53 = vpop.eup %10077 }
 0x942   :  { %v8525_v22 = vadd.f32 1.0, %v10078_v53 }
 0x944   :  { %v8526_v7 = vmul.f32 %v8525_v22, %v8518_v26 }
 0x946   :  { %8528 = vst.msk [vmem:[%s14502_s6] sm:$0xff] %vm8527_vm7, %v8526_v7 }

</bundles_post_ra>
